<compile_context>
chip_gen: v6e
topology: v6e:2x2x1
jax: 0.10.0
libtpu: 0.0.40
codegen_flags: <defaults>
</compile_context>

<pallas_src>
import functools

import jax
import jax.numpy as jnp
from jax import lax
from jax.experimental import pallas as pl
from jax.experimental.pallas import tpu as pltpu

EPS = 1e-5


def _round_up(x, m):
    return ((x + m - 1) // m) * m


def _zero_margins(pad_ref, margin, hw, c):
    # Only the margins; the interior is fully overwritten before the taps are read.
    pad_ref[pl.ds(0, margin), :] = jnp.zeros((margin, c), jnp.bfloat16)
    pad_ref[pl.ds(margin + hw, margin), :] = jnp.zeros((margin, c), jnp.bfloat16)


def _col_masks(hw, w):
    # Row (oy) boundaries are covered by the zeroed margins of the shift buffer, so only
    # column (ox = +/-1) validity masks are needed.  Two (hw, 1) bools, rebuilt per kernel.
    col = lax.broadcasted_iota(jnp.int32, (hw, 1), 0) % w
    return col > 0, col < (w - 1)          # left_ok, right_ok


def _conv3x3(act, w_ref, pad_ref, slab_ref, left_ok, right_ok, *, w, margin):
    """3x3 'same' conv of one image as a single (HW, 9C) x (9C, C) MXU matmul."""
    hw, c = act.shape
    # Single f32 -> bf16 cast: write the activation once into the row-shift buffer.
    pad_ref[pl.ds(margin, hw), :] = act.astype(jnp.bfloat16)

    def tap(t):
        dy, dx = t // 3, t % 3
        shift = (dy - 1) * w + (dx - 1)                 # compile-time constant
        v = pad_ref[pl.ds(margin + shift, hw), :]       # (hw, c) bf16
        if dx == 0:                                     # ox = -1
            v = jnp.where(left_ok, v, jnp.zeros_like(v))
        elif dx == 2:                                   # ox = +1
            v = jnp.where(right_ok, v, jnp.zeros_like(v))
        return v                                        # ox = 0 taps need no mask

    if c % 128 != 0 and (2 * c) % 128 == 0:
        # Pair taps so each slab write is a full, aligned 128-lane store (C == 64 case).
        for t in range(0, 8, 2):
            slab_ref[:, t * c:(t + 2) * c] = jnp.concatenate([tap(t), tap(t + 1)], axis=1)
        slab_ref[:, 8 * c:9 * c] = tap(8)
    else:
        for t in range(9):
            slab_ref[:, t * c:(t + 1) * c] = tap(t)

    # Single (HW, 9C) x (9C, C) matmul, bf16 in / f32 accumulate.
    return jnp.dot(slab_ref[...], w_ref[...], preferred_element_type=jnp.float32)


def _partial_stats(out, stats_ref):
    # Per-image partial BatchNorm statistics: row 0 = sum, row 1 = sum of squares.
    c = out.shape[1]
    s = jnp.sum(out, axis=0, keepdims=True)
    ss = jnp.sum(out * out, axis=0, keepdims=True)
    stats_ref[...] = jnp.concatenate([s, ss, jnp.zeros((6, c), jnp.float32)], axis=0)


def _conv_stats_kernel(x_ref, w_ref, conv_ref, stats_ref, pad_ref, slab_ref, *, w, margin):
    hw, c = x_ref.shape
    _zero_margins(pad_ref, margin, hw, c)
    left_ok, right_ok = _col_masks(hw, w)
    out = _conv3x3(x_ref[...], w_ref, pad_ref, slab_ref, left_ok, right_ok,
                   w=w, margin=margin)
    conv_ref[...] = out
    _partial_stats(out, stats_ref)


def _bn_prelu_conv_stats_kernel(y_ref, sc_ref, sh_ref, a_ref, w_ref,
                                conv_ref, stats_ref, pad_ref, slab_ref, *, w, margin):
    hw, c = y_ref.shape
    _zero_margins(pad_ref, margin, hw, c)
    left_ok, right_ok = _col_masks(hw, w)
    act = y_ref[...] * sc_ref[...] + sh_ref[...]            # BN1 apply (global scale/shift)
    act = jnp.where(act >= 0.0, act, act * a_ref[...])      # PReLU ((1, C) broadcast)
    out = _conv3x3(act, w_ref, pad_ref, slab_ref, left_ok, right_ok,
                   w=w, margin=margin)
    conv_ref[...] = out
    _partial_stats(out, stats_ref)


def _bn_residual_kernel(x_ref, y_ref, sc_ref, sh_ref, o_ref):
    o_ref[...] = x_ref[...] + y_ref[...] * sc_ref[...] + sh_ref[...]


def _bn_scale_shift(stats, gamma, beta, count):
    # stats: (N, 8, C) with row 0 = per-image sum, row 1 = per-image sum of squares.
    s = jnp.sum(stats[:, 0, :], axis=0)
    ss = jnp.sum(stats[:, 1, :], axis=0)
    mean = s / count
    var = jnp.maximum(ss / count - mean * mean, 0.0)        # clamp f32 cancellation
    scale = gamma.reshape(-1) * lax.rsqrt(var + EPS)
    shift = beta.reshape(-1) - mean * scale
    return scale.reshape(1, -1), shift.reshape(1, -1)


@jax.jit
def generator_residual_block(x, w1, b1, g1, be1, alpha, w2, b2, g2, be2):
    """x: NHWC float32, w1/w2: HWIO (3,3,C,C), g*/be*: BN affine, alpha: PReLU weight.

    b1/b2 are accepted for interface parity with the PyTorch module but are not used:
    a per-channel conv bias is exactly cancelled by the following train-mode BatchNorm.
    """
    del b1, b2
    n, h, w, c = x.shape
    hw = h * w
    nhw = n * hw
    margin = _round_up(w + 1, 16)                           # bf16 sublane-tile aligned

    x3 = x.reshape(n, hw, c)
    w1m = w1.reshape(9 * c, c).astype(jnp.bfloat16)         # rows ordered (dy, dx, c_in)
    w2m = w2.reshape(9 * c, c).astype(jnp.bfloat16)
    alpha_row = jnp.broadcast_to(
        jnp.asarray(alpha, jnp.float32).reshape(-1), (c,)).reshape(1, c)

    # Block specs: one image per grid step; weights / per-channel rows resident (constant
    # index_map => fetched once).
    act_spec = pl.BlockSpec((None, hw, c), lambda i: (i, 0, 0))
    stats_spec = pl.BlockSpec((None, 8, c), lambda i: (i, 0, 0))
    w_spec = pl.BlockSpec((9 * c, c), lambda i: (0, 0))
    row_spec = pl.BlockSpec((1, c), lambda i: (0, 0))

    scratch = [
        pltpu.VMEM((hw + 2 * margin, c), jnp.bfloat16),     # bf16 row-shift buffer
        pltpu.VMEM((hw, 9 * c), jnp.bfloat16),              # im2col slab
    ]

    # vmem_limit_bytes derived from actual block / scratch sizes (double-buffered
    # pipelined blocks, +50% headroom), capped to stay safe on v7x's 64 MiB VMEM.
    bytes_act = hw * c * 4
    bytes_w = 9 * c * c * 2
    bytes_stats = 8 * c * 4
    bytes_row = c * 4
    bytes_scratch = (hw + 2 * margin) * c * 2 + hw * 9 * c * 2

    def _vmem_limit(io_bytes, scratch_bytes=0):
        est = int((2 * io_bytes + scratch_bytes) * 1.5) + (2 << 20)
        return max(16 << 20, min(est, 56 << 20))

    def _params(io_bytes, scratch_bytes=0):
        return pltpu.CompilerParams(
            dimension_semantics=("parallel",),
            vmem_limit_bytes=_vmem_limit(io_bytes, scratch_bytes))

    # --- kernel A: conv1 + per-image partial BN stats -------------------------------
    conv1_out, stats1 = pl.pallas_call(
        functools.partial(_conv_stats_kernel, w=w, margin=margin),
        grid=(n,),
        in_specs=[act_spec, w_spec],
        out_specs=[act_spec, stats_spec],
        out_shape=[jax.ShapeDtypeStruct((n, hw, c), jnp.float32),
                   jax.ShapeDtypeStruct((n, 8, c), jnp.float32)],
        scratch_shapes=scratch,
        compiler_params=_params(2 * bytes_act + bytes_w + bytes_stats, bytes_scratch),
    )(x3, w1m)

    scale1, shift1 = _bn_scale_shift(stats1, g1, be1, nhw)

    # --- kernel B: BN1 apply + PReLU + conv2 + per-image partial BN stats ------------
    conv2_out, stats2 = pl.pallas_call(
        functools.partial(_bn_prelu_conv_stats_kernel, w=w, margin=margin),
        grid=(n,),
        in_specs=[act_spec, row_spec, row_spec, row_spec, w_spec],
        out_specs=[act_spec, stats_spec],
        out_shape=[jax.ShapeDtypeStruct((n, hw, c), jnp.float32),
                   jax.ShapeDtypeStruct((n, 8, c), jnp.float32)],
        scratch_shapes=scratch,
        compiler_params=_params(2 * bytes_act + bytes_w + bytes_stats + 3 * bytes_row,
                                bytes_scratch),
    )(conv1_out, scale1, shift1, alpha_row, w2m)

    scale2, shift2 = _bn_scale_shift(stats2, g2, be2, nhw)

    # --- kernel C: BN2 apply + residual add ------------------------------------------
    y = pl.pallas_call(
        _bn_residual_kernel,
        grid=(n,),
        in_specs=[act_spec, act_spec, row_spec, row_spec],
        out_specs=act_spec,
        out_shape=jax.ShapeDtypeStruct((n, hw, c), x.dtype),
        compiler_params=_params(3 * bytes_act + 2 * bytes_row),
    )(x3, conv2_out, scale2, shift2)

    return y.reshape(n, h, w, c)


if __name__ == "__main__":
    key = jax.random.PRNGKey(0)
    N, H, W, C = 2, 8, 8, 64          # torch-equivalent input: NCHW (2, 64, 8, 8)
    keys = jax.random.split(key, 9)

    x = jax.random.normal(keys[0], (N, H, W, C), jnp.float32)

    # deterministic synthetic parameters (shapes follow the module __init__)
    w1 = 0.05 * jax.random.normal(keys[1], (3, 3, C, C), jnp.float32)   # conv1.weight (HWIO)
    b1 = 0.05 * jax.random.normal(keys[2], (1, C), jnp.float32)         # conv1.bias
    g1 = 1.0 + 0.1 * jax.random.normal(keys[3], (1, C), jnp.float32)    # bn1.weight
    be1 = 0.1 * jax.random.normal(keys[4], (1, C), jnp.float32)         # bn1.bias
    a = jnp.full((1,), 0.25, jnp.float32)                               # prelu.weight (default 0.25)
    w2 = 0.05 * jax.random.normal(keys[5], (3, 3, C, C), jnp.float32)   # conv2.weight (HWIO)
    b2 = 0.05 * jax.random.normal(keys[6], (1, C), jnp.float32)         # conv2.bias
    g2 = 1.0 + 0.1 * jax.random.normal(keys[7], (1, C), jnp.float32)    # bn2.weight
    be2 = 0.1 * jax.random.normal(keys[8], (1, C), jnp.float32)         # bn2.bias

    y = generator_residual_block(x, w1, b1, g1, be1, a, w2, b2, g2, be2)
    jax.block_until_ready(y)

    # pure-JAX reference (same NHWC / HWIO conventions; includes the conv bias — it is
    # mathematically cancelled by the train-mode BN, so results must still match)
    def ref(x):
        def conv(z, w_, b_):
            z = jax.lax.conv_general_dilated(
                z, w_, window_strides=(1, 1), padding="SAME",
                dimension_numbers=("NHWC", "HWIO", "NHWC"))
            return z + b_.reshape(1, 1, 1, -1)

        def bn(z, g_, be_):
            m = jnp.mean(z, axis=(0, 1, 2), keepdims=True)
            v = jnp.mean(jnp.square(z - m), axis=(0, 1, 2), keepdims=True)
            return ((z - m) * jax.lax.rsqrt(v + EPS) * g_.reshape(1, 1, 1, -1)
                    + be_.reshape(1, 1, 1, -1))

        out = bn(conv(x, w1, b1), g1, be1)
        out = jnp.where(out >= 0.0, out, a[0] * out)
        out = bn(conv(out, w2, b2), g2, be2)
        return x + out

    y_ref = ref(x)
    max_err = float(jnp.max(jnp.abs(y - y_ref)))
    # bf16 matmul operands (f32 accumulation / f32 BN stats) -> slightly looser tolerance
    assert jnp.allclose(y, y_ref, atol=3e-2, rtol=3e-2), max_err
    print("KERNEL_OK")
</pallas_src>

<mosaic_0001>
module attributes {stable_mosaic.version = 11 : i64} {
  func.func @_conv_stats_kernel(%arg0: i32, %arg1: memref<1x64x64xf32, #tpu.memory_space<vmem>>, %arg2: memref<576x64xbf16, #tpu.memory_space<vmem>>, %arg3: memref<1x64x64xf32, #tpu.memory_space<vmem>>, %arg4: memref<1x8x64xf32, #tpu.memory_space<vmem>>, %arg5: memref<96x64xbf16, #tpu.memory_space<vmem>>, %arg6: memref<64x576xbf16, #tpu.memory_space<vmem>>) attributes {dimension_semantics = [#tpu.dimension_semantics<parallel>], iteration_bounds = array<i64: 2>, scalar_prefetch = 0 : i64, scratch_operands = 2 : i64, tpu.core_type = #tpu.core_type<tc>, window_params = [{transform_indices = @transform_0, window_bounds = array<i64: 1, 64, 64>}, {pipeline_mode = #tpu.pipeline_mode<synchronous>, transform_indices = @transform_1, window_bounds = array<i64: 576, 64>}, {transform_indices = @transform_2, window_bounds = array<i64: 1, 64, 64>}, {transform_indices = @transform_3, window_bounds = array<i64: 1, 8, 64>}]} {
    %cst = arith.constant 0.000000e+00 : bf16
    %0 = vector.broadcast %cst : bf16 to vector<16x64xbf16>
    %c0 = arith.constant 0 : index
    %c0_0 = arith.constant 0 : index
    %1 = vector.load %arg5[%c0, %c0_0] : memref<96x64xbf16, #tpu.memory_space<vmem>>, vector<16x64xbf16>
    tpu.vector_store %arg5[%c0, %c0_0], %0 {strides = array<i32>} : memref<96x64xbf16, #tpu.memory_space<vmem>>, vector<16x64xbf16>,
    %cst_1 = arith.constant 0.000000e+00 : bf16
    %2 = vector.broadcast %cst_1 : bf16 to vector<16x64xbf16>
    %c80 = arith.constant 80 : index
    %c0_2 = arith.constant 0 : index
    %3 = vector.load %arg5[%c80, %c0_2] : memref<96x64xbf16, #tpu.memory_space<vmem>>, vector<16x64xbf16>
    tpu.vector_store %arg5[%c80, %c0_2], %2 {strides = array<i32>} : memref<96x64xbf16, #tpu.memory_space<vmem>>, vector<16x64xbf16>,
    %4 = tpu.iota {dimensions = array<i32: 0>} : vector<64x1xi32>
    %c8_i32 = arith.constant 8 : i32
    %c0_i32 = arith.constant 0 : i32
    %5 = arith.cmpi eq, %c8_i32, %c0_i32 : i32
    %c1_i32 = arith.constant 1 : i32
    %6 = arith.select %5, %c1_i32, %c8_i32 : i32
    %7 = vector.broadcast %6 : i32 to vector<64x1xi32>
    %8 = arith.remsi %4, %7 : vector<64x1xi32>
    %c0_i32_3 = arith.constant 0 : i32
    %9 = vector.broadcast %c0_i32_3 : i32 to vector<64x1xi32>
    %10 = arith.cmpi ne, %8, %9 : vector<64x1xi32>
    %c0_i32_4 = arith.constant 0 : i32
    %11 = vector.broadcast %c0_i32_4 : i32 to vector<64x1xi32>
    %12 = arith.cmpi slt, %8, %11 : vector<64x1xi32>
    %c0_i32_5 = arith.constant 0 : i32
    %13 = arith.cmpi slt, %6, %c0_i32_5 : i32
    %14 = vector.broadcast %13 : i1 to vector<64x1xi1>
    %15 = vector.broadcast %14 : vector<64x1xi1> to vector<64x1xi1>
    %16 = arith.xori %12, %15 : vector<64x1xi1>
    %17 = arith.andi %16, %10 : vector<64x1xi1>
    %18 = vector.broadcast %6 : i32 to vector<64x1xi32>
    %19 = arith.addi %8, %18 : vector<64x1xi32>
    %20 = arith.select %17, %19, %8 : vector<64x1xi1>, vector<64x1xi32>
    %c0_i32_6 = arith.constant 0 : i32
    %21 = vector.broadcast %c0_i32_6 : i32 to vector<64x1xi32>
    %22 = arith.cmpi sgt, %20, %21 : vector<64x1xi32>
    %c7_i32 = arith.constant 7 : i32
    %23 = vector.broadcast %c7_i32 : i32 to vector<64x1xi32>
    %24 = arith.cmpi slt, %20, %23 : vector<64x1xi32>
    %c0_7 = arith.constant 0 : index
    %c0_8 = arith.constant 0 : index
    %c0_9 = arith.constant 0 : index
    %25 = vector.load %arg1[%c0_7, %c0_8, %c0_9] : memref<1x64x64xf32, #tpu.memory_space<vmem>>, vector<1x64x64xf32>
    %26 = vector.shape_cast %25 : vector<1x64x64xf32> to vector<64x64xf32>
    %27 = arith.truncf %26 : vector<64x64xf32> to vector<64x64xbf16>
    %c16 = arith.constant 16 : index
    %c0_10 = arith.constant 0 : index
    %28 = vector.load %arg5[%c16, %c0_10] : memref<96x64xbf16, #tpu.memory_space<vmem>>, vector<64x64xbf16>
    tpu.vector_store %arg5[%c16, %c0_10], %27 {strides = array<i32>} : memref<96x64xbf16, #tpu.memory_space<vmem>>, vector<64x64xbf16>,
    %c7 = arith.constant 7 : index
    %c0_11 = arith.constant 0 : index
    %29 = vector.load %arg5[%c7, %c0_11] : memref<96x64xbf16, #tpu.memory_space<vmem>>, vector<64x64xbf16>
    %cst_12 = arith.constant 0.000000e+00 : bf16
    %30 = vector.broadcast %cst_12 : bf16 to vector<64x64xbf16>
    %31 = vector.shape_cast %22 : vector<64x1xi1> to vector<64x1xi1>
    %32 = vector.broadcast %31 : vector<64x1xi1> to vector<64x64xi1>
    %33 = arith.select %32, %29, %30 : vector<64x64xi1>, vector<64x64xbf16>
    %c8 = arith.constant 8 : index
    %c0_13 = arith.constant 0 : index
    %34 = vector.load %arg5[%c8, %c0_13] : memref<96x64xbf16, #tpu.memory_space<vmem>>, vector<64x64xbf16>
    %35 = tpu.concatenate %33, %34 in 1 : vector<64x64xbf16>, vector<64x64xbf16> -> vector<64x128xbf16>
    %c0_14 = arith.constant 0 : index
    %c0_15 = arith.constant 0 : index
    %36 = vector.load %arg6[%c0_14, %c0_15] : memref<64x576xbf16, #tpu.memory_space<vmem>>, vector<64x128xbf16>
    tpu.vector_store %arg6[%c0_14, %c0_15], %35 {strides = array<i32>} : memref<64x576xbf16, #tpu.memory_space<vmem>>, vector<64x128xbf16>,
    %c9 = arith.constant 9 : index
    %c0_16 = arith.constant 0 : index
    %37 = vector.load %arg5[%c9, %c0_16] : memref<96x64xbf16, #tpu.memory_space<vmem>>, vector<64x64xbf16>
    %cst_17 = arith.constant 0.000000e+00 : bf16
    %38 = vector.broadcast %cst_17 : bf16 to vector<64x64xbf16>
    %39 = vector.shape_cast %24 : vector<64x1xi1> to vector<64x1xi1>
    %40 = vector.broadcast %39 : vector<64x1xi1> to vector<64x64xi1>
    %41 = arith.select %40, %37, %38 : vector<64x64xi1>, vector<64x64xbf16>
    %c15 = arith.constant 15 : index
    %c0_18 = arith.constant 0 : index
    %42 = vector.load %arg5[%c15, %c0_18] : memref<96x64xbf16, #tpu.memory_space<vmem>>, vector<64x64xbf16>
    %cst_19 = arith.constant 0.000000e+00 : bf16
    %43 = vector.broadcast %cst_19 : bf16 to vector<64x64xbf16>
    %44 = vector.shape_cast %22 : vector<64x1xi1> to vector<64x1xi1>
    %45 = vector.broadcast %44 : vector<64x1xi1> to vector<64x64xi1>
    %46 = arith.select %45, %42, %43 : vector<64x64xi1>, vector<64x64xbf16>
    %47 = tpu.concatenate %41, %46 in 1 : vector<64x64xbf16>, vector<64x64xbf16> -> vector<64x128xbf16>
    %c0_20 = arith.constant 0 : index
    %c128 = arith.constant 128 : index
    %48 = vector.load %arg6[%c0_20, %c128] : memref<64x576xbf16, #tpu.memory_space<vmem>>, vector<64x128xbf16>
    tpu.vector_store %arg6[%c0_20, %c128], %47 {strides = array<i32>} : memref<64x576xbf16, #tpu.memory_space<vmem>>, vector<64x128xbf16>,
    %c16_21 = arith.constant 16 : index
    %c0_22 = arith.constant 0 : index
    %49 = vector.load %arg5[%c16_21, %c0_22] : memref<96x64xbf16, #tpu.memory_space<vmem>>, vector<64x64xbf16>
    %c17 = arith.constant 17 : index
    %c0_23 = arith.constant 0 : index
    %50 = vector.load %arg5[%c17, %c0_23] : memref<96x64xbf16, #tpu.memory_space<vmem>>, vector<64x64xbf16>
    %cst_24 = arith.constant 0.000000e+00 : bf16
    %51 = vector.broadcast %cst_24 : bf16 to vector<64x64xbf16>
    %52 = vector.shape_cast %24 : vector<64x1xi1> to vector<64x1xi1>
    %53 = vector.broadcast %52 : vector<64x1xi1> to vector<64x64xi1>
    %54 = arith.select %53, %50, %51 : vector<64x64xi1>, vector<64x64xbf16>
    %55 = tpu.concatenate %49, %54 in 1 : vector<64x64xbf16>, vector<64x64xbf16> -> vector<64x128xbf16>
    %c0_25 = arith.constant 0 : index
    %c256 = arith.constant 256 : index
    %56 = vector.load %arg6[%c0_25, %c256] : memref<64x576xbf16, #tpu.memory_space<vmem>>, vector<64x128xbf16>
    tpu.vector_store %arg6[%c0_25, %c256], %55 {strides = array<i32>} : memref<64x576xbf16, #tpu.memory_space<vmem>>, vector<64x128xbf16>,
    %c23 = arith.constant 23 : index
    %c0_26 = arith.constant 0 : index
    %57 = vector.load %arg5[%c23, %c0_26] : memref<96x64xbf16, #tpu.memory_space<vmem>>, vector<64x64xbf16>
    %cst_27 = arith.constant 0.000000e+00 : bf16
    %58 = vector.broadcast %cst_27 : bf16 to vector<64x64xbf16>
    %59 = vector.shape_cast %22 : vector<64x1xi1> to vector<64x1xi1>
    %60 = vector.broadcast %59 : vector<64x1xi1> to vector<64x64xi1>
    %61 = arith.select %60, %57, %58 : vector<64x64xi1>, vector<64x64xbf16>
    %c24 = arith.constant 24 : index
    %c0_28 = arith.constant 0 : index
    %62 = vector.load %arg5[%c24, %c0_28] : memref<96x64xbf16, #tpu.memory_space<vmem>>, vector<64x64xbf16>
    %63 = tpu.concatenate %61, %62 in 1 : vector<64x64xbf16>, vector<64x64xbf16> -> vector<64x128xbf16>
    %c0_29 = arith.constant 0 : index
    %c384 = arith.constant 384 : index
    %64 = vector.load %arg6[%c0_29, %c384] : memref<64x576xbf16, #tpu.memory_space<vmem>>, vector<64x128xbf16>
    tpu.vector_store %arg6[%c0_29, %c384], %63 {strides = array<i32>} : memref<64x576xbf16, #tpu.memory_space<vmem>>, vector<64x128xbf16>,
    %c25 = arith.constant 25 : index
    %c0_30 = arith.constant 0 : index
    %65 = vector.load %arg5[%c25, %c0_30] : memref<96x64xbf16, #tpu.memory_space<vmem>>, vector<64x64xbf16>
    %cst_31 = arith.constant 0.000000e+00 : bf16
    %66 = vector.broadcast %cst_31 : bf16 to vector<64x64xbf16>
    %67 = vector.shape_cast %24 : vector<64x1xi1> to vector<64x1xi1>
    %68 = vector.broadcast %67 : vector<64x1xi1> to vector<64x64xi1>
    %69 = arith.select %68, %65, %66 : vector<64x64xi1>, vector<64x64xbf16>
    %c0_32 = arith.constant 0 : index
    %c512 = arith.constant 512 : index
    %70 = vector.load %arg6[%c0_32, %c512] : memref<64x576xbf16, #tpu.memory_space<vmem>>, vector<64x64xbf16>
    tpu.vector_store %arg6[%c0_32, %c512], %69 {strides = array<i32>} : memref<64x576xbf16, #tpu.memory_space<vmem>>, vector<64x64xbf16>,
    %c0_33 = arith.constant 0 : index
    %c0_34 = arith.constant 0 : index
    %71 = vector.load %arg6[%c0_33, %c0_34] : memref<64x576xbf16, #tpu.memory_space<vmem>>, vector<64x576xbf16>
    %c0_35 = arith.constant 0 : index
    %c0_36 = arith.constant 0 : index
    %72 = vector.load %arg2[%c0_35, %c0_36] : memref<576x64xbf16, #tpu.memory_space<vmem>>, vector<576x64xbf16>
    %cst_37 = arith.constant dense<0.000000e+00> : vector<64x64xf32>
    %73 = tpu.matmul %71, %72, %cst_37 {dimension_numbers = #tpu.dot_dimension_numbers<[1], [0], [0], [1], [0, 0, 1, 1], [], []>} : vector<64x576xbf16>, vector<576x64xbf16>, vector<64x64xf32> -> vector<64x64xf32>
    %c0_38 = arith.constant 0 : index
    %c0_39 = arith.constant 0 : index
    %c0_40 = arith.constant 0 : index
    %74 = vector.load %arg3[%c0_38, %c0_39, %c0_40] : memref<1x64x64xf32, #tpu.memory_space<vmem>>, vector<1x64x64xf32>
    %75 = vector.shape_cast %74 : vector<1x64x64xf32> to vector<64x64xf32>
    %76 = vector.shape_cast %73 : vector<64x64xf32> to vector<1x64x64xf32>
    tpu.vector_store %arg3[%c0_38, %c0_39, %c0_40], %76 {strides = array<i32>} : memref<1x64x64xf32, #tpu.memory_space<vmem>>, vector<1x64x64xf32>,
    %cst_41 = arith.constant dense<0.000000e+00> : vector<64xf32>
    %77 = vector.multi_reduction <add>, %73, %cst_41 [0] : vector<64x64xf32> to vector<64xf32>
    %78 = vector.shape_cast %77 : vector<64xf32> to vector<1x64xf32>
    %79 = arith.mulf %73, %73 : vector<64x64xf32>
    %cst_42 = arith.constant dense<0.000000e+00> : vector<64xf32>
    %80 = vector.multi_reduction <add>, %79, %cst_42 [0] : vector<64x64xf32> to vector<64xf32>
    %81 = vector.shape_cast %80 : vector<64xf32> to vector<1x64xf32>
    %cst_43 = arith.constant 0.000000e+00 : f32
    %82 = vector.broadcast %cst_43 : f32 to vector<6x64xf32>
    %83 = tpu.concatenate %78, %81, %82 in 0 : vector<1x64xf32>, vector<1x64xf32>, vector<6x64xf32> -> vector<8x64xf32>
    %c0_44 = arith.constant 0 : index
    %c0_45 = arith.constant 0 : index
    %c0_46 = arith.constant 0 : index
    %84 = vector.load %arg4[%c0_44, %c0_45, %c0_46] : memref<1x8x64xf32, #tpu.memory_space<vmem>>, vector<1x8x64xf32>
    %85 = vector.shape_cast %84 : vector<1x8x64xf32> to vector<8x64xf32>
    %86 = vector.shape_cast %83 : vector<8x64xf32> to vector<1x8x64xf32>
    tpu.vector_store %arg4[%c0_44, %c0_45, %c0_46], %86 {strides = array<i32>} : memref<1x8x64xf32, #tpu.memory_space<vmem>>, vector<1x8x64xf32>,
    return
  }
  func.func @transform_0(%arg0: i32) -> (i32, i32, i32) {
    %c0_i32 = arith.constant 0 : i32
    %c0_i32_0 = arith.constant 0 : i32
    %c0_i32_1 = arith.constant 0 : i32
    return %arg0, %c0_i32, %c0_i32_0 : i32, i32, i32
  }
  func.func @transform_1(%arg0: i32) -> (i32, i32) {
    %c0_i32 = arith.constant 0 : i32
    %c0_i32_0 = arith.constant 0 : i32
    %c0_i32_1 = arith.constant 0 : i32
    return %c0_i32, %c0_i32_0 : i32, i32
  }
  func.func @transform_2(%arg0: i32) -> (i32, i32, i32) {
    %c0_i32 = arith.constant 0 : i32
    %c0_i32_0 = arith.constant 0 : i32
    %c0_i32_1 = arith.constant 0 : i32
    return %arg0, %c0_i32, %c0_i32_0 : i32, i32, i32
  }
  func.func @transform_3(%arg0: i32) -> (i32, i32, i32) {
    %c0_i32 = arith.constant 0 : i32
    %c0_i32_0 = arith.constant 0 : i32
    %c0_i32_1 = arith.constant 0 : i32
    return %arg0, %c0_i32, %c0_i32_0 : i32, i32, i32
  }
}

module attributes {stable_mosaic.version = 11 : i64} {
  func.func @_bn_residual_kernel(%arg0: i32, %arg1: memref<1x64x64xf32, #tpu.memory_space<vmem>>, %arg2: memref<1x64x64xf32, #tpu.memory_space<vmem>>, %arg3: memref<1x64xf32, #tpu.memory_space<vmem>>, %arg4: memref<1x64xf32, #tpu.memory_space<vmem>>, %arg5: memref<1x64x64xf32, #tpu.memory_space<vmem>>) attributes {dimension_semantics = [#tpu.dimension_semantics<parallel>], iteration_bounds = array<i64: 2>, scalar_prefetch = 0 : i64, scratch_operands = 0 : i64, tpu.core_type = #tpu.core_type<tc>, window_params = [{transform_indices = @transform_0, window_bounds = array<i64: 1, 64, 64>}, {transform_indices = @transform_1, window_bounds = array<i64: 1, 64, 64>}, {pipeline_mode = #tpu.pipeline_mode<synchronous>, transform_indices = @transform_2, window_bounds = array<i64: 1, 64>}, {pipeline_mode = #tpu.pipeline_mode<synchronous>, transform_indices = @transform_3, window_bounds = array<i64: 1, 64>}, {transform_indices = @transform_4, window_bounds = array<i64: 1, 64, 64>}]} {
    %c0 = arith.constant 0 : index
    %c0_0 = arith.constant 0 : index
    %c0_1 = arith.constant 0 : index
    %0 = vector.load %arg1[%c0, %c0_0, %c0_1] : memref<1x64x64xf32, #tpu.memory_space<vmem>>, vector<1x64x64xf32>
    %1 = vector.shape_cast %0 : vector<1x64x64xf32> to vector<64x64xf32>
    %c0_2 = arith.constant 0 : index
    %c0_3 = arith.constant 0 : index
    %c0_4 = arith.constant 0 : index
    %2 = vector.load %arg2[%c0_2, %c0_3, %c0_4] : memref<1x64x64xf32, #tpu.memory_space<vmem>>, vector<1x64x64xf32>
    %3 = vector.shape_cast %2 : vector<1x64x64xf32> to vector<64x64xf32>
    %c0_5 = arith.constant 0 : index
    %c0_6 = arith.constant 0 : index
    %4 = vector.load %arg3[%c0_5, %c0_6] : memref<1x64xf32, #tpu.memory_space<vmem>>, vector<1x64xf32>
    %5 = vector.broadcast %4 : vector<1x64xf32> to vector<64x64xf32>
    %6 = arith.mulf %3, %5 : vector<64x64xf32>
    %7 = arith.addf %1, %6 : vector<64x64xf32>
    %c0_7 = arith.constant 0 : index
    %c0_8 = arith.constant 0 : index
    %8 = vector.load %arg4[%c0_7, %c0_8] : memref<1x64xf32, #tpu.memory_space<vmem>>, vector<1x64xf32>
    %9 = vector.broadcast %8 : vector<1x64xf32> to vector<64x64xf32>
    %10 = arith.addf %7, %9 : vector<64x64xf32>
    %c0_9 = arith.constant 0 : index
    %c0_10 = arith.constant 0 : index
    %c0_11 = arith.constant 0 : index
    %11 = vector.load %arg5[%c0_9, %c0_10, %c0_11] : memref<1x64x64xf32, #tpu.memory_space<vmem>>, vector<1x64x64xf32>
    %12 = vector.shape_cast %11 : vector<1x64x64xf32> to vector<64x64xf32>
    %13 = vector.shape_cast %10 : vector<64x64xf32> to vector<1x64x64xf32>
    tpu.vector_store %arg5[%c0_9, %c0_10, %c0_11], %13 {strides = array<i32>} : memref<1x64x64xf32, #tpu.memory_space<vmem>>, vector<1x64x64xf32>,
    return
  }
  func.func @transform_0(%arg0: i32) -> (i32, i32, i32) {
    %c0_i32 = arith.constant 0 : i32
    %c0_i32_0 = arith.constant 0 : i32
    %c0_i32_1 = arith.constant 0 : i32
    return %arg0, %c0_i32, %c0_i32_0 : i32, i32, i32
  }
  func.func @transform_1(%arg0: i32) -> (i32, i32, i32) {
    %c0_i32 = arith.constant 0 : i32
    %c0_i32_0 = arith.constant 0 : i32
    %c0_i32_1 = arith.constant 0 : i32
    return %arg0, %c0_i32, %c0_i32_0 : i32, i32, i32
  }
  func.func @transform_2(%arg0: i32) -> (i32, i32) {
    %c0_i32 = arith.constant 0 : i32
    %c0_i32_0 = arith.constant 0 : i32
    %c0_i32_1 = arith.constant 0 : i32
    return %c0_i32, %c0_i32_0 : i32, i32
  }
  func.func @transform_3(%arg0: i32) -> (i32, i32) {
    %c0_i32 = arith.constant 0 : i32
    %c0_i32_0 = arith.constant 0 : i32
    %c0_i32_1 = arith.constant 0 : i32
    return %c0_i32, %c0_i32_0 : i32, i32
  }
  func.func @transform_4(%arg0: i32) -> (i32, i32, i32) {
    %c0_i32 = arith.constant 0 : i32
    %c0_i32_0 = arith.constant 0 : i32
    %c0_i32_1 = arith.constant 0 : i32
    return %arg0, %c0_i32, %c0_i32_0 : i32, i32, i32
  }
}

module attributes {stable_mosaic.version = 11 : i64} {
  func.func @_bn_prelu_conv_stats_kernel(%arg0: i32, %arg1: memref<1x64x64xf32, #tpu.memory_space<vmem>>, %arg2: memref<1x64xf32, #tpu.memory_space<vmem>>, %arg3: memref<1x64xf32, #tpu.memory_space<vmem>>, %arg4: memref<1x64xf32, #tpu.memory_space<vmem>>, %arg5: memref<576x64xbf16, #tpu.memory_space<vmem>>, %arg6: memref<1x64x64xf32, #tpu.memory_space<vmem>>, %arg7: memref<1x8x64xf32, #tpu.memory_space<vmem>>, %arg8: memref<96x64xbf16, #tpu.memory_space<vmem>>, %arg9: memref<64x576xbf16, #tpu.memory_space<vmem>>) attributes {dimension_semantics = [#tpu.dimension_semantics<parallel>], iteration_bounds = array<i64: 2>, scalar_prefetch = 0 : i64, scratch_operands = 2 : i64, tpu.core_type = #tpu.core_type<tc>, window_params = [{transform_indices = @transform_0, window_bounds = array<i64: 1, 64, 64>}, {pipeline_mode = #tpu.pipeline_mode<synchronous>, transform_indices = @transform_1, window_bounds = array<i64: 1, 64>}, {pipeline_mode = #tpu.pipeline_mode<synchronous>, transform_indices = @transform_2, window_bounds = array<i64: 1, 64>}, {pipeline_mode = #tpu.pipeline_mode<synchronous>, transform_indices = @transform_3, window_bounds = array<i64: 1, 64>}, {pipeline_mode = #tpu.pipeline_mode<synchronous>, transform_indices = @transform_4, window_bounds = array<i64: 576, 64>}, {transform_indices = @transform_5, window_bounds = array<i64: 1, 64, 64>}, {transform_indices = @transform_6, window_bounds = array<i64: 1, 8, 64>}]} {
    %cst = arith.constant 0.000000e+00 : bf16
    %0 = vector.broadcast %cst : bf16 to vector<16x64xbf16>
    %c0 = arith.constant 0 : index
    %c0_0 = arith.constant 0 : index
    %1 = vector.load %arg8[%c0, %c0_0] : memref<96x64xbf16, #tpu.memory_space<vmem>>, vector<16x64xbf16>
    tpu.vector_store %arg8[%c0, %c0_0], %0 {strides = array<i32>} : memref<96x64xbf16, #tpu.memory_space<vmem>>, vector<16x64xbf16>,
    %cst_1 = arith.constant 0.000000e+00 : bf16
    %2 = vector.broadcast %cst_1 : bf16 to vector<16x64xbf16>
    %c80 = arith.constant 80 : index
    %c0_2 = arith.constant 0 : index
    %3 = vector.load %arg8[%c80, %c0_2] : memref<96x64xbf16, #tpu.memory_space<vmem>>, vector<16x64xbf16>
    tpu.vector_store %arg8[%c80, %c0_2], %2 {strides = array<i32>} : memref<96x64xbf16, #tpu.memory_space<vmem>>, vector<16x64xbf16>,
    %4 = tpu.iota {dimensions = array<i32: 0>} : vector<64x1xi32>
    %c8_i32 = arith.constant 8 : i32
    %c0_i32 = arith.constant 0 : i32
    %5 = arith.cmpi eq, %c8_i32, %c0_i32 : i32
    %c1_i32 = arith.constant 1 : i32
    %6 = arith.select %5, %c1_i32, %c8_i32 : i32
    %7 = vector.broadcast %6 : i32 to vector<64x1xi32>
    %8 = arith.remsi %4, %7 : vector<64x1xi32>
    %c0_i32_3 = arith.constant 0 : i32
    %9 = vector.broadcast %c0_i32_3 : i32 to vector<64x1xi32>
    %10 = arith.cmpi ne, %8, %9 : vector<64x1xi32>
    %c0_i32_4 = arith.constant 0 : i32
    %11 = vector.broadcast %c0_i32_4 : i32 to vector<64x1xi32>
    %12 = arith.cmpi slt, %8, %11 : vector<64x1xi32>
    %c0_i32_5 = arith.constant 0 : i32
    %13 = arith.cmpi slt, %6, %c0_i32_5 : i32
    %14 = vector.broadcast %13 : i1 to vector<64x1xi1>
    %15 = vector.broadcast %14 : vector<64x1xi1> to vector<64x1xi1>
    %16 = arith.xori %12, %15 : vector<64x1xi1>
    %17 = arith.andi %16, %10 : vector<64x1xi1>
    %18 = vector.broadcast %6 : i32 to vector<64x1xi32>
    %19 = arith.addi %8, %18 : vector<64x1xi32>
    %20 = arith.select %17, %19, %8 : vector<64x1xi1>, vector<64x1xi32>
    %c0_i32_6 = arith.constant 0 : i32
    %21 = vector.broadcast %c0_i32_6 : i32 to vector<64x1xi32>
    %22 = arith.cmpi sgt, %20, %21 : vector<64x1xi32>
    %c7_i32 = arith.constant 7 : i32
    %23 = vector.broadcast %c7_i32 : i32 to vector<64x1xi32>
    %24 = arith.cmpi slt, %20, %23 : vector<64x1xi32>
    %c0_7 = arith.constant 0 : index
    %c0_8 = arith.constant 0 : index
    %c0_9 = arith.constant 0 : index
    %25 = vector.load %arg1[%c0_7, %c0_8, %c0_9] : memref<1x64x64xf32, #tpu.memory_space<vmem>>, vector<1x64x64xf32>
    %26 = vector.shape_cast %25 : vector<1x64x64xf32> to vector<64x64xf32>
    %c0_10 = arith.constant 0 : index
    %c0_11 = arith.constant 0 : index
    %27 = vector.load %arg2[%c0_10, %c0_11] : memref<1x64xf32, #tpu.memory_space<vmem>>, vector<1x64xf32>
    %28 = vector.broadcast %27 : vector<1x64xf32> to vector<64x64xf32>
    %29 = arith.mulf %26, %28 : vector<64x64xf32>
    %c0_12 = arith.constant 0 : index
    %c0_13 = arith.constant 0 : index
    %30 = vector.load %arg3[%c0_12, %c0_13] : memref<1x64xf32, #tpu.memory_space<vmem>>, vector<1x64xf32>
    %31 = vector.broadcast %30 : vector<1x64xf32> to vector<64x64xf32>
    %32 = arith.addf %29, %31 : vector<64x64xf32>
    %cst_14 = arith.constant 0.000000e+00 : f32
    %33 = vector.broadcast %cst_14 : f32 to vector<64x64xf32>
    %34 = arith.cmpf oge, %32, %33 : vector<64x64xf32>
    %c0_15 = arith.constant 0 : index
    %c0_16 = arith.constant 0 : index
    %35 = vector.load %arg4[%c0_15, %c0_16] : memref<1x64xf32, #tpu.memory_space<vmem>>, vector<1x64xf32>
    %36 = vector.broadcast %35 : vector<1x64xf32> to vector<64x64xf32>
    %37 = arith.mulf %32, %36 : vector<64x64xf32>
    %38 = arith.select %34, %32, %37 : vector<64x64xi1>, vector<64x64xf32>
    %39 = arith.truncf %38 : vector<64x64xf32> to vector<64x64xbf16>
    %c16 = arith.constant 16 : index
    %c0_17 = arith.constant 0 : index
    %40 = vector.load %arg8[%c16, %c0_17] : memref<96x64xbf16, #tpu.memory_space<vmem>>, vector<64x64xbf16>
    tpu.vector_store %arg8[%c16, %c0_17], %39 {strides = array<i32>} : memref<96x64xbf16, #tpu.memory_space<vmem>>, vector<64x64xbf16>,
    %c7 = arith.constant 7 : index
    %c0_18 = arith.constant 0 : index
    %41 = vector.load %arg8[%c7, %c0_18] : memref<96x64xbf16, #tpu.memory_space<vmem>>, vector<64x64xbf16>
    %cst_19 = arith.constant 0.000000e+00 : bf16
    %42 = vector.broadcast %cst_19 : bf16 to vector<64x64xbf16>
    %43 = vector.shape_cast %22 : vector<64x1xi1> to vector<64x1xi1>
    %44 = vector.broadcast %43 : vector<64x1xi1> to vector<64x64xi1>
    %45 = arith.select %44, %41, %42 : vector<64x64xi1>, vector<64x64xbf16>
    %c8 = arith.constant 8 : index
    %c0_20 = arith.constant 0 : index
    %46 = vector.load %arg8[%c8, %c0_20] : memref<96x64xbf16, #tpu.memory_space<vmem>>, vector<64x64xbf16>
    %47 = tpu.concatenate %45, %46 in 1 : vector<64x64xbf16>, vector<64x64xbf16> -> vector<64x128xbf16>
    %c0_21 = arith.constant 0 : index
    %c0_22 = arith.constant 0 : index
    %48 = vector.load %arg9[%c0_21, %c0_22] : memref<64x576xbf16, #tpu.memory_space<vmem>>, vector<64x128xbf16>
    tpu.vector_store %arg9[%c0_21, %c0_22], %47 {strides = array<i32>} : memref<64x576xbf16, #tpu.memory_space<vmem>>, vector<64x128xbf16>,
    %c9 = arith.constant 9 : index
    %c0_23 = arith.constant 0 : index
    %49 = vector.load %arg8[%c9, %c0_23] : memref<96x64xbf16, #tpu.memory_space<vmem>>, vector<64x64xbf16>
    %cst_24 = arith.constant 0.000000e+00 : bf16
    %50 = vector.broadcast %cst_24 : bf16 to vector<64x64xbf16>
    %51 = vector.shape_cast %24 : vector<64x1xi1> to vector<64x1xi1>
    %52 = vector.broadcast %51 : vector<64x1xi1> to vector<64x64xi1>
    %53 = arith.select %52, %49, %50 : vector<64x64xi1>, vector<64x64xbf16>
    %c15 = arith.constant 15 : index
    %c0_25 = arith.constant 0 : index
    %54 = vector.load %arg8[%c15, %c0_25] : memref<96x64xbf16, #tpu.memory_space<vmem>>, vector<64x64xbf16>
    %cst_26 = arith.constant 0.000000e+00 : bf16
    %55 = vector.broadcast %cst_26 : bf16 to vector<64x64xbf16>
    %56 = vector.shape_cast %22 : vector<64x1xi1> to vector<64x1xi1>
    %57 = vector.broadcast %56 : vector<64x1xi1> to vector<64x64xi1>
    %58 = arith.select %57, %54, %55 : vector<64x64xi1>, vector<64x64xbf16>
    %59 = tpu.concatenate %53, %58 in 1 : vector<64x64xbf16>, vector<64x64xbf16> -> vector<64x128xbf16>
    %c0_27 = arith.constant 0 : index
    %c128 = arith.constant 128 : index
    %60 = vector.load %arg9[%c0_27, %c128] : memref<64x576xbf16, #tpu.memory_space<vmem>>, vector<64x128xbf16>
    tpu.vector_store %arg9[%c0_27, %c128], %59 {strides = array<i32>} : memref<64x576xbf16, #tpu.memory_space<vmem>>, vector<64x128xbf16>,
    %c16_28 = arith.constant 16 : index
    %c0_29 = arith.constant 0 : index
    %61 = vector.load %arg8[%c16_28, %c0_29] : memref<96x64xbf16, #tpu.memory_space<vmem>>, vector<64x64xbf16>
    %c17 = arith.constant 17 : index
    %c0_30 = arith.constant 0 : index
    %62 = vector.load %arg8[%c17, %c0_30] : memref<96x64xbf16, #tpu.memory_space<vmem>>, vector<64x64xbf16>
    %cst_31 = arith.constant 0.000000e+00 : bf16
    %63 = vector.broadcast %cst_31 : bf16 to vector<64x64xbf16>
    %64 = vector.shape_cast %24 : vector<64x1xi1> to vector<64x1xi1>
    %65 = vector.broadcast %64 : vector<64x1xi1> to vector<64x64xi1>
    %66 = arith.select %65, %62, %63 : vector<64x64xi1>, vector<64x64xbf16>
    %67 = tpu.concatenate %61, %66 in 1 : vector<64x64xbf16>, vector<64x64xbf16> -> vector<64x128xbf16>
    %c0_32 = arith.constant 0 : index
    %c256 = arith.constant 256 : index
    %68 = vector.load %arg9[%c0_32, %c256] : memref<64x576xbf16, #tpu.memory_space<vmem>>, vector<64x128xbf16>
    tpu.vector_store %arg9[%c0_32, %c256], %67 {strides = array<i32>} : memref<64x576xbf16, #tpu.memory_space<vmem>>, vector<64x128xbf16>,
    %c23 = arith.constant 23 : index
    %c0_33 = arith.constant 0 : index
    %69 = vector.load %arg8[%c23, %c0_33] : memref<96x64xbf16, #tpu.memory_space<vmem>>, vector<64x64xbf16>
    %cst_34 = arith.constant 0.000000e+00 : bf16
    %70 = vector.broadcast %cst_34 : bf16 to vector<64x64xbf16>
    %71 = vector.shape_cast %22 : vector<64x1xi1> to vector<64x1xi1>
    %72 = vector.broadcast %71 : vector<64x1xi1> to vector<64x64xi1>
    %73 = arith.select %72, %69, %70 : vector<64x64xi1>, vector<64x64xbf16>
    %c24 = arith.constant 24 : index
    %c0_35 = arith.constant 0 : index
    %74 = vector.load %arg8[%c24, %c0_35] : memref<96x64xbf16, #tpu.memory_space<vmem>>, vector<64x64xbf16>
    %75 = tpu.concatenate %73, %74 in 1 : vector<64x64xbf16>, vector<64x64xbf16> -> vector<64x128xbf16>
    %c0_36 = arith.constant 0 : index
    %c384 = arith.constant 384 : index
    %76 = vector.load %arg9[%c0_36, %c384] : memref<64x576xbf16, #tpu.memory_space<vmem>>, vector<64x128xbf16>
    tpu.vector_store %arg9[%c0_36, %c384], %75 {strides = array<i32>} : memref<64x576xbf16, #tpu.memory_space<vmem>>, vector<64x128xbf16>,
    %c25 = arith.constant 25 : index
    %c0_37 = arith.constant 0 : index
    %77 = vector.load %arg8[%c25, %c0_37] : memref<96x64xbf16, #tpu.memory_space<vmem>>, vector<64x64xbf16>
    %cst_38 = arith.constant 0.000000e+00 : bf16
    %78 = vector.broadcast %cst_38 : bf16 to vector<64x64xbf16>
    %79 = vector.shape_cast %24 : vector<64x1xi1> to vector<64x1xi1>
    %80 = vector.broadcast %79 : vector<64x1xi1> to vector<64x64xi1>
    %81 = arith.select %80, %77, %78 : vector<64x64xi1>, vector<64x64xbf16>
    %c0_39 = arith.constant 0 : index
    %c512 = arith.constant 512 : index
    %82 = vector.load %arg9[%c0_39, %c512] : memref<64x576xbf16, #tpu.memory_space<vmem>>, vector<64x64xbf16>
    tpu.vector_store %arg9[%c0_39, %c512], %81 {strides = array<i32>} : memref<64x576xbf16, #tpu.memory_space<vmem>>, vector<64x64xbf16>,
    %c0_40 = arith.constant 0 : index
    %c0_41 = arith.constant 0 : index
    %83 = vector.load %arg9[%c0_40, %c0_41] : memref<64x576xbf16, #tpu.memory_space<vmem>>, vector<64x576xbf16>
    %c0_42 = arith.constant 0 : index
    %c0_43 = arith.constant 0 : index
    %84 = vector.load %arg5[%c0_42, %c0_43] : memref<576x64xbf16, #tpu.memory_space<vmem>>, vector<576x64xbf16>
    %cst_44 = arith.constant dense<0.000000e+00> : vector<64x64xf32>
    %85 = tpu.matmul %83, %84, %cst_44 {dimension_numbers = #tpu.dot_dimension_numbers<[1], [0], [0], [1], [0, 0, 1, 1], [], []>} : vector<64x576xbf16>, vector<576x64xbf16>, vector<64x64xf32> -> vector<64x64xf32>
    %c0_45 = arith.constant 0 : index
    %c0_46 = arith.constant 0 : index
    %c0_47 = arith.constant 0 : index
    %86 = vector.load %arg6[%c0_45, %c0_46, %c0_47] : memref<1x64x64xf32, #tpu.memory_space<vmem>>, vector<1x64x64xf32>
    %87 = vector.shape_cast %86 : vector<1x64x64xf32> to vector<64x64xf32>
    %88 = vector.shape_cast %85 : vector<64x64xf32> to vector<1x64x64xf32>
    tpu.vector_store %arg6[%c0_45, %c0_46, %c0_47], %88 {strides = array<i32>} : memref<1x64x64xf32, #tpu.memory_space<vmem>>, vector<1x64x64xf32>,
    %cst_48 = arith.constant dense<0.000000e+00> : vector<64xf32>
    %89 = vector.multi_reduction <add>, %85, %cst_48 [0] : vector<64x64xf32> to vector<64xf32>
    %90 = vector.shape_cast %89 : vector<64xf32> to vector<1x64xf32>
    %91 = arith.mulf %85, %85 : vector<64x64xf32>
    %cst_49 = arith.constant dense<0.000000e+00> : vector<64xf32>
    %92 = vector.multi_reduction <add>, %91, %cst_49 [0] : vector<64x64xf32> to vector<64xf32>
    %93 = vector.shape_cast %92 : vector<64xf32> to vector<1x64xf32>
    %cst_50 = arith.constant 0.000000e+00 : f32
    %94 = vector.broadcast %cst_50 : f32 to vector<6x64xf32>
    %95 = tpu.concatenate %90, %93, %94 in 0 : vector<1x64xf32>, vector<1x64xf32>, vector<6x64xf32> -> vector<8x64xf32>
    %c0_51 = arith.constant 0 : index
    %c0_52 = arith.constant 0 : index
    %c0_53 = arith.constant 0 : index
    %96 = vector.load %arg7[%c0_51, %c0_52, %c0_53] : memref<1x8x64xf32, #tpu.memory_space<vmem>>, vector<1x8x64xf32>
    %97 = vector.shape_cast %96 : vector<1x8x64xf32> to vector<8x64xf32>
    %98 = vector.shape_cast %95 : vector<8x64xf32> to vector<1x8x64xf32>
    tpu.vector_store %arg7[%c0_51, %c0_52, %c0_53], %98 {strides = array<i32>} : memref<1x8x64xf32, #tpu.memory_space<vmem>>, vector<1x8x64xf32>,
    return
  }
  func.func @transform_0(%arg0: i32) -> (i32, i32, i32) {
    %c0_i32 = arith.constant 0 : i32
    %c0_i32_0 = arith.constant 0 : i32
    %c0_i32_1 = arith.constant 0 : i32
    return %arg0, %c0_i32, %c0_i32_0 : i32, i32, i32
  }
  func.func @transform_1(%arg0: i32) -> (i32, i32) {
    %c0_i32 = arith.constant 0 : i32
    %c0_i32_0 = arith.constant 0 : i32
    %c0_i32_1 = arith.constant 0 : i32
    return %c0_i32, %c0_i32_0 : i32, i32
  }
  func.func @transform_2(%arg0: i32) -> (i32, i32) {
    %c0_i32 = arith.constant 0 : i32
    %c0_i32_0 = arith.constant 0 : i32
    %c0_i32_1 = arith.constant 0 : i32
    return %c0_i32, %c0_i32_0 : i32, i32
  }
  func.func @transform_3(%arg0: i32) -> (i32, i32) {
    %c0_i32 = arith.constant 0 : i32
    %c0_i32_0 = arith.constant 0 : i32
    %c0_i32_1 = arith.constant 0 : i32
    return %c0_i32, %c0_i32_0 : i32, i32
  }
  func.func @transform_4(%arg0: i32) -> (i32, i32) {
    %c0_i32 = arith.constant 0 : i32
    %c0_i32_0 = arith.constant 0 : i32
    %c0_i32_1 = arith.constant 0 : i32
    return %c0_i32, %c0_i32_0 : i32, i32
  }
  func.func @transform_5(%arg0: i32) -> (i32, i32, i32) {
    %c0_i32 = arith.constant 0 : i32
    %c0_i32_0 = arith.constant 0 : i32
    %c0_i32_1 = arith.constant 0 : i32
    return %arg0, %c0_i32, %c0_i32_0 : i32, i32, i32
  }
  func.func @transform_6(%arg0: i32) -> (i32, i32, i32) {
    %c0_i32 = arith.constant 0 : i32
    %c0_i32_0 = arith.constant 0 : i32
    %c0_i32_1 = arith.constant 0 : i32
    return %arg0, %c0_i32, %c0_i32_0 : i32, i32, i32
  }
}

</mosaic_0001>

<bundles_post_ra>
// kernel: generator_residual_block.5
= control target key start
LH: loop header
LB: loop body
LE: loop exit
PB: predicated region body
PF: predicated region fallthrough
CT: control target
= control target key end

     0   :  { %9 = vsyncpa [#allocation3], 0  ;;  %s653_s0 = inlined_call_operand.vmem [shape: f32[2,64,64], index: 0, kind: input, shape index: {}]   ;;  %s654_s1 = inlined_call_operand.vmem [shape: f32[2,64,64], index: 1, kind: input, shape index: {}]   ;;  %s655_s2 = inlined_call_operand.vmem [shape: f32[1,64], index: 2, kind: input, shape index: {}]   ;;  %s656_s3 = inlined_call_operand.vmem [shape: f32[1,64], index: 3, kind: input, shape index: {}]   ;;  %s657_s4 = inlined_call_operand.hbm [shape: f32[2,64,64], index: 4, kind: output, shape index: {}]  }
   0x1   :  { %11 = vsyncpa [#allocation3 + $0x1], 0  ;;  %s517_s15 = smov 0   ;;  %s519_s16 = smov 0  }
   0x2   :  { %s521_s17 = smov 0   ;;  %s523_s18 = smov 0  }
   0x3 LB: > { %s538_s19 = sadd.s32 4294967295, %s487_s18   ;;  %s367_s20 = sadd.s32 4294967294, %s487_s18   ;;  %s487_s18 = sphi %s523_s18, %s663_s18   ;;  %s483_s17 = sphi %s521_s17, %s662_s17   ;;  %s479_s16 = sphi %s519_s16, %s661_s16   ;;  %s475_s15 = sphi %s517_s15, %s660_s15  }
   0x4   : > { %s542_s21 = sadd.s32 1, %s487_s18   ;;  %s118_s22 = sadd.s32 1, %s483_s17 }
   0x5   : > { %s115_s23 = ssub.s32 %s487_s18, %s542_s21  ;;  %p128_p0 = scmp.ne.s32.totalorder %s483_s17, %s479_s16 }
   0x6   : > { %p116_p1 = scmp.eq.s32.totalorder %s115_s23, 0  ;;  %p129_p2 = scmp.eq.s32.totalorder %s538_s19, 1 }
   0x7   : > { %p134_p3 = scmp.ne.s32.totalorder %s479_s16, %s475_s15  ;;  %p135_p4 = scmp.eq.s32.totalorder %s367_s20, 1 }
   0x8   : > { %s553_s24 = scalar_select %p116_p1, %s483_s17, %s118_s22  }
   0x9   : > { %p555_p5 = por %p129_p2, %p128_p0  ;;  %p559_p6 = por %p135_p4, %p134_p3 }
   0xa   : > { %p370_p7 = scmp.ge.s32.totalorder %s487_s18, 1  ;;  %p175_p8 = scmp.lt.s32.totalorder %s487_s18, 3 }
   0xc   : > { %p176_p9 = pnand %p370_p7, %p175_p8 }
   0xd   : > { %p206_p10 = scmp.lt.s32.totalorder (!%p176_p9), %s538_s19, 1  ;;  %s203_s28 = sand.u32 (!%p176_p9), 1, %s479_s16  }
   0xe   : > { %179 = sbr.rel (%p176_p9) target bundleno = 49 (0x31), region = 36  ;;  %s586_s14 = sshll.u32 (!%p176_p9), %s203_s28, 6 }
   0xf   : > { %s205_s20 = scalar_lea.vmem (!%p176_p9), [#allocation2], %s586_s14  ;;  %s385_s23 = sshll.u32 (!%p176_p9), %s538_s19, 10 }
  0x10   : > { %s293_s22 = sshll.u32 (!%p176_p9), %s205_s20, 4  ;;  %s613_s30 = scalar_lea.sflag (!%p176_p9), [#allocation3], %s203_s28  ;;  %s600_s22 = int_to_ptr.vmem [resolvable:$true] %s293_s22 }
  0x11   : > { %s427_s5 = scalar_lea.vmem (!%p176_p9), %s600_s22, 1024  ;;  %s489_s6 = smov (!%p176_p9), [#allocation2]  }
  0x12   : > { %p428_p11 = scmp.ne.s32.totalorder (!%p176_p9), %s600_s22, %s427_s5  ;;  %s431_s7 = sshll.u32 (!%p176_p9), %s489_s6, 4  ;;  %s432_s7 = int_to_ptr.vmem [resolvable:$false] %s431_s7 }
  0x13   : > { %s207_s27 = scalar_select %p206_p10, %s538_s19, 1  ;;  %v376_v0 = vld [vmem:[%s655_s2] ss:$0 sm:$0xff]  ;;  %vm270_vm0 = vcmask 523264  }
  0x14   : > { %v377_v3 = vld [vmem:[%s656_s3] ss:$0 sm:$0xff]  ;;  %p429_p12 = pnand %p428_p11, %p555_p5  ;;  %p434_p0 = scmp.lt.s32.totalorder %s600_s22, %s432_s7 }
  0x15   : > { %s383_s29 = sshll.u32 %s207_s27, 6 }
  0x16   : > { %s574_s8 = scalar_lea.vmem %s653_s0, %s383_s29  ;;  %s215_s11 = scalar_lea.vmem %s654_s1, %s383_s29 }
  0x17   : > { %v216_v1 = vld [vmem:[%s574_s8] sm:$0xff]  ;;  %v217_v4 = vld [vmem:[%s574_s8 + $0x8] sm:$0xff]  ;;  %v218_v7 = vld [vmem:[%s574_s8 + $0x10] sm:$0xff]  ;;  %s607_s29 = scalar_lea.hbm %s657_s4, %s385_s23  ;;  %p430_p13 = pneg %p429_p12 }
  0x18   : > { %v224_v2 = vld [vmem:[%s215_s11] sm:$0xff]  ;;  %v225_v6 = vld [vmem:[%s215_s11 + $0x8] sm:$0xff]  ;;  %v226_v8 = vld [vmem:[%s215_s11 + $0x10] sm:$0xff] }
  0x19   : > { %v239_v5 = vmul.f32 %v376_v0, %v224_v2  ;;  %v240_v9 = vmul.f32 %v376_v0, %v225_v6  ;;  %v241_v10 = vmul.f32 %v376_v0, %v226_v8  ;;  %v219_v11 = vld [vmem:[%s574_s8 + $0x18] sm:$0xff]  ;;  %v220_v13 = vld [vmem:[%s574_s8 + $0x20] sm:$0xff]  ;;  %v221_v17 = vld [vmem:[%s574_s8 + $0x28] sm:$0xff] }
  0x1a   : > { %v227_v12 = vld [vmem:[%s215_s11 + $0x18] sm:$0xff]  ;;  %v228_v16 = vld [vmem:[%s215_s11 + $0x20] sm:$0xff]  ;;  %v229_v18 = vld [vmem:[%s215_s11 + $0x28] sm:$0xff] }
  0x1b   : > { %v247_v14 = vadd.f32 %v239_v5, %v216_v1  ;;  %v242_v15 = vmul.f32 %v376_v0, %v227_v12  ;;  %v248_v19 = vadd.f32 %v240_v9, %v217_v4  ;;  %v249_v20 = vadd.f32 %v241_v10, %v218_v7  ;;  %v222_v23 = vld [vmem:[%s574_s8 + $0x30] sm:$0xff]  ;;  %v231_v28 = vld [vmem:[%s215_s11 + $0x38] sm:$0xff] }
  0x1c   : > { %v243_v21 = vmul.f32 %v376_v0, %v228_v16  ;;  %v244_v22 = vmul.f32 %v376_v0, %v229_v18  ;;  %v230_v24 = vld [vmem:[%s215_s11 + $0x30] sm:$0xff]  ;;  %v223_v33 = vld [vmem:[%s574_s8 + $0x38] sm:$0xff]  ;;  %v246_v36 = vmul.f32 %v376_v0, %v231_v28  ;;  %s433_s8 = scalar_lea.vmem %s432_s7, 2048 }
  0x1d   : > { %v262_v25 = vadd.f32 %v377_v3, %v247_v14  ;;  %v250_v26 = vadd.f32 %v242_v15, %v219_v11  ;;  %v245_v27 = vmul.f32 %v376_v0, %v230_v24  ;;  %v263_v29 = vadd.f32 %v377_v3, %v248_v19  ;;  %p435_p1 = scmp.lt.s32.totalorder %s433_s8, %s427_s5 }
  0x1e   : > { %v264_v30 = vadd.f32 %v377_v3, %v249_v20  ;;  %v251_v31 = vadd.f32 %v243_v21, %v220_v13  ;;  %v252_v32 = vadd.f32 %v244_v22, %v221_v17  ;;  %v254_v40 = vadd.f32 %v246_v36, %v223_v33 }
  0x1f   : > { %271 = vst.msk [vmem:[%s205_s20] sm:$0xff] %vm270_vm0, %v262_v25  ;;  %v265_v34 = vadd.f32 %v377_v3, %v250_v26  ;;  %v253_v35 = vadd.f32 %v245_v27, %v222_v23  ;;  %272 = vst.msk [vmem:[%s205_s20 + $0x8] sm:$0xff] %vm270_vm0, %v263_v29  ;;  %p436_p2 = por %p435_p1, %p434_p0 }
  0x20   : > { %273 = vst.msk [vmem:[%s205_s20 + $0x10] sm:$0xff] %vm270_vm0, %v264_v30  ;;  %v266_v37 = vadd.f32 %v377_v3, %v251_v31  ;;  %v267_v38 = vadd.f32 %v377_v3, %v252_v32  ;;  %v269_v41 = vadd.f32 %v377_v3, %v254_v40 }
  0x21   : > { %274 = vst.msk [vmem:[%s205_s20 + $0x18] sm:$0xff] %vm270_vm0, %v265_v34  ;;  %v268_v39 = vadd.f32 %v377_v3, %v253_v35  ;;  %p437_p3 = pnand %p436_p2, %p430_p13 }
  0x22   : > { %275 = vst.msk [vmem:[%s205_s20 + $0x20] sm:$0xff] %vm270_vm0, %v266_v37  ;;  %276 = vst.msk [vmem:[%s205_s20 + $0x28] sm:$0xff] %vm270_vm0, %v267_v38 }
  0x23   : > { %277 = vst.msk [vmem:[%s205_s20 + $0x30] sm:$0xff] %vm270_vm0, %v268_v39  ;;  %278 = vst.msk [vmem:[%s205_s20 + $0x38] sm:$0xff] %vm270_vm0, %v269_v41 }
  0x24   : > { %440 = shalt.err (!%p437_p3)
}
  0x25   : > { %s441_s28 = scalar_lea.hbm %s607_s29, 1024  ;;  %s445_s11 = scalar_lea.hbm %s657_s4, 2048 }
  0x26   : > { %p442_p4 = scmp.ne.s32.totalorder %s607_s29, %s441_s28  ;;  %p446_p9 = scmp.lt.s32.totalorder %s607_s29, %s657_s4 }
  0x27   : > { %p447_p10 = scmp.lt.s32.totalorder %s445_s11, %s441_s28 }
  0x28   : > { %p443_p7 = pnand %p442_p4, %p555_p5 }
  0x29   : > { %p448_p11 = por %p447_p10, %p446_p9 }
  0x2a   : > { %p444_p8 = pneg %p443_p7 }
  0x2c   : > { %p449_p12 = pnand %p448_p11, %p444_p8 }
  0x2e   : > { %452 = shalt.err (!%p449_p12)
}
  0x2f   : > { %s490_s14 = smov 128   ;;  %s491_s20 = smov 8  }
  0x30   : > { %386 = dma.vmem_to_hbm [thread:$0]  (%p555_p5), %s600_s22, 1024, %s607_s29, %s613_s30, %s490_s14, %s490_s14, %s491_s20  }
  0x31 PF: > { %p392_p13 = scmp.ge.s32.totalorder %s487_s18, 2  ;;  %s308_s23 = sand.u32 1, %s475_s15  }
  0x32   : > { %s309_s19 = scalar_lea.sflag [#allocation3], %s308_s23 }
  0x33   : > { %p389_p0 = pnand %p392_p13, %p559_p6 }
  0x35   : > { %p390_p1 = pneg %p389_p0 }
  0x37   : > { %470 = dma.done.wait (%p390_p1), %s309_s19, 1024  }
  0x38   : > { %472 = vsyncadd (%p390_p1), %s309_s19, 4294966272  ;;  %p14_p2 = scmp.ge.s32.totalorder %s542_s21, 4   ;;  %s660_s15 = smov %s479_s16 }
  0x39   : > { %s661_s16 = smov %s483_s17  ;;  %s662_s17 = smov %s553_s24 }
  0x3a   : > { %s663_s18 = smov %s542_s21  ;;  %16 = sbr.rel (!%p14_p2) target bundleno = 3 (0x3), region = 74 }
  0x3f   :  { %314 = vsyncpa [#allocation3], 1 }
  0x40   :  { %316 = vsyncpa [#allocation3 + $0x1], 1 }

// kernel: generator_residual_block.3
= control target key start
LH: loop header
LB: loop body
LE: loop exit
PB: predicated region body
PF: predicated region fallthrough
CT: control target
= control target key end

     0   :  { %s2740_s12 = smov 0   ;;  %s3727_s0 = inlined_call_operand.vmem [shape: f32[2,64,64], index: 0, kind: input, shape index: {}]   ;;  %s3728_s1 = inlined_call_operand.vmem [shape: bf16[576,64], index: 1, kind: input, shape index: {}]   ;;  %s3729_s2 = inlined_call_operand.vmem [shape: f32[2,64,64], index: 2, kind: output, shape index: {0}]   ;;  %s3730_s3 = inlined_call_operand.vmem [shape: f32[2,8,64], index: 3, kind: output, shape index: {1}]  }
   0x1 LB: > { %s2343_s13 = sadd.s32 4294967295, %s2716_s12   ;;  %p2347_p0 = scmp.ge.s32.totalorder %s2716_s12, 1  ;;  %s2716_s12 = sphi %s2740_s12, %s14_s12  }
   0x2   : > { %p140_p1 = scmp.lt.s32.totalorder %s2716_s12, 3 }
   0x4   : > { %p141_p2 = pnand %p2347_p0, %p140_p1 }
   0x6   : > { %144 = sbr.rel (%p141_p2) target bundleno = 479 (0x1df), region = 28 }
   0xb   : > { %p168_p3 = scmp.lt.s32.totalorder %s2343_s13, 1  ;;  %vm3732_vm0 = vcmask 519168   ;;  %v190_v0 = vlaneseq  ;;  %v3738_v1 = vmov 0   ;;  %v2637_v2 = vld [vmem:[%s3728_s1 + $0x78] sm:$0xff]   ;;  %vm3734_vm2 = vsmask.f32 3328 }
   0xc   : > { %187 = vst.msk [vmem:[#allocation2 + $0x4] sm:$0xf] %vm3732_vm0, %v3738_v1  ;;  %186 = vst.msk [vmem:[#allocation2] sm:$0xf] %vm3732_vm0, %v3738_v1  ;;  %2507 = vmatprep.subr.bf16.mxu0 %v2637_v2  ;;  %v2638_v8 = vld [vmem:[%s3728_s1 + $0x38] sm:$0xff]   ;;  %v2639_v50 = vld [vmem:[%s3728_s1 + $0x70] sm:$0xff]  }
   0xd   : > { %188 = vst.msk [vmem:[#allocation2 + $0x28] sm:$0xf] %vm3732_vm0, %v3738_v1  ;;  %189 = vst.msk [vmem:[#allocation2 + $0x2c] sm:$0xf] %vm3732_vm0, %v3738_v1  ;;  %s3833_s13 = smov (!%p168_p3, %s2343_s13), 1  ;;  %v2761_v3 = vshrl.u32 %v190_v0, 7  ;;  %2508 = vmatpush3.bf16.msra.mxu0 %v2638_v8 }
   0xe   : > { %s2497_s16 = sshll.u32 %s3833_s13, 6  ;;  %vm401_vm7 = vsmask.f32 7440  ;;  %v2640_v55 = vld [vmem:[%s3728_s1 + $0x30] sm:$0xff]   ;;  %2509 = vmatprep.subr.bf16.mxu0 %v2639_v50  ;;  %vm3733_vm13 = vcmask 1044480   ;;  %s2719_s26 = smov 64  }
   0xf   : > { %v2765_v4 = vadd.s32 8, %v2761_v3  ;;  %v2768_v5 = vadd.s32 16, %v2761_v3  ;;  %v2771_v6 = vadd.s32 24, %v2761_v3  ;;  %v203_v7 = vand.u32 7, %v2761_v3  ;;  %s2782_s21 = scalar_lea.vmem %s3727_s0, %s2497_s16  ;;  %vm2853_vm12 = vmor %vm3734_vm2, %vm401_vm7  ;;  %s3683_s22 = scalar_lea.vmem %s3729_s2, %s2497_s16 }
  0x10   : > { %v2785_v9 = vadd.s32 32, %v2761_v3  ;;  %v2788_v10 = vadd.s32 40, %v2761_v3  ;;  %v311_v11 = vld [vmem:[%s2782_s21] sm:$0xff]  ;;  %v312_v12 = vld [vmem:[%s2782_s21 + $0x8] sm:$0xff]  ;;  %v313_v13 = vld [vmem:[%s2782_s21 + $0x10] sm:$0xff]  ;;  %v2817_v23 = vadd.s32 48, %v2761_v3 }
  0x11   : > { %v210_v14 = vand.u32 7, %v2765_v4  ;;  %v217_v15 = vand.u32 7, %v2768_v5  ;;  %v224_v16 = vand.u32 7, %v2771_v6  ;;  %v2499_v17 = vpack.c.bf16 %v311_v11, %v311_v11  ;;  %v314_v33 = vld [vmem:[%s2782_s21 + $0x18] sm:$0xff]  ;;  %v315_v34 = vld [vmem:[%s2782_s21 + $0x20] sm:$0xff]  ;;  %v316_v44 = vld [vmem:[%s2782_s21 + $0x28] sm:$0xff]  ;;  %2510 = vmatpush3.bf16.msra.mxu0 %v2640_v55 }
  0x12   : > { %v2500_v18 = vpack.c.bf16 %v312_v12, %v312_v12  ;;  %v2501_v19 = vpack.c.bf16 %v313_v13, %v313_v13  ;;  %vm295_vm1 = vcmp.gt.s32.totalorder %v203_v7, 0  ;;  %v2820_v24 = vadd.s32 56, %v2761_v3  ;;  %v317_v45 = vld [vmem:[%s2782_s21 + $0x30] sm:$0xff]  ;;  %s2352_s16 = sshll.u32 %s3833_s13, 3 }
  0x13   : > { %vm296_vm3 = vcmp.gt.s32.totalorder %v210_v14, 0  ;;  %vm2802_vm4 = vcmp.gt.s32.totalorder %v217_v15, 0  ;;  %vm2808_vm5 = vcmp.gt.s32.totalorder %v224_v16, 0  ;;  %vm384_vm6 = vmpackc.low %vm295_vm1, %vm295_vm1  ;;  %351 = vst.msk [vmem:[#allocation2 + $0x8] sm:$0xf] %vm3732_vm0, %v2499_v17  ;;  %v231_v28 = vand.u32 7, %v2785_v9  ;;  %s181_s25 = scalar_lea.vmem %s3730_s3, %s2352_s16 }
  0x14   : > { %352 = vst.msk [vmem:[#allocation2 + $0xc] sm:$0xf] %vm3732_vm0, %v2500_v18  ;;  %353 = vst.msk [vmem:[#allocation2 + $0x10] sm:$0xf] %vm3732_vm0, %v2501_v19  ;;  %v392_v22 = vsel %vm384_vm6, 65537, %v3738_v1  ;;  %v3740_v32 = vand.u32 7, %v2788_v10  ;;  %v2502_v59 = vpack.c.bf16 %v314_v33, %v314_v33  ;;  %v2503_v60 = vpack.c.bf16 %v315_v34, %v315_v34 }
  0x15   : > { %vm385_vm8 = vmpackc.low %vm296_vm3, %vm296_vm3  ;;  %v404_v26 = vshll.u32 %v392_v22, 16  ;;  %v407_v27 = vshrl.u32 %v392_v22, 16  ;;  %v852_v39 = vld [vmem:[#allocation2 + $0x4] sm:$0x8]  ;;  %v2504_v61 = vpack.c.bf16 %v316_v44, %v316_v44  ;;  %v2505_v62 = vpack.c.bf16 %v317_v45, %v317_v45 }
  0x16   : > { %vm386_vm9 = vmpackc.low %vm2802_vm4, %vm2802_vm4  ;;  %v393_v25 = vsel %vm385_vm8, 65537, %v3738_v1  ;;  %v360_v46 = vld [vmem:[#allocation2 + $0x4] sm:$0xf]  ;;  %vm2859_vm14 = vcmp.gt.s32.totalorder %v231_v28, 0  ;;  %vm2865_vm15 = vcmp.gt.s32.totalorder %v3740_v32, 0  ;;  %vm2922_vm7 = vcmp.lt.s32.totalorder %v203_v7, 7 }
  0x17   : > { %vm387_vm10 = vmpackc.low %vm2808_vm5, %vm2808_vm5  ;;  %v394_v29 = vsel %vm386_vm9, 65537, %v3738_v1  ;;  %v413_v30 = vshll.u32 %v393_v25, 16  ;;  %v417_v31 = vshrl.u32 %v393_v25, 16  ;;  %v2835_v36 = vrot.slane %v404_v26, 5  ;;  %354 = vst.msk [vmem:[#allocation2 + $0x14] sm:$0xf] %vm3732_vm0, %v2502_v59 }
  0x18   : > { %v395_v35 = vsel %vm387_vm10, 65537, %v3738_v1  ;;  %v409_v37 = vrot.slane %v407_v27, 4  ;;  %v423_v38 = vshll.u32 %v394_v29, 16  ;;  %v427_v42 = vshrl.u32 %v394_v29, 16  ;;  %355 = vst.msk [vmem:[#allocation2 + $0x18] sm:$0xf] %vm3732_vm0, %v2503_v60  ;;  %vm388_vm1 = vmpackc.low %vm2859_vm14, %vm2859_vm14 }
  0x19   : > { %v415_v40 = vrot.slane %v413_v30, 5  ;;  %v419_v41 = vrot.slane %v417_v31, 4  ;;  %v433_v43 = vshll.u32 %v395_v35, 16  ;;  %v437_v49 = vshrl.u32 %v395_v35, 16  ;;  %356 = vst.msk [vmem:[#allocation2 + $0x1c] sm:$0xf] %vm3732_vm0, %v2504_v61  ;;  %vm389_vm3 = vmpackc.low %vm2865_vm15, %vm2865_vm15 }
  0x1a   : > { %v410_v47 = vor.u32 %v409_v37, %v2835_v36  ;;  %v425_v48 = vrot.slane %v423_v38, 5  ;;  %vm3731_vm11 = vcmp.ne.s16.totalorder %v2835_v36, 0  ;;  %v429_v52 = vrot.slane %v427_v42, 4  ;;  %v361_v56 = vld [vmem:[#allocation2 + $0x8] sm:$0xf] }
  0x1b   : > { %v420_v51 = vor.u32 %v419_v41, %v415_v40  ;;  %v2844_v53 = vrot.slane %v433_v43, 5  ;;  %v854_v54 = vsel %vm3731_vm11, %v852_v39, 0  ;;  %v362_v57 = vld [vmem:[#allocation2 + $0xc] sm:$0xf]  ;;  %v363_v58 = vld [vmem:[#allocation2 + $0x10] sm:$0xf]  ;;  %v2366_v0 = vcombine.low %v360_v46, %v361_v56 }
  0x1c   : > { %v2367_v2 = vcombine.low %v362_v57, %v363_v58  ;;  %v411_v8 = vrot.slane %v410_v47, 4  ;;  %v430_v12 = vor.u32 %v429_v52, %v425_v48  ;;  %v439_v13 = vrot.slane %v437_v49, 4  ;;  %357 = vst.msk [vmem:[#allocation2 + $0x20] sm:$0xf] %vm3732_vm0, %v2505_v62  ;;  %v2880_v29 = vld [vmem:[#allocation2 + $0x8] sm:$0xf] }
  0x1d   : > { %v421_v11 = vrot.slane %v420_v51, 4  ;;  %v544_v19 = vshrl.u32 %v2366_v0, 16  ;;  %v547_v20 = vshll.u32 %v2366_v0, 16  ;;  %v2882_v30 = vld [vmem:[#allocation2 + $0xc] sm:$0xf]  ;;  %v396_v31 = vsel %vm388_vm1, 65537, %v3738_v1 }
  0x1e   : > { %v552_v21 = vshrl.u32 %v2367_v2, 16  ;;  %v555_v22 = vshll.u32 %v2367_v2, 16  ;;  %v416_v25 = vsel %vm2853_vm12, %v411_v8, %v415_v40  ;;  %v431_v27 = vrot.slane %v430_v12, 4  ;;  %v2888_v38 = vld [vmem:[#allocation2 + $0x10] sm:$0xf] }
  0x1f   : > { %v426_v26 = vsel %vm2853_vm12, %v421_v11, %v425_v48  ;;  %v546_v33 = vrot.slane %v544_v19, 4  ;;  %v549_v34 = vrot.slane %v547_v20, 5  ;;  %vm2893_vm4 = vcmp.ne.s16.totalorder %v416_v25, 0  ;;  %v1222_v47 = vld [vmem:[#allocation2 + $0xc] sm:$0xf] }
  0x20   : > { %v554_v35 = vrot.slane %v552_v21, 4  ;;  %v557_v37 = vrot.slane %v555_v22, 5  ;;  %v436_v39 = vsel %vm2853_vm12, %v431_v27, %v2844_v53  ;;  %v3764_v40 = vmov 0  ;;  %v1223_v48 = vld [vmem:[#allocation2 + $0x10] sm:$0xf] }
  0x21   : > { %v3765_v40 = vsel %vm2893_vm4, 4294967295, %v3764_v40  ;;  %vm2897_vm5 = vcmp.ne.s16.totalorder %v426_v26, 0  ;;  %v397_v42 = vsel %vm389_vm3, 65537, %v3738_v1  ;;  %v550_v43 = vor.u32 %v549_v34, %v546_v33  ;;  %v364_v61 = vld [vmem:[#allocation2 + $0x14] sm:$0xf] }
  0x22   : > { %3766 = vst [vmem:[#allocation4_spill] sm:$0xff] %v3765_v40  ;;  %v2902_v44 = vor.u32 %v557_v37, %v554_v35  ;;  %vm2904_vm6 = vcmp.ne.s16.totalorder %v436_v39, 0  ;;  %v855_v46 = vsel %vm2893_vm4, %v2880_v29, 0  ;;  %v856_v49 = vsel %vm2897_vm5, %v2882_v30, 0  ;;  %v1224_v20 = vld [vmem:[#allocation2 + $0x14] sm:$0xf] }
  0x23   : > { %v857_v50 = vsel %vm2904_vm6, %v2888_v38, 0  ;;  %v2385_v51 = vcombine.low %v854_v54, %v855_v46  ;;  %v440_v52 = vor.u32 %v439_v13, %v2844_v53  ;;  %v443_v58 = vshll.u32 %v396_v31, 16  ;;  %v2950_v13 = vld [vmem:[#allocation2 + $0x14] sm:$0xf]  ;;  %v1225_v27 = vld [vmem:[#allocation2 + $0x18] sm:$0xf] }
  0x24   : > { %v559_v55 = vsel %vm3734_vm2, %v550_v43, %v2902_v44  ;;  %v2926_v57 = vcombine.low %v856_v49, %v857_v50  ;;  %v447_v59 = vshrl.u32 %v396_v31, 16  ;;  %vm2931_vm8 = vcmp.lt.s32.totalorder %v210_v14, 7  ;;  %v2942_v14 = vld [vmem:[#allocation2 + $0x18] sm:$0xf] }
  0x25   : > { %580 = vrot.lane.b32.xlu1 %v559_v55, %s2719_s26  ;;  %v910_v54 = vrot.slane %v2385_v51, 3  ;;  %v441_v60 = vrot.slane %v440_v52, 4  ;;  %v453_v3 = vshll.u32 %v397_v42, 16  ;;  %v457_v7 = vshrl.u32 %v397_v42, 16  ;;  %v2970_v35 = vld [vmem:[#allocation2 + $0x18] sm:$0xf] }
  0x26   : > { %vm2937_vm9 = vcmp.lt.s32.totalorder %v217_v15, 7  ;;  %v911_v0 = vrot.slane %v2926_v57, 3  ;;  %v445_v2 = vrot.slane %v443_v58, 5  ;;  %v449_v8 = vrot.slane %v447_v59, 4  ;;  %v2989_v58 = vld [vmem:[#allocation2 + $0x1c] sm:$0xf] }
  0x27   : > { %v2421_v4 = vcombine.low %v1222_v47, %v1223_v48  ;;  %vm2946_vm10 = vcmp.lt.s32.totalorder %v224_v16, 7  ;;  %v455_v12 = vrot.slane %v453_v3, 5  ;;  %v2368_v5 = vcombine.low %v364_v61, %v2942_v14 }
  0x28   : > { %v3737_v15 = vand.u32 7, %v2817_v23  ;;  %v3736_v17 = vand.u32 7, %v2820_v24  ;;  %v912_v18 = vsel %vm3733_vm13, %v910_v54, %v911_v0  ;;  %v446_v6 = vsel %vm2853_vm12, %v441_v60, %v445_v2  ;;  %vm749_vm13 = vmpackc.low %vm2937_vm9, %vm2937_vm9 }
  0x29   : > { %v450_v16 = vor.u32 %v449_v8, %v445_v2  ;;  %v1283_v19 = vshrl.u32 %v2421_v4, 16  ;;  %919 = vrot.lane.b32.xlu0 %v912_v18, %s2719_s26  ;;  %vm2961_vm14 = vcmp.ne.s16.totalorder %v446_v6, 0  ;;  %v3779_v21 = vmov 0 }
  0x2a   : > { %v3780_v21 = vsel %vm2961_vm14, 4294967295, %v3779_v21  ;;  %v1286_v22 = vshll.u32 %v2421_v4, 16  ;;  %v561_v25 = vshrl.u32 %v2368_v5, 16  ;;  %v564_v26 = vshll.u32 %v2368_v5, 16 }
  0x2b   : > { %3781 = vst [vmem:[#allocation5_spill] sm:$0xff] %v3780_v21  ;;  %v451_v31 = vrot.slane %v450_v16, 4  ;;  %v858_v33 = vsel %vm2961_vm14, %v2950_v13, 0  ;;  %v1285_v34 = vrot.slane %v1283_v19, 4  ;;  %vm301_vm15 = vcmp.gt.s32.totalorder %v3737_v15, 0 }
  0x2c   : > { %v1288_v37 = vrot.slane %v1286_v22, 5  ;;  %v563_v39 = vrot.slane %v561_v25, 4  ;;  %v566_v42 = vrot.slane %v564_v26, 5  ;;  %vm302_vm1 = vcmp.gt.s32.totalorder %v3736_v17, 0  ;;  %vm390_vm3 = vmpackc.low %vm301_vm15, %vm301_vm15  ;;  %v3018_v19 = vld [vmem:[#allocation2 + $0x1c] sm:$0xf] }
  0x2d   : > { %v456_v46 = vsel %vm2853_vm12, %v451_v31, %v455_v12  ;;  %vm391_vm11 = vmpackc.low %vm302_vm1, %vm302_vm1  ;;  %v398_v47 = vsel %vm390_vm3, 65537, %v3738_v1  ;;  %v459_v48 = vrot.slane %v457_v7, 4  ;;  %v2422_v49 = vcombine.low %v1224_v20, %v1225_v27  ;;  %578 = vrot.lane.b32.xlu0 %v550_v43, %s2719_s26  ;;  %v2994_v7 = vld [vmem:[#allocation2 + $0x20] sm:$0xf]  ;;  %v2641_v43 = vld [vmem:[%s3728_s1 + $0x68] sm:$0xff]  }
  0x2e   : > { %vm2977_vm0 = vcmp.ne.s16.totalorder %v456_v46, 0  ;;  %v3782_v50 = vmov 0  ;;  %v2982_v51 = vor.u32 %v1288_v37, %v1285_v34  ;;  %v2984_v52 = vor.u32 %v566_v42, %v563_v39  ;;  %vm748_vm3 = vmpackc.low %vm2931_vm8, %vm2931_vm8  ;;  %2511 = vmatprep.subr.bf16.mxu0 %v2641_v43  ;;  %v2642_v25 = vld [vmem:[%s3728_s1 + $0xf8] sm:$0xff]   ;;  %v2643_v46 = vld [vmem:[%s3728_s1 + $0x28] sm:$0xff]  }
  0x2f   : > { %v3783_v50 = vsel %vm2977_vm0, 4294967295, %v3782_v50  ;;  %v2987_v55 = vsel %vm391_vm11, 65537, %v3738_v1  ;;  %v859_v59 = vsel %vm2977_vm0, %v2970_v35, 0  ;;  %v460_v54 = vor.u32 %v459_v48, %v455_v12  ;;  %vm747_vm11 = vmpackc.low %vm2922_vm7, %vm2922_vm7  ;;  %2547 = vmatprep.subr.bf16.mxu1 %v2642_v25  ;;  %2512 = vmatpush3.bf16.msra.mxu0 %v2643_v46  ;;  %v2702_v37 = vld [vmem:[#allocation2 + $0x8] sm:$0xf] }
  0x30   : > { %3784 = vst [vmem:[#allocation6_spill] sm:$0xff] %v3783_v50  ;;  %v463_v60 = vshll.u32 %v398_v47, 16  ;;  %v467_v3 = vshrl.u32 %v398_v47, 16  ;;  %v3002_v61 = vcombine.low %v858_v33, %v859_v59  ;;  %v568_v2 = vsel %vm3734_vm2, %v2902_v44, %v2984_v52  ;;  %vm750_vm15 = vmpackc.low %vm2946_vm10, %vm2946_vm10  ;;  %v3049_v47 = vld [vmem:[#allocation2 + $0x20] sm:$0xf] }
  0x31   : > { %v473_v8 = vshll.u32 %v2987_v55, 16  ;;  %v1291_v4 = vshrl.u32 %v2422_v49, 16  ;;  %v461_v12 = vrot.slane %v460_v54, 4  ;;  %v1294_v6 = vshll.u32 %v2422_v49, 16  ;;  %582 = vrot.lane.b32.xlu0 %v568_v2, %s2719_s26  ;;  %v2644_v49 = vld [vmem:[%s3728_s1 + $0xb8] sm:$0xff]  }
  0x32   : > { %v465_v5 = vrot.slane %v463_v60, 5  ;;  %v469_v18 = vrot.slane %v467_v3, 4  ;;  %v913_v44 = vrot.slane %v3002_v61, 3  ;;  %v2369_v22 = vcombine.low %v2989_v58, %v2994_v7  ;;  %2548 = vmatpush3.bf16.msra.mxu1 %v2644_v49  ;;  %v1458_v49 = vld [vmem:[#allocation2 + $0x10] sm:$0xf] }
  0x33   : > { %v3016_v16 = vrot.slane %v473_v8, 5  ;;  %v1293_v20 = vrot.slane %v1291_v4, 4  ;;  %v1296_v31 = vrot.slane %v1294_v6, 5  ;;  %v755_v33 = vsel %vm747_vm11, 65537, %v3738_v1 }
  0x34   : > { %v466_v26 = vsel %vm2853_vm12, %v461_v12, %v465_v5  ;;  %v470_v27 = vor.u32 %v469_v18, %v465_v5  ;;  %vm3785_vm1 = vcmask 1044480   ;;  %v570_v39 = vshrl.u32 %v2369_v22, 16  ;;  %v318_v5 = vld [vmem:[%s2782_s21 + $0x38] sm:$0xff]  ;;  %v2645_v18 = vld [vmem:[%s3728_s1 + $0x60] sm:$0xff]  }
  0x35   : > { %v914_v34 = vsel %vm3785_vm1, %v911_v0, %v913_v44  ;;  %vm3041_vm2 = vcmp.ne.s16.totalorder %v466_v26, 0  ;;  %v573_v42 = vshll.u32 %v2369_v22, 16  ;;  %v3054_v0 = vor.u32 %v1296_v31, %v1293_v20  ;;  %v3099_v26 = vld [vmem:[#allocation2 + $0x8] sm:$0xf]  ;;  %2513 = vmatprep.subr.bf16.mxu0 %v2645_v18  ;;  %v3128_v18 = vld [vmem:[#allocation2 + $0x14] sm:$0xf] }
  0x36   : > { %921 = vrot.lane.b32.xlu1 %v914_v34, %s2719_s26  ;;  %v471_v56 = vrot.slane %v470_v27, 4  ;;  %v860_v57 = vsel %vm3041_vm2, %v3018_v19, 0  ;;  %v756_v48 = vsel %vm748_vm3, 65537, %v3738_v1  ;;  %v572_v59 = vrot.slane %v570_v39, 4  ;;  %v1457_v39 = vld [vmem:[#allocation2 + $0xc] sm:$0xf] }
  0x37   : > { %v575_v54 = vrot.slane %v573_v42, 5  ;;  %v757_v60 = vsel %vm749_vm13, 65537, %v3738_v1  ;;  %v758_v53 = vsel %vm750_vm15, 65537, %v3738_v1  ;;  %vm3788_vm7 = vsmask.f32 3328 }
  0x38   : > { %v476_v3 = vsel %vm2853_vm12, %v471_v56, %v3016_v16  ;;  %v1298_v43 = vsel %vm3788_vm7, %v2982_v51, %v3054_v0  ;;  %v764_v2 = vshrl.u32 %v755_v33, 16  ;;  %v767_v62 = vshll.u32 %v755_v33, 16  ;;  %vm3791_vm8 = vmmov %vm3788_vm7  ;;  %v3195_v1 = vld [vmem:[#allocation2 + $0x20] sm:$0xf] }
  0x39   : > { %vm3083_vm13 = vcmp.ne.s16.totalorder %v476_v3, 0  ;;  %1319 = vrot.lane.b32.xlu0 %v1298_v43, %s2719_s26  ;;  %v3088_v11 = vor.u32 %v575_v54, %v572_v59  ;;  %v772_v4 = vshrl.u32 %v756_v48, 16  ;;  %v775_v12 = vshll.u32 %v756_v48, 16  ;;  %v3114_v48 = vld [vmem:[#allocation2 + $0xc] sm:$0xf] }
  0x3a   : > { %1317 = vrot.lane.b32.xlu1 %v2982_v51, %s2719_s26  ;;  %v861_v6 = vsel %vm3083_vm13, %v3049_v47, 0  ;;  %v766_v20 = vrot.slane %v764_v2, 7  ;;  %v781_v22 = vshrl.u32 %v757_v60, 16  ;;  %v784_v25 = vshll.u32 %v757_v60, 16  ;;  %v3122_v43 = vld [vmem:[#allocation2 + $0x10] sm:$0xf] }
  0x3b   : > { %v3101_v27 = vcombine.low %v860_v57, %v861_v6  ;;  %v577_v31 = vsel %vm3791_vm8, %v2984_v52, %v3088_v11  ;;  %v774_v33 = vrot.slane %v772_v4, 7  ;;  %v790_v34 = vshrl.u32 %v758_v53, 16  ;;  %v2646_v52 = vld [vmem:[%s3728_s1 + $0xf0] sm:$0xff]   ;;  %v1460_v6 = vld [vmem:[#allocation2 + $0x18] sm:$0xf] }
  0x3c   : > { %vm3792_vm9 = vsmask.f32 4368  ;;  %vm3793_vm10 = vsmask.f32 256  ;;  %v3112_v42 = vor.u32 %v767_v62, %v766_v20  ;;  %v770_v46 = vrot.slane %v766_v20, 4  ;;  %2549 = vmatprep.subr.bf16.mxu1 %v2646_v52 }
  0x3d   : > { %vm3108_vm11 = vmor %vm3793_vm10, %vm3792_vm9  ;;  %v783_v56 = vrot.slane %v781_v22, 7  ;;  %v793_v57 = vshll.u32 %v758_v53, 16  ;;  %v3735_v59 = vrot.slane %v3101_v27, 3  ;;  %v777_v54 = vor.u32 %v775_v12, %v774_v33  ;;  %v1459_v2 = vld [vmem:[#allocation2 + $0x14] sm:$0xf]  ;;  %v2647_v53 = vld [vmem:[%s3728_s1 + $0x20] sm:$0xff]  }
  0x3e   : > { %v779_v60 = vrot.slane %v774_v33, 4  ;;  %v3120_v3 = vrot.slane %v790_v34, 7  ;;  %vm3743_vm15 = vcmp.ne.s16.totalorder %v3112_v42, 0  ;;  %v2506_v20 = vpack.c.bf16 %v318_v5, %v318_v5  ;;  %2514 = vmatpush3.bf16.msra.mxu0 %v2647_v53  ;;  %v2648_v5 = vld [vmem:[%s3728_s1 + $0xb0] sm:$0xff]  }
  0x3f   : > { %v786_v62 = vor.u32 %v784_v25, %v783_v56  ;;  %v788_v4 = vrot.slane %v783_v56, 4  ;;  %v916_v12 = vsel %vm3785_vm1, %v913_v44, %v3735_v59  ;;  %v3137_v22 = vsel %vm3108_vm11, %v770_v46, %v777_v54  ;;  %v2649_v46 = vld [vmem:[%s3728_s1 + $0x58] sm:$0xff]   ;;  %2550 = vmatpush3.bf16.msra.mxu1 %v2648_v5  ;;  %v2652_v5 = vld [vmem:[%s3728_s1 + $0xa8] sm:$0xff]  }
  0x40   : > { %v795_v25 = vor.u32 %v793_v57, %v3120_v3  ;;  %v1076_v33 = vsel %vm3743_vm15, %v3099_v26, 0  ;;  %vm1128_vm3 = vsmask.f32 7424  ;;  %923 = vrot.lane.b32.xlu1 %v916_v12, %s2719_s26  ;;  %vm835_vm7 = vcmp.ne.s16.totalorder %v3137_v22, 0  ;;  %2515 = vmatprep.subr.bf16.mxu0 %v2649_v46 }
  0x41   : > { %v3149_v61 = vsel %vm3108_vm11, %v779_v60, %v786_v62  ;;  %v1466_v44 = vsel %vm3743_vm15, %v1457_v39, 0  ;;  %vm3796_vm8 = vcmask 519168   ;;  %v477_v34 = vshrl.u32 %v2987_v55, 16  ;;  %v2650_v55 = vld [vmem:[%s3728_s1 + $0xe8] sm:$0xff]  }
  0x42   : > { %358 = vst.msk [vmem:[#allocation2 + $0x24] sm:$0xf] %vm3796_vm8, %v2506_v20  ;;  %v3161_v56 = vsel %vm3108_vm11, %v788_v4, %v795_v25  ;;  %vm3742_vm9 = vcmp.ne.s16.totalorder %v3149_v61, 0  ;;  %v1077_v57 = vsel %vm835_vm7, %v3114_v48, 0  ;;  %v1467_v39 = vsel %vm835_vm7, %v1458_v49, 0  ;;  %v2651_v49 = vld [vmem:[%s3728_s1 + $0x18] sm:$0xff]   ;;  %2551 = vmatprep.subr.bf16.mxu1 %v2650_v55 }
  0x43   : > { %vm3741_vm10 = vcmp.ne.s16.totalorder %v3161_v56, 0  ;;  %v1078_v52 = vsel %vm3742_vm9, %v3122_v43, 0  ;;  %v2403_v54 = vcombine.low %v1076_v33, %v1077_v57  ;;  %v1468_v60 = vsel %vm3742_vm9, %v1459_v2, 0  ;;  %2516 = vmatpush3.bf16.msra.mxu0 %v2651_v49  ;;  %2552 = vmatpush3.bf16.msra.mxu1 %v2652_v5 }
  0x44   : > { %v1079_v53 = vsel %vm3741_vm10, %v3128_v18, 0  ;;  %v1469_v62 = vsel %vm3741_vm10, %v1460_v6, 0  ;;  %v1476_v4 = vshrl.u32 %v1466_v44, 16  ;;  %v1479_v20 = vshll.u32 %v1466_v44, 16  ;;  %584 = vrot.lane.b32.xlu1 %v577_v31, %s2719_s26  ;;  %v3192_v6 = vld [vmem:[#allocation2 + $0x1c] sm:$0xf] }
  0x45   : > { %v3187_v12 = vcombine.low %v1078_v52, %v1079_v53  ;;  %v1130_v2 = vshrl.u32 %v2403_v54, 16  ;;  %v1132_v25 = vshll.u32 %v2403_v54, 16  ;;  %v1485_v33 = vshll.u32 %v1467_v39, 16  ;;  %3797 = vst [vmem:[#allocation7_spill] sm:$0xff] %v3192_v6 }
  0x46   : > { %v1478_v46 = vrot.slane %v1476_v4, 4  ;;  %v1481_v57 = vrot.slane %v1479_v20, 5  ;;  %v1489_v59 = vshrl.u32 %v1467_v39, 16  ;;  %v1495_v17 = vshll.u32 %v1468_v60, 16  ;;  %v2653_v4 = vld [vmem:[%s3728_s1 + $0x50] sm:$0xff]  }
  0x47   : > { %v1134_v44 = vrot.slane %v1132_v25, 1  ;;  %v1137_v55 = vshll.u32 %v3187_v12, 16  ;;  %v1487_v31 = vrot.slane %v1485_v33, 5  ;;  %v1499_v52 = vshrl.u32 %v1468_v60, 16  ;;  %v2654_v60 = vld [vmem:[%s3728_s1 + $0xe0] sm:$0xff]   ;;  %2517 = vmatprep.subr.bf16.mxu0 %v2653_v4 }
  0x48   : > { %v1482_v53 = vor.u32 %v1481_v57, %v1478_v46  ;;  %v1491_v54 = vrot.slane %v1489_v59, 4  ;;  %v1497_v15 = vrot.slane %v1495_v17, 5  ;;  %v1505_v49 = vshll.u32 %v1469_v62, 16  ;;  %v2655_v46 = vld [vmem:[%s3728_s1 + $0x10] sm:$0xff]   ;;  %2553 = vmatprep.subr.bf16.mxu1 %v2654_v60 }
  0x49   : > { %v1135_v39 = vor.u32 %v1134_v44, %v1130_v2  ;;  %v3200_v20 = vrot.slane %v1137_v55, 1  ;;  %v1501_v32 = vrot.slane %v1499_v52, 4  ;;  %v1509_v25 = vshrl.u32 %v1469_v62, 16  ;;  %v2656_v55 = vld [vmem:[%s3728_s1 + $0xa0] sm:$0xff]   ;;  %2518 = vmatpush3.bf16.msra.mxu0 %v2655_v46  ;;  %v2658_v46 = vld [vmem:[%s3728_s1 + $0xd8] sm:$0xff]  }
  0x4a   : > { %v1483_v33 = vrot.slane %v1482_v53, 4  ;;  %v1492_v5 = vor.u32 %v1491_v54, %v1487_v31  ;;  %v1507_v59 = vrot.slane %v1505_v49, 5  ;;  %v479_v17 = vrot.slane %v477_v34, 4  ;;  %v853_v54 = vld [vmem:[#allocation2 + $0x24] sm:$0xf]  ;;  %2554 = vmatpush3.bf16.msra.mxu1 %v2656_v55 }
  0x4b   : > { %v1140_v2 = vsel %vm1128_vm3, %v1135_v39, %v3200_v20  ;;  %v1502_v57 = vor.u32 %v1501_v32, %v1497_v15  ;;  %v1511_v44 = vrot.slane %v1509_v25, 4  ;;  %v2423_v62 = vcombine.low %v3192_v6, %v3195_v1  ;;  %2555 = vmatprep.subr.bf16.mxu1 %v2658_v46 }
  0x4c   : > { %v1488_v34 = vsel %vm2853_vm12, %v1483_v33, %v1487_v31  ;;  %v1493_v52 = vrot.slane %v1492_v5, 4  ;;  %1165 = vrot.lane.b32.xlu0 %v1140_v2, %s2719_s26  ;;  %v480_v53 = vor.u32 %v479_v17, %v3016_v16  ;;  %vm307_vm1 = vcmp.lt.s32.totalorder %v231_v28, 7  ;;  %v2657_v31 = vld [vmem:[%s3728_s1 + $0x48] sm:$0xff]   ;;  %v3236_v5 = vld [vmem:[#allocation2 + $0x24] sm:$0xf] }
  0x4d   : > { %v1503_v32 = vrot.slane %v1502_v57, 4  ;;  %v1512_v49 = vor.u32 %v1511_v44, %v1507_v59  ;;  %1567 = vst.msk [vmem:[#allocation3 + $0x10] sm:$0xf] %vm3796_vm8, %v1488_v34  ;;  %v1300_v4 = vshrl.u32 %v2423_v62, 16  ;;  %v1303_v39 = vshll.u32 %v2423_v62, 16  ;;  %vm751_vm10 = vmpackc.low %vm307_vm1, %vm307_vm1  ;;  %2519 = vmatprep.subr.bf16.mxu0 %v2657_v31  ;;  %v2659_v44 = vld [vmem:[%s3728_s1 + $0x8] sm:$0xff]  }
  0x4e   : > { %v1498_v16 = vsel %vm2853_vm12, %v1493_v52, %v1497_v15  ;;  %v3227_v25 = vrot.slane %v480_v53, 4  ;;  %v3798_v9 = vand.u32 7, %v2788_v10  ;;  %v3801_v60 = vmov 0   ;;  %v3238_v17 = vld [vmem:[#allocation2 + $0x28] sm:$0xf]  ;;  %vm3802_vm1 = vmmov %vm3796_vm8  ;;  %2520 = vmatpush3.bf16.msra.mxu0 %v2659_v44 }
  0x4f   : > { %v759_v33 = vsel %vm751_vm10, 65537, %v3801_v60  ;;  %v1508_v15 = vsel %vm2853_vm12, %v1503_v32, %v1507_v59  ;;  %v3245_v2 = vrot.slane %v1512_v49, 4  ;;  %1568 = vst.msk [vmem:[#allocation3 + $0x24] sm:$0xf] %vm3802_vm1, %v1498_v16  ;;  %v1302_v10 = vrot.slane %v1300_v4, 4  ;;  %vm3803_vm8 = vmmov %vm3802_vm1  ;;  %v2660_v49 = vld [vmem:[%s3728_s1 + $0x98] sm:$0xff]  }
  0x50   : > { %vm3231_vm9 = vcmp.lt.s32.totalorder %v3798_v9, 7  ;;  %v1305_v57 = vrot.slane %v1303_v39, 5  ;;  %1569 = vst.msk [vmem:[#allocation3 + $0x38] sm:$0xf] %vm3803_vm8, %v1508_v15  ;;  %vm3751_vm15 = vcmp.ne.s16.totalorder %v3227_v25, 0  ;;  %v797_v62 = vrot.slane %v3120_v3, 4  ;;  %2556 = vmatpush3.bf16.msra.mxu1 %v2660_v49 }
  0x51   : > { %vm752_vm10 = vmpackc.low %vm3231_vm9, %vm3231_vm9  ;;  %v799_v55 = vshrl.u32 %v759_v33, 16  ;;  %v862_v34 = vsel %vm3751_vm15, %v853_v54, 0  ;;  %v802_v53 = vshll.u32 %v759_v33, 16  ;;  %v1141_v16 = vshrl.u32 %v3187_v12, 16  ;;  %v2661_v3 = vld [vmem:[%s3728_s1 + $0x40] sm:$0xff]  }
  0x52   : > { %v760_v59 = vsel %vm752_vm10, 65537, %v3801_v60  ;;  %v3260_v52 = vor.u32 %v1305_v57, %v1302_v10  ;;  %v2389_v4 = vcombine.low %v862_v34, %v862_v34  ;;  %vm3804_vm9 = vsmask.f32 3328  ;;  %v3274_v28 = vld [vmem:[#allocation2 + $0x18] sm:$0xf]  ;;  %2521 = vmatprep.subr.bf16.mxu0 %v2661_v3 }
  0x53   : > { %v808_v32 = vshrl.u32 %v760_v59, 16  ;;  %v801_v39 = vrot.slane %v799_v55, 7  ;;  %v811_v31 = vshll.u32 %v760_v59, 16  ;;  %v1461_v33 = vld [vmem:[#allocation2 + $0x1c] sm:$0xf]  ;;  %v2424_v46 = vcombine.low %v3236_v5, %v3238_v17 }
  0x54   : > { %v1307_v54 = vsel %vm3804_vm9, %v3054_v0, %v3260_v52  ;;  %v3805_v15 = vand.u32 7, %v2817_v23  ;;  %v917_v10 = vrot.slane %v2389_v4, 3  ;;  %v3285_v44 = vld [vmem:[#allocation2 + $0x1c] sm:$0xf]  ;;  %v1462_v59 = vld [vmem:[#allocation2 + $0x20] sm:$0xf] }
  0x55   : > { %v3272_v9 = vrot.slane %v808_v32, 7  ;;  %1321 = vrot.lane.b32.xlu0 %v1307_v54, %s2719_s26  ;;  %v804_v57 = vor.u32 %v802_v53, %v801_v39  ;;  %v806_v0 = vrot.slane %v801_v39, 4  ;;  %v1309_v55 = vshrl.u32 %v2424_v46, 16  ;;  %v2662_v53 = vld [vmem:[%s3728_s1 + $0xd0] sm:$0xff]  }
  0x56   : > { %vm3280_vm1 = vcmp.lt.s32.totalorder %v3805_v15, 7  ;;  %v1312_v34 = vshll.u32 %v2424_v46, 16  ;;  %v3808_v32 = vand.u32 7, %v2820_v24  ;;  %v3811_v4 = vrot.slane %v3101_v27, 3  ;;  %2557 = vmatprep.subr.bf16.mxu1 %v2662_v53 }
  0x57   : > { %vm753_vm10 = vmpackc.low %vm3280_vm1, %vm3280_vm1  ;;  %v813_v23 = vor.u32 %v811_v31, %v3272_v9  ;;  %vm3812_vm9 = vcmask 1044480   ;;  %v3305_v3 = vsel %vm3108_vm11, %v797_v62, %v804_v57  ;;  %v815_v31 = vrot.slane %v3272_v9, 4  ;;  %v2663_v62 = vld [vmem:[%s3728_s1] sm:$0xff]  }
  0x58   : > { %vm3293_vm8 = vcmp.lt.s32.totalorder %v3808_v32, 7  ;;  %v918_v39 = vsel %vm3812_vm9, %v3811_v4, %v917_v10  ;;  %v761_v24 = vsel %vm753_vm10, 65537, %v3801_v60  ;;  %vm838_vm9 = vcmp.ne.s16.totalorder %v3305_v3, 0  ;;  %2522 = vmatpush3.bf16.msra.mxu0 %v2663_v62 }
  0x59   : > { %vm754_vm1 = vmpackc.low %vm3293_vm8, %vm3293_vm8  ;;  %925 = vrot.lane.b32.xlu1 %v918_v39, %s2719_s26  ;;  %v3315_v54 = vsel %vm3108_vm11, %v806_v0, %v813_v23  ;;  %v1311_v27 = vrot.slane %v1309_v55, 4  ;;  %v1314_v46 = vrot.slane %v1312_v34, 5  ;;  %v1080_v9 = vsel %vm838_vm9, %v3274_v28, 0 }
  0x5a   : > { %vm839_vm8 = vcmp.ne.s16.totalorder %v3315_v54, 0  ;;  %v1470_v15 = vsel %vm838_vm9, %v1461_v33, 0  ;;  %v762_v12 = vsel %vm754_vm1, 65537, %v3801_v60  ;;  %v1143_v32 = vor.u32 %v1141_v16, %v3200_v20 }
  0x5b   : > { %v1081_v57 = vsel %vm839_vm8, %v3285_v44, 0  ;;  %v1471_v0 = vsel %vm839_vm8, %v1462_v59, 0  ;;  %v1515_v23 = vshll.u32 %v1470_v15, 16  ;;  %v1519_v55 = vshrl.u32 %v1470_v15, 16  ;;  %v2664_v59 = vld [vmem:[%s3728_s1 + $0x90] sm:$0xff]  }
  0x5c   : > { %v2405_v34 = vcombine.low %v1080_v9, %v1081_v57  ;;  %v1525_v49 = vshll.u32 %v1471_v0, 16  ;;  %v1529_v53 = vshrl.u32 %v1471_v0, 16  ;;  %v817_v4 = vshrl.u32 %v761_v24, 16  ;;  %v3343_v57 = vld [vmem:[#allocation2 + $0x20] sm:$0xf]  ;;  %2558 = vmatpush3.bf16.msra.mxu1 %v2664_v59 }
  0x5d   : > { %586 = vrot.lane.b32.xlu1 %v3088_v11, %s2719_s26  ;;  %v1517_v33 = vrot.slane %v1515_v23, 5  ;;  %v1521_v60 = vrot.slane %v1519_v55, 4  ;;  %v820_v39 = vshll.u32 %v761_v24, 16  ;;  %v1315_v40 = vor.u32 %v1314_v46, %v1311_v27  ;;  %v2668_v27 = vld [vmem:[%s3728_s1 + $0xc8] sm:$0xff]  }
  0x5e   : > { %v1145_v6 = vshll.u32 %v2405_v34, 16  ;;  %v1527_v50 = vrot.slane %v1525_v49, 5  ;;  %v1531_v21 = vrot.slane %v1529_v53, 4  ;;  %v819_v62 = vrot.slane %v817_v4, 7  ;;  %v1075_v49 = vld [vmem:[#allocation2 + $0x28] sm:$0x1]  ;;  %2559 = vmatprep.subr.bf16.mxu1 %v2668_v27 }
  0x5f   : > { %v1518_v20 = vsel %vm2853_vm12, %v3245_v2, %v1517_v33  ;;  %v1522_v16 = vor.u32 %v1521_v60, %v1517_v33  ;;  %v826_v9 = vshrl.u32 %v762_v12, 16  ;;  %vm3813_vm10 = vcmask 519168   ;;  %v1463_v53 = vld [vmem:[#allocation2 + $0x24] sm:$0xf]  ;;  %v1464_v33 = vld [vmem:[#allocation2 + $0x28] sm:$0xf] }
  0x60   : > { %v1147_v11 = vrot.slane %v1145_v6, 1  ;;  %v1532_v15 = vor.u32 %v1531_v21, %v1527_v50  ;;  %1570 = vst.msk [vmem:[#allocation3 + $0x4c] sm:$0xf] %vm3813_vm10, %v1518_v20  ;;  %v829_v24 = vshll.u32 %v762_v12, 16  ;;  %v1149_v0 = vshrl.u32 %v2405_v34, 16  ;;  %v3352_v21 = vld [vmem:[%s3728_s1 + $0x118] sm:$0xff]  }
  0x61   : > { %v1523_v46 = vrot.slane %v1522_v16, 4  ;;  %927 = vrot.lane.b32.xlu1 %v917_v10, %s2719_s26  ;;  %v822_v2 = vor.u32 %v820_v39, %v819_v62  ;;  %v824_v23 = vrot.slane %v819_v62, 4  ;;  %v828_v55 = vrot.slane %v826_v9, 7  ;;  %v3357_v34 = vld [vmem:[#allocation2 + $0x24] sm:$0xf]  ;;  %2595 = vmatprep.subr.bf16.mxu0 %v3352_v21 }
  0x62   : > { %v1148_v6 = vsel %vm1128_vm3, %v1143_v32, %v1147_v11  ;;  %vm3814_vm1 = vsmask.f32 3328  ;;  %v1465_v60 = vld [vmem:[#allocation2 + $0x2c] sm:$0x1]  ;;  %v1533_v59 = vrot.slane %v1532_v15, 4  ;;  %vm3817_vm15 = vcmp.ne.s16.totalorder %v3112_v42, 0 }
  0x63   : > { %v1316_v12 = vsel %vm3814_vm1, %v3260_v52, %v1315_v40  ;;  %v1528_v10 = vsel %vm2853_vm12, %v1523_v46, %v1527_v50  ;;  %1167 = vrot.lane.b32.xlu0 %v1148_v6, %s2719_s26  ;;  %v3364_v4 = vsel %vm3108_vm11, %v815_v31, %v822_v2  ;;  %v831_v39 = vor.u32 %v829_v24, %v828_v55  ;;  %v2670_v52 = vld [vmem:[%s3728_s1 + $0x88] sm:$0xff]   ;;  %v722_v20 = vld [vmem:[#allocation2 + $0x4] sm:$0xf] }
  0x64   : > { %v833_v32 = vrot.slane %v828_v55, 4  ;;  %1571 = vst.msk [vmem:[#allocation3 + $0x60] sm:$0xf] %vm3813_vm10, %v1528_v10  ;;  %vm3753_vm1 = vcmp.ne.s16.totalorder %v3364_v4, 0  ;;  %v1151_v50 = vor.u32 %v1149_v0, %v1147_v11  ;;  %v3375_v31 = vsel %vm835_vm7, %v2880_v29, 0  ;;  %2560 = vmatpush3.bf16.msra.mxu1 %v2670_v52  ;;  %v2671_v29 = vld [vmem:[%s3728_s1 + $0xc0] sm:$0xff]  }
  0x65   : > { %1325 = vrot.lane.b32.xlu1 %v1315_v40, %s2719_s26  ;;  %v832_v16 = vsel %vm3108_vm11, %v824_v23, %v831_v39  ;;  %v1082_v62 = vsel %vm3753_vm1, %v3343_v57, 0  ;;  %v1472_v9 = vsel %vm3753_vm1, %v1463_v53, 0  ;;  %2561 = vmatprep.subr.bf16.mxu1 %v2671_v29  ;;  %v2674_v2 = vld [vmem:[%s3728_s1 + $0x80] sm:$0xff]   ;;  %v3405_v39 = vsel %vm3817_vm15, %v722_v20, 0 }
  0x66   : > { %vm3385_vm10 = vcmp.ne.s16.totalorder %v833_v32, 0  ;;  %vm3752_vm7 = vcmp.ne.s16.totalorder %v832_v16, 0  ;;  %v1535_v40 = vshll.u32 %v1472_v9, 16  ;;  %v1539_v22 = vshrl.u32 %v1472_v9, 16 }
  0x67   : > { %v1084_v15 = vsel %vm3385_vm10, %v1075_v49, 0  ;;  %1323 = vrot.lane.b32.xlu0 %v1316_v12, %s2719_s26  ;;  %v1083_v24 = vsel %vm3752_vm7, %v3357_v34, 0  ;;  %v1473_v0 = vsel %vm3752_vm7, %v1464_v33, 0  ;;  %v1474_v46 = vsel %vm3385_vm10, %v1465_v60, 0 }
  0x68   : > { %v2407_v27 = vcombine.low %v1084_v15, %v1084_v15  ;;  %v2406_v23 = vcombine.low %v1082_v62, %v1083_v24  ;;  %v1537_v55 = vrot.slane %v1535_v40, 5  ;;  %v1541_v6 = vrot.slane %v1539_v22, 4  ;;  %2562 = vmatpush3.bf16.msra.mxu1 %v2674_v2 }
  0x69   : > { %v1545_v49 = vshll.u32 %v1473_v0, 16  ;;  %v1549_v53 = vshrl.u32 %v1473_v0, 16  ;;  %v1555_v10 = vshll.u32 %v1474_v46, 16  ;;  %2611 = vmatprep.subr.bf16.mxu1 %v3352_v21  ;;  %vm3818_vm7 = vcmask 519168  }
  0x6a   : > { %v1161_v12 = vshll.u32 %v2407_v27, 16  ;;  %v1153_v33 = vshll.u32 %v2406_v23, 16  ;;  %v1538_v60 = vsel %vm2853_vm12, %v1533_v59, %v1537_v55  ;;  %v1542_v32 = vor.u32 %v1541_v6, %v1537_v55 }
  0x6b   : > { %v1547_v52 = vrot.slane %v1545_v49, 5  ;;  %v1551_v62 = vrot.slane %v1549_v53, 4  ;;  %1572 = vst.msk [vmem:[#allocation3 + $0x74] sm:$0xf] %vm3818_vm7, %v1538_v60  ;;  %v1157_v9 = vshrl.u32 %v2406_v23, 16  ;;  %v2380_v42 = vcombine.low %v3405_v39, %v3375_v31 }
  0x6c   : > { %v1163_v29 = vrot.slane %v1161_v12, 1  ;;  %v1155_v40 = vrot.slane %v1153_v33, 1  ;;  %v1543_v22 = vrot.slane %v1542_v32, 4  ;;  %vm3819_vm15 = vcmp.ne.s16.totalorder %v3149_v61, 0  ;;  %v2701_v53 = vld [vmem:[#allocation2 + $0xc] sm:$0xf] }
  0x6d   : > { %v3416_v20 = vsel %vm3819_vm15, %v2882_v30, 0  ;;  %v1552_v59 = vor.u32 %v1551_v62, %v1547_v52  ;;  %v1557_v15 = vrot.slane %v1555_v10, 5  ;;  %vm3820_vm1 = vcmp.ne.s16.totalorder %v3161_v56, 0  ;;  %v359_v12 = vld [vmem:[#allocation2] sm:$0x8] }
  0x6e   : > { %v3421_v24 = vsel %vm3820_vm1, %v2888_v38, 0  ;;  %v1156_v0 = vsel %vm1128_vm3, %v1151_v50, %v1155_v40  ;;  %v1548_v27 = vsel %vm2853_vm12, %v1543_v22, %v1547_v52  ;;  %v1159_v46 = vor.u32 %v1157_v9, %v1155_v40  ;;  %vm3821_vm1 = vmmov %vm3818_vm7  ;;  %v2703_v60 = vld [vmem:[#allocation2 + $0x4] sm:$0xf]  ;;  %v2704_v62 = vld [vmem:[#allocation2 + $0x10] sm:$0xf] }
  0x6f   : > { %v2381_v31 = vcombine.low %v3416_v20, %v3421_v24  ;;  %v1553_v2 = vrot.slane %v1552_v59, 4  ;;  %1573 = vst.msk [vmem:[#allocation3 + $0x88] sm:$0xf] %vm3818_vm7, %v1548_v27  ;;  %1169 = vrot.lane.b32.xlu0 %v1156_v0, %s2719_s26  ;;  %v3436_v61 = vsel %vm838_vm9, %v2950_v13, 0  ;;  %v3441_v56 = vsel %vm839_vm8, %v2970_v35, 0 }
  0x70   : > { %v1164_v30 = vsel %vm1128_vm3, %v1159_v46, %v1163_v29  ;;  %v2382_v50 = vcombine.low %v3436_v61, %v3441_v56  ;;  %v497_v23 = vsel %vm3041_vm2, %v2942_v14, 0  ;;  %v498_v13 = vsel %vm3083_vm13, %v2989_v58, 0  ;;  %v1221_v0 = vld [vmem:[#allocation2 + $0x8] sm:$0x8]  ;;  %v2705_v27 = vld [vmem:[#allocation2 + $0x14] sm:$0xf] }
  0x71   : > { %v1558_v38 = vsel %vm2853_vm12, %v1553_v2, %v1557_v15  ;;  %v2399_v3 = vcombine.low %v3099_v26, %v3114_v48  ;;  %vm3822_vm3 = vcmp.ne.s16.totalorder %v3364_v4, 0  ;;  %v3460_v54 = vcombine.low %v497_v23, %v498_v13 }
  0x72   : > { %1574 = vst.msk [vmem:[#allocation3 + $0x9c] sm:$0xf] %vm3821_vm1, %v1558_v38  ;;  %v3458_v35 = vsel %vm3822_vm3, %v3018_v19, 0  ;;  %vm3823_vm9 = vcmp.ne.s16.totalorder %v832_v16, 0  ;;  %vm3824_vm8 = vcmp.ne.s16.totalorder %v3227_v25, 0  ;;  %v2400_v6 = vcombine.low %v3122_v43, %v3128_v18 }
  0x73   : > { %1171 = vrot.lane.b32.xlu0 %v1164_v30, %s2719_s26  ;;  %v3464_v55 = vsel %vm3823_vm9, %v3049_v47, 0  ;;  %v3471_v58 = vsel %vm3824_vm8, %v2994_v7, 0  ;;  %v1236_v19 = vsel %vm3041_vm2, %v3195_v1, 0  ;;  %v1237_v47 = vsel %vm3083_vm13, %v3236_v5, 0  ;;  %vm3825_vm15 = vmmov %vm3824_vm8 }
  0x74   : > { %v2383_v14 = vcombine.low %v3458_v35, %v3464_v55  ;;  %v3481_v4 = vcombine.low %v1236_v19, %v1237_v47  ;;  %v3486_v16 = vsel %vm3825_vm15, %v3238_v17, 0  ;;  %v2401_v7 = vcombine.low %v3274_v28, %v3285_v44  ;;  %v2696_v28 = vld [vmem:[#allocation3 + $0x10] ss:$20 sps:$4 sm:$0xff]  }
  0x75   : > { %v2402_v49 = vcombine.low %v3343_v57, %v3357_v34  ;;  %v494_v1 = vsel %vm2904_vm6, %v2701_v53, 0  ;;  %v493_v8 = vsel %vm2897_vm5, %v2702_v37, 0  ;;  %vm588_vm2 = vcmask 523264   ;;  %v2699_v57 = vld [vmem:[#allocation3 + $0x60] ss:$20 sps:$4 sm:$0xff]  }
  0x76   : > { %v2362_v5 = vcombine.low %v493_v8, %v494_v1  ;;  %vm3826_vm13 = vcmp.ne.s16.totalorder %v2835_v36, 0  ;;  %v492_v52 = vsel %vm2893_vm4, %v2703_v60, 0  ;;  %v495_v29 = vsel %vm2961_vm14, %v2704_v62, 0  ;;  %v2706_v1 = vld [vmem:[#allocation2 + $0xc] sm:$0xf] }
  0x77   : > { %v491_v33 = vsel %vm3826_vm13, %v359_v12, 0  ;;  %v496_v2 = vsel %vm2977_vm0, %v2705_v27, 0  ;;  %vm3830_vm7 = vmmov %vm3826_vm13  ;;  %v1231_v37 = vsel %vm2893_vm4, %v2706_v1, 0 }
  0x78   : > { %v2361_v38 = vcombine.low %v491_v33, %v492_v52  ;;  %v1230_v53 = vsel %vm3830_vm7, %v1221_v0, 0  ;;  %v2363_v8 = vcombine.low %v495_v29, %v496_v2  ;;  %v2708_v33 = vld [vmem:[#allocation2 + $0x14] sm:$0xf] }
  0x79   : > { %v1233_v60 = vsel %vm2904_vm6, %v2708_v33, 0  ;;  %v2416_v27 = vcombine.low %v1230_v53, %v1231_v37 }
  0x97   : > { %v581_v25 = vpop.permute.xlu1 %580 }
  0x98   : > { %v594_v17 = vsel %vm588_vm2, %v2362_v5, %v581_v25  ;;  %v2707_v5 = vld [vmem:[#allocation2 + $0x10] sm:$0xf] }
  0x99   : > { %v2372_v10 = vcombine.low %v594_v17, %v594_v17  ;;  %v2373_v39 = vcombine.high %v594_v17, %v594_v17  ;;  %v1232_v12 = vsel %vm2897_vm5, %v2707_v5, 0 }
  0x9a   : > { %v2417_v45 = vcombine.low %v1232_v12, %v1233_v60 }
  0x9b   : > { %v645_v40 = vshrl.u32 %v2372_v10, 16  ;;  %v654_v22 = vshrl.u32 %v2373_v39, 16  ;;  %v657_v59 = vshll.u32 %v2373_v39, 16  ;;  %v920_v15 = vpop.permute.xlu0 %919  ;;  %v648_v25 = vshll.u32 %v2372_v10, 16 }
  0x9c   : > { %v931_v30 = vsel %vm588_vm2, %v2380_v42, %v920_v15 }
  0x9d   : > { %v647_v23 = vrot.slane %v645_v40, 7  ;;  %v3506_v13 = vrot.slane %v654_v22, 7  ;;  %v2390_v19 = vcombine.low %v931_v30, %v931_v30  ;;  %v2391_v47 = vcombine.high %v931_v30, %v931_v30 }
  0x9f   : > { %v652_v42 = vrot.slane %v647_v23, 4  ;;  %v659_v17 = vor.u32 %v657_v59, %v3506_v13  ;;  %v579_v39 = vpop.permute.xlu0 %578  ;;  %v968_v36 = vshrl.u32 %v2390_v19, 16  ;;  %v971_v52 = vshll.u32 %v2390_v19, 16 }
  0xa0   : > { %v977_v62 = vshll.u32 %v2391_v47, 16  ;;  %v981_v40 = vshrl.u32 %v2391_v47, 16  ;;  %v591_v29 = vsel %vm588_vm2, %v2361_v38, %v579_v39  ;;  %v650_v30 = vor.u32 %v648_v25, %v647_v23 }
  0xa1   : > { %v660_v32 = vsel %vm3108_vm11, %v652_v42, %v659_v17  ;;  %v970_v41 = vrot.slane %v968_v36, 4  ;;  %v973_v10 = vrot.slane %v971_v52, 5  ;;  %v2370_v59 = vcombine.low %v591_v29, %v591_v29 }
  0xa2   : > { %716 = vst [vmem:[#allocation3 + $0x28] sm:$0xf] %v660_v32  ;;  %v979_v22 = vrot.slane %v977_v62, 5  ;;  %v983_v15 = vrot.slane %v981_v40, 4  ;;  %v2371_v0 = vcombine.high %v591_v29, %v591_v29  ;;  %v661_v5 = vrot.slane %v3506_v13, 4 }
  0xa3   : > { %v583_v2 = vpop.permute.xlu0 %582  ;;  %v974_v1 = vor.u32 %v973_v10, %v970_v41  ;;  %v631_v42 = vshrl.u32 %v2370_v59, 16 }
  0xa4   : > { %v984_v19 = vor.u32 %v983_v15, %v979_v22  ;;  %v597_v47 = vsel %vm588_vm2, %v2363_v8, %v583_v2  ;;  %v636_v17 = vshrl.u32 %v2371_v0, 16  ;;  %v639_v52 = vshll.u32 %v2371_v0, 16 }
  0xa5   : > { %v2374_v38 = vcombine.low %v597_v47, %v597_v47  ;;  %v975_v39 = vrot.slane %v974_v1, 4  ;;  %v2375_v62 = vcombine.high %v597_v47, %v597_v47  ;;  %v2379_v23 = vrot.slane %v631_v42, 11 }
  0xa6   : > { %v985_v33 = vrot.slane %v984_v19, 4  ;;  %v638_v37 = vrot.slane %v636_v17, 7 }
  0xa7   : > { %v663_v12 = vshrl.u32 %v2374_v38, 16  ;;  %v980_v8 = vsel %vm2853_vm12, %v975_v39, %v979_v22  ;;  %v666_v60 = vshll.u32 %v2374_v38, 16  ;;  %v672_v41 = vshrl.u32 %v2375_v62, 16 }
  0xa8   : > { %v922_v36 = vpop.permute.xlu1 %921  ;;  %1059 = vst [vmem:[#allocation3 + $0x4] sm:$0xf] %v980_v8  ;;  %v641_v40 = vor.u32 %v639_v52, %v638_v37  ;;  %v643_v32 = vrot.slane %v638_v37, 4  ;;  %v675_v8 = vshll.u32 %v2375_v62, 16 }
  0xa9   : > { %v934_v53 = vsel %vm588_vm2, %v2381_v31, %v922_v36  ;;  %v665_v29 = vrot.slane %v663_v12, 7 }
  0xaa   : > { %v2392_v13 = vcombine.low %v934_v53, %v934_v53  ;;  %v2393_v25 = vcombine.high %v934_v53, %v934_v53  ;;  %v642_v31 = vsel %vm3108_vm11, %v2379_v23, %v641_v40  ;;  %v651_v0 = vsel %vm3108_vm11, %v643_v32, %v650_v30 }
  0xab   : > { %v668_v2 = vor.u32 %v666_v60, %v665_v29  ;;  %714 = vst [vmem:[#allocation3] sm:$0xf] %v642_v31  ;;  %715 = vst [vmem:[#allocation3 + $0x14] sm:$0xf] %v651_v0  ;;  %v1320_v36 = vpop.permute.xlu0 %1319  ;;  %v670_v30 = vrot.slane %v665_v29, 4  ;;  %v3537_v23 = vrot.slane %v672_v41, 7 }
  0xac   : > { %v987_v10 = vshll.u32 %v2392_v13, 16  ;;  %v991_v15 = vshrl.u32 %v2392_v13, 16  ;;  %v997_v59 = vshll.u32 %v2393_v25, 16  ;;  %v1001_v20 = vshrl.u32 %v2393_v25, 16  ;;  %v1318_v24 = vpop.permute.xlu1 %1317 }
  0xad   : > { %v1329_v22 = vsel %vm588_vm2, %v2416_v27, %v1318_v24  ;;  %v669_v39 = vsel %vm3108_vm11, %v661_v5, %v668_v2  ;;  %v1332_v40 = vsel %vm588_vm2, %v2417_v45, %v1320_v36 }
  0xae   : > { %v989_v1 = vrot.slane %v987_v10, 5  ;;  %v993_v19 = vrot.slane %v991_v15, 4  ;;  %v999_v47 = vrot.slane %v997_v59, 5  ;;  %v1003_v42 = vrot.slane %v1001_v20, 4  ;;  %717 = vst [vmem:[#allocation3 + $0x3c] sm:$0xf] %v669_v39 }
  0xaf   : > { %v2425_v17 = vcombine.low %v1329_v22, %v1329_v22  ;;  %v2426_v38 = vcombine.high %v1329_v22, %v1329_v22  ;;  %v677_v10 = vor.u32 %v675_v8, %v3537_v23  ;;  %v2427_v62 = vcombine.low %v1332_v40, %v1332_v40 }
  0xb0   : > { %v990_v52 = vsel %vm2853_vm12, %v985_v33, %v989_v1  ;;  %v994_v53 = vor.u32 %v993_v19, %v989_v1  ;;  %v1004_v25 = vor.u32 %v1003_v42, %v999_v47  ;;  %v2428_v20 = vcombine.high %v1332_v40, %v1332_v40 }
  0xb1   : > { %1060 = vst [vmem:[#allocation3 + $0x18] sm:$0xf] %v990_v52  ;;  %v1366_v27 = vshrl.u32 %v2425_v17, 16  ;;  %v1371_v37 = vshrl.u32 %v2426_v38, 16  ;;  %v1374_v12 = vshll.u32 %v2426_v38, 16  ;;  %v678_v45 = vsel %vm3108_vm11, %v670_v30, %v677_v10 }
  0xb2   : > { %v995_v13 = vrot.slane %v994_v53, 4  ;;  %v924_v60 = vpop.permute.xlu1 %923  ;;  %v1005_v24 = vrot.slane %v1004_v25, 4  ;;  %718 = vst [vmem:[#allocation3 + $0x50] sm:$0xf] %v678_v45  ;;  %v1380_v22 = vshrl.u32 %v2427_v62, 16  ;;  %v1389_v2 = vshrl.u32 %v2428_v20, 16 }
  0xb3   : > { %v2434_v5 = vrot.slane %v1366_v27, 11  ;;  %v1373_v32 = vrot.slane %v1371_v37, 7  ;;  %v937_v33 = vsel %vm588_vm2, %v2382_v50, %v924_v60  ;;  %v1392_v38 = vshll.u32 %v2428_v20, 16  ;;  %v2665_v36 = vld [vmem:[#allocation3] ss:$20 sps:$4 sm:$0xff]  }
  0xb4   : > { %v1000_v29 = vsel %vm2853_vm12, %v995_v13, %v999_v47  ;;  %v2394_v41 = vcombine.low %v937_v33, %v937_v33  ;;  %v3547_v15 = vcombine.high %v937_v33, %v937_v33  ;;  %v1383_v47 = vshll.u32 %v2427_v62, 16  ;;  %v3566_v60 = vld [vmem:[%s3728_s1 + $0x110] sm:$0xff]  }
  0xb5   : > { %1061 = vst [vmem:[#allocation3 + $0x2c] sm:$0xf] %v1000_v29  ;;  %v1376_v59 = vor.u32 %v1374_v12, %v1373_v32  ;;  %v1382_v42 = vrot.slane %v1380_v22, 7  ;;  %v3554_v17 = vrot.slane %v1389_v2, 7  ;;  %v1378_v12 = vrot.slane %v1373_v32, 4 }
  0xb6   : > { %v1007_v31 = vshll.u32 %v2394_v41, 16  ;;  %v1011_v0 = vshrl.u32 %v2394_v41, 16  ;;  %v1017_v61 = vshll.u32 %v3547_v15, 16  ;;  %v585_v56 = vpop.permute.xlu1 %584  ;;  %v1021_v10 = vshrl.u32 %v3547_v15, 16 }
  0xb7   : > { %v1377_v50 = vsel %vm3108_vm11, %v2434_v5, %v1376_v59  ;;  %v600_v39 = vsel %vm588_vm2, %v3460_v54, %v585_v56  ;;  %v1385_v8 = vor.u32 %v1383_v47, %v1382_v42  ;;  %v1387_v13 = vrot.slane %v1382_v42, 4  ;;  %v2679_v47 = vld [vmem:[#allocation3 + $0x28] ss:$20 sps:$4 sm:$0xff]   ;;  %v3603_v42 = vld [vmem:[%s3728_s1 + $0x100] sm:$0xff]  }
  0xb8   : > { %1449 = vst [vmem:[#allocation3 + $0xc] sm:$0xf] %v1377_v50  ;;  %v1009_v1 = vrot.slane %v1007_v31, 5  ;;  %v1013_v19 = vrot.slane %v1011_v0, 4  ;;  %v3560_v30 = vrot.slane %v1017_v61, 5  ;;  %v2376_v27 = vcombine.low %v600_v39, %v600_v39  ;;  %v3831_v61 = vld [vmem:[#allocation7_spill] sm:$0xff] }
  0xb9   : > { %v2667_v37 = vld [vmem:[#allocation3 + $0x4] ss:$20 sps:$4 sm:$0xff]   ;;  %v1394_v25 = vor.u32 %v1392_v38, %v3554_v17  ;;  %v2377_v40 = vcombine.high %v600_v39, %v600_v39  ;;  %v1386_v33 = vsel %vm3108_vm11, %v1378_v12, %v1385_v8  ;;  %v679_v15 = vrot.slane %v3537_v23, 4  ;;  %v2709_v31 = vld [vmem:[#allocation2 + $0x18] sm:$0xf] }
  0xba   : > { %v1010_v52 = vsel %vm2853_vm12, %v1005_v24, %v1009_v1  ;;  %v1014_v53 = vor.u32 %v1013_v19, %v1009_v1  ;;  %v681_v5 = vshrl.u32 %v2376_v27, 16  ;;  %2031 = vmatprep.mubr.bf16.mxu0 %v2667_v37  ;;  %v684_v29 = vshll.u32 %v2376_v27, 16  ;;  %1450 = vst [vmem:[#allocation3 + $0x20] sm:$0xf] %v1386_v33  ;;  %v3591_v23 = vld [vmem:[%s3728_s1 + $0x108] sm:$0xff]  }
  0xbb   : > { %1062 = vst [vmem:[#allocation3 + $0x40] sm:$0xf] %v1010_v52  ;;  %v1395_v32 = vsel %vm3108_vm11, %v1387_v13, %v1394_v25  ;;  %2032 = vmatmul.mubr.bf16.vlgmr.msra.gmra.mxu0 %v2665_v36  ;;  %v690_v45 = vshrl.u32 %v2377_v40, 16  ;;  %v693_v20 = vshll.u32 %v2377_v40, 16  ;;  %v1234_v0 = vsel %vm2961_vm14, %v2709_v31, 0 }
  0xbc   : > { %v1015_v54 = vrot.slane %v1014_v53, 4  ;;  %1451 = vst [vmem:[#allocation3 + $0x34] sm:$0xf] %v1395_v32  ;;  %v683_v59 = vrot.slane %v681_v5, 7  ;;  %2596 = vmatpush3.bf16.msra.mxu0 %v3352_v21  ;;  %v1235_v56 = vsel %vm2977_vm0, %v3831_v61, 0  ;;  %v1023_v2 = vrot.slane %v1021_v10, 4 }
  0xbd   : > { %2597 = vmatprep.subr.bf16.mxu0 %v3566_v60  ;;  %v3593_v26 = vrot.slane %v690_v45, 7  ;;  %v2418_v1 = vcombine.low %v1234_v0, %v1235_v56  ;;  %v730_v39 = vld [vmem:[#allocation2 + $0x24] sm:$0x1]  ;;  %vm2252_vm0 = vcmask 1040384  }
  0xbe   : > { %v1166_v41 = vpop.permute.xlu0 %1165  ;;  %v1020_v62 = vsel %vm2853_vm12, %v1015_v54, %v3560_v30  ;;  %v686_v50 = vor.u32 %v684_v29, %v683_v59  ;;  %v688_v22 = vrot.slane %v683_v59, 4  ;;  %v1024_v52 = vor.u32 %v1023_v2, %v3560_v30 }
  0xbf   : > { %1063 = vst [vmem:[#allocation3 + $0x54] sm:$0xf] %v1020_v62  ;;  %v1175_v24 = vsel %vm588_vm2, %v2399_v3, %v1166_v41  ;;  %v695_v46 = vor.u32 %v693_v20, %v3593_v26  ;;  %v851_v12 = vsel %vm3385_vm10, %v730_v39, 0  ;;  %v2365_v30 = vcombine.low %v3471_v58, %v3471_v58 }
  0xc0   : > { %v2408_v48 = vcombine.low %v1175_v24, %v1175_v24  ;;  %v2409_v3 = vcombine.high %v1175_v24, %v1175_v24  ;;  %v687_v9 = vsel %vm3108_vm11, %v679_v15, %v686_v50  ;;  %2598 = vmatpush3.bf16.msra.mxu0 %v3566_v60  ;;  %v1025_v40 = vrot.slane %v1024_v52, 4 }
  0xc1   : > { %719 = vst [vmem:[#allocation3 + $0x64] sm:$0xf] %v687_v9  ;;  %2599 = vmatprep.subr.bf16.mxu0 %v3591_v23  ;;  %v696_v38 = vsel %vm3108_vm11, %v688_v22, %v695_v46  ;;  %v2384_v33 = vcombine.low %v851_v12, %v851_v12  ;;  %v2677_v11 = vld [vmem:[#allocation3 + $0xc] ss:$20 sps:$4 sm:$0xff]   ;;  %v1396_v58 = vrot.slane %v3554_v17, 4 }
  0xc2   : > { %1213 = vst [vmem:[#allocation3 + $0x8] sm:$0xf] %v2408_v48  ;;  %v2672_v19 = vld [vmem:[#allocation3 + $0x2c] ss:$20 sps:$4 sm:$0xff]   ;;  %1214 = vst [vmem:[#allocation3 + $0x1c] sm:$0xf] %v2409_v3  ;;  %2096 = vmatprep.mubr.bf16.mxu1 %v2677_v11 }
  0xc3   : > { %2039 = vmatprep.mubr.bf16.mxu0 %v2672_v19  ;;  %720 = vst [vmem:[#allocation3 + $0x78] sm:$0xf] %v696_v38  ;;  %v2420_v19 = vcombine.low %v3486_v16, %v3486_v16 }
  0xc4   : > { %2040 = vmatmul.mubr.bf16.gmra.mxu0 %v2679_v47 }
  0xc5   : > { %2600 = vmatpush3.bf16.msra.mxu0 %v3591_v23 }
  0xc6   : > { %2601 = vmatprep.subr.bf16.mxu0 %v3603_v42 }
  0xc7   : > { %v1322_v36 = vpop.permute.xlu0 %1321 }
  0xc8   : > { %v1335_v53 = vsel %vm588_vm2, %v2418_v1, %v1322_v36 }
  0xc9   : > { %v2429_v27 = vcombine.low %v1335_v53, %v1335_v53  ;;  %v2430_v37 = vcombine.high %v1335_v53, %v1335_v53  ;;  %v2675_v32 = vld [vmem:[#allocation3 + $0x8] ss:$20 sps:$4 sm:$0xff]   ;;  %2602 = vmatpush3.bf16.msra.mxu0 %v3603_v42 }
  0xca   : > { %2097 = vmatmul.mubr.bf16.vlgmr.msra.gmra.mxu1 %v2675_v32 }
  0xcb   : > { %v926_v8 = vpop.permute.xlu1 %925  ;;  %v1398_v25 = vshrl.u32 %v2429_v27, 16  ;;  %v1407_v54 = vshrl.u32 %v2430_v37, 16  ;;  %v1401_v41 = vshll.u32 %v2429_v27, 16  ;;  %v1410_v35 = vshll.u32 %v2430_v37, 16  ;;  %2615 = vmatpush3.bf16.msra.mxu1 %v3352_v21 }
  0xcc   : > { %v940_v13 = vsel %vm588_vm2, %v2383_v14, %v926_v8  ;;  %2612 = vmatprep.subr.bf16.mxu1 %v3566_v60 }
  0xcd   : > { %v2396_v5 = vcombine.low %v940_v13, %v940_v13  ;;  %v2397_v10 = vcombine.high %v940_v13, %v940_v13  ;;  %v1400_v29 = vrot.slane %v1398_v25, 7  ;;  %v3620_v62 = vrot.slane %v1407_v54, 7 }
  0xce   : > { %v697_v54 = vrot.slane %v3593_v26, 4 }
  0xcf   : > { %v1027_v55 = vshll.u32 %v2396_v5, 16  ;;  %v1031_v14 = vshrl.u32 %v2396_v5, 16  ;;  %v1037_v59 = vshll.u32 %v2397_v10, 16  ;;  %v1041_v45 = vshrl.u32 %v2397_v10, 16  ;;  %v587_v20 = vpop.permute.xlu1 %586  ;;  %2616 = vmatpush3.bf16.msra.mxu1 %v3566_v60 }
  0xd0   : > { %v1403_v15 = vor.u32 %v1401_v41, %v1400_v29  ;;  %v1405_v24 = vrot.slane %v1400_v29, 4  ;;  %v1412_v31 = vor.u32 %v1410_v35, %v3620_v62  ;;  %v603_v3 = vsel %vm588_vm2, %v2365_v30, %v587_v20  ;;  %2613 = vmatprep.subr.bf16.mxu1 %v3591_v23  ;;  %v2685_v41 = vld [vmem:[#allocation3 + $0x50] ss:$20 sps:$4 sm:$0xff]  }
  0xd1   : > { %v1029_v0 = vrot.slane %v1027_v55, 5  ;;  %v1033_v61 = vrot.slane %v1031_v14, 4  ;;  %v1039_v56 = vrot.slane %v1037_v59, 5  ;;  %v1043_v50 = vrot.slane %v1041_v45, 4 }
  0xd2   : > { %v1404_v22 = vsel %vm3108_vm11, %v1396_v58, %v1403_v15  ;;  %v1413_v48 = vsel %vm3108_vm11, %v1405_v24, %v1412_v31  ;;  %v2378_v9 = vcombine.low %v603_v3, %v603_v3  ;;  %v1414_v20 = vrot.slane %v3620_v62, 4 }
  0xd3   : > { %v1030_v17 = vsel %vm2853_vm12, %v1025_v40, %v1029_v0  ;;  %v1034_v2 = vor.u32 %v1033_v61, %v1029_v0  ;;  %1452 = vst [vmem:[#allocation3 + $0x48] sm:$0xf] %v1404_v22  ;;  %1453 = vst [vmem:[#allocation3 + $0x5c] sm:$0xf] %v1413_v48  ;;  %v928_v46 = vpop.permute.xlu1 %927  ;;  %v1044_v1 = vor.u32 %v1043_v50, %v1039_v56  ;;  %2617 = vmatpush3.bf16.msra.mxu1 %v3591_v23 }
  0xd4   : > { %1064 = vst [vmem:[#allocation3 + $0x68] sm:$0xf] %v1030_v17  ;;  %v943_v21 = vsel %vm588_vm2, %v2384_v33, %v928_v46  ;;  %v699_v38 = vshrl.u32 %v2378_v9, 16  ;;  %v702_v39 = vshll.u32 %v2378_v9, 16  ;;  %2614 = vmatprep.subr.bf16.mxu1 %v3603_v42  ;;  %v2698_v46 = vld [vmem:[#allocation3 + $0x38] ss:$20 sps:$4 sm:$0xff]  }
  0xd5   : > { %v1035_v47 = vrot.slane %v1034_v2, 4  ;;  %v1168_v36 = vpop.permute.xlu0 %1167  ;;  %v2398_v53 = vcombine.low %v943_v21, %v943_v21  ;;  %v1045_v13 = vrot.slane %v1044_v1, 4 }
  0xd6   : > { %v1178_v52 = vsel %vm588_vm2, %v2400_v6, %v1168_v36  ;;  %v701_v37 = vrot.slane %v699_v38, 7 }
  0xd7   : > { %v1040_v27 = vsel %vm2853_vm12, %v1035_v47, %v1039_v56  ;;  %v2410_v12 = vcombine.low %v1178_v52, %v1178_v52  ;;  %v2411_v16 = vcombine.high %v1178_v52, %v1178_v52  ;;  %v1326_v8 = vpop.permute.xlu1 %1325  ;;  %v1047_v25 = vshll.u32 %v2398_v53, 16  ;;  %2618 = vmatpush3.bf16.msra.mxu1 %v3603_v42 }
  0xd8   : > { %1065 = vst [vmem:[#allocation3 + $0x7c] sm:$0xf] %v1040_v27  ;;  %v1341_v60 = vsel %vm588_vm2, %v2420_v19, %v1326_v8  ;;  %v704_v43 = vor.u32 %v702_v39, %v701_v37 }
  0xd9   : > { %1215 = vst [vmem:[#allocation3 + $0x30] sm:$0xf] %v2410_v12  ;;  %1216 = vst [vmem:[#allocation3 + $0x44] sm:$0xf] %v2411_v16  ;;  %v1324_v18 = vpop.permute.xlu0 %1323  ;;  %v2433_v6 = vcombine.low %v1341_v60, %v1341_v60  ;;  %v1049_v30 = vrot.slane %v1047_v25, 5 }
  0xda   : > { %v1338_v40 = vsel %vm588_vm2, %v3481_v4, %v1324_v18  ;;  %v705_v5 = vsel %vm3108_vm11, %v697_v54, %v704_v43  ;;  %v2682_v15 = vld [vmem:[#allocation3 + $0x34] ss:$20 sps:$4 sm:$0xff]  }
  0xdb   : > { %v2431_v10 = vcombine.low %v1338_v40, %v1338_v40  ;;  %v2432_v33 = vcombine.high %v1338_v40, %v1338_v40  ;;  %v1434_v32 = vshrl.u32 %v2433_v6, 16  ;;  %v2680_v26 = vld [vmem:[#allocation3 + $0x54] ss:$20 sps:$4 sm:$0xff]   ;;  %721 = vst [vmem:[#allocation3 + $0x8c] sm:$0xf] %v705_v5  ;;  %v1050_v11 = vsel %vm2853_vm12, %v1045_v13, %v1049_v30  ;;  %2104 = vmatprep.mubr.bf16.mxu1 %v2682_v15 }
  0xdc   : > { %v1437_v29 = vshll.u32 %v2433_v6, 16  ;;  %1066 = vst [vmem:[#allocation3 + $0x90] sm:$0xf] %v1050_v11  ;;  %2047 = vmatprep.mubr.bf16.mxu0 %v2680_v26  ;;  %vm2254_vm12 = vcmask 1041408  }
  0xdd   : > { %v1416_v23 = vshrl.u32 %v2431_v10, 16  ;;  %v1425_v35 = vshrl.u32 %v2432_v33, 16  ;;  %v1436_v4 = vrot.slane %v1434_v32, 7  ;;  %2048 = vmatmul.mubr.bf16.gmra.mxu0 %v2685_v41  ;;  %v1419_v14 = vshll.u32 %v2431_v10, 16 }
  0xde   : > { %v1428_v45 = vshll.u32 %v2432_v33, 16 }
  0xdf   : > { %v1418_v55 = vrot.slane %v1416_v23, 7  ;;  %v1427_v59 = vrot.slane %v1425_v35, 7  ;;  %v1439_v58 = vor.u32 %v1437_v29, %v1436_v4 }
  0xe0   : > { %v2686_v56 = vld [vmem:[#allocation3 + $0x30] ss:$20 sps:$4 sm:$0xff]  }
  0xe1   : > { %v1421_v63 = vor.u32 %v1419_v14, %v1418_v55  ;;  %v1423_v24 = vrot.slane %v1418_v55, 4  ;;  %v1430_v31 = vor.u32 %v1428_v45, %v1427_v59  ;;  %v1432_v0 = vrot.slane %v1427_v59, 4  ;;  %v1170_v61 = vpop.permute.xlu0 %1169  ;;  %2105 = vmatmul.mubr.bf16.gmra.mxu1 %v2686_v56 }
  0xe2   : > { %v1181_v42 = vsel %vm588_vm2, %v2401_v7, %v1170_v61  ;;  %v2692_v7 = vld [vmem:[#allocation3 + $0x78] ss:$20 sps:$4 sm:$0xff]  }
  0xe3   : > { %v1422_v50 = vsel %vm3108_vm11, %v1414_v20, %v1421_v63  ;;  %v1431_v62 = vsel %vm3108_vm11, %v1423_v24, %v1430_v31  ;;  %v1440_v22 = vsel %vm3108_vm11, %v1432_v0, %v1439_v58  ;;  %v2412_v48 = vcombine.low %v1181_v42, %v1181_v42  ;;  %v2687_v17 = vld [vmem:[#allocation3 + $0x7c] ss:$20 sps:$4 sm:$0xff]  }
  0xe4   : > { %1454 = vst [vmem:[#allocation3 + $0x70] sm:$0xf] %v1422_v50  ;;  %1455 = vst [vmem:[#allocation3 + $0x84] sm:$0xf] %v1431_v62  ;;  %v2413_v3 = vcombine.high %v1181_v42, %v1181_v42  ;;  %2055 = vmatprep.mubr.bf16.mxu0 %v2687_v17 }
  0xe5   : > { %1456 = vst [vmem:[#allocation3 + $0x98] sm:$0xf] %v1440_v22  ;;  %1217 = vst [vmem:[#allocation3 + $0x58] sm:$0xf] %v2412_v48  ;;  %v1172_v44 = vpop.permute.xlu0 %1171  ;;  %2056 = vmatmul.mubr.bf16.gmra.mxu0 %v2692_v7 }
  0xe6   : > { %1218 = vst [vmem:[#allocation3 + $0x6c] sm:$0xf] %v2413_v3  ;;  %v1184_v2 = vsel %vm588_vm2, %v2402_v49, %v1172_v44  ;;  %2603 = vmatprep.mubr.msk.bf16.mxu0 %vm588_vm2, %v2696_v28  ;;  %v2700_v49 = vld [vmem:[#allocation3 + $0x88] ss:$20 sps:$4 sm:$0xff]  }
  0xe7   : > { %v2414_v51 = vcombine.low %v1184_v2, %v1184_v2  ;;  %v2415_v9 = vcombine.high %v1184_v2, %v1184_v2 }
  0xe9   : > { %1219 = vst [vmem:[#allocation3 + $0x80] sm:$0xf] %v2414_v51  ;;  %1220 = vst [vmem:[#allocation3 + $0x94] sm:$0xf] %v2415_v9 }
  0xeb   : > { %v2689_v1 = vld [vmem:[#allocation3 + $0x5c] ss:$20 sps:$4 sm:$0xff]  }
  0xec   : > { %2112 = vmatprep.mubr.bf16.mxu1 %v2689_v1  ;;  %v2694_v19 = vld [vmem:[#allocation3 + $0x84] ss:$20 sps:$4 sm:$0xff]  }
  0xed   : > { %v2693_v21 = vld [vmem:[#allocation3 + $0x58] ss:$20 sps:$4 sm:$0xff]   ;;  %2604 = vmatmul.mubr.msk.bf16.vlgmr.msra.gmra.mxu0 %vm588_vm2, %v2698_v46 }
  0xee   : > { %2113 = vmatmul.mubr.bf16.gmra.mxu1 %v2693_v21 }
  0xef   : > { %2120 = vmatprep.mubr.bf16.mxu1 %v2694_v19 }
  0xf0   : > { %v2697_v34 = vld [vmem:[#allocation3 + $0x80] ss:$20 sps:$4 sm:$0xff]  }
  0xf6   : > { %2121 = vmatmul.mubr.bf16.gmra.mxu1 %v2697_v34 }
  0xf7   : > { %2607 = vmatprep.mubr.msk.bf16.mxu1 %vm588_vm2, %v2699_v57 }
  0xfe   : > { %2608 = vmatmul.mubr.msk.bf16.vlgmr.msra.gmra.mxu1 %vm588_vm2, %v2700_v49 }
 0x17b   : > { %v2523_v47 = vpop.f32.mrf.mxu0 }
 0x17d   : > { %v2524_v38 = vpop.f32.mrf.mxu0 }
 0x17e   : > { %v2525_v41 = vadd.f32 %v2524_v38, %v2523_v47 }
 0x17f   : > { %v2526_v39 = vpop.f32.mrf.mxu0 }
 0x181   : > { %v2527_v36 = vpop.f32.mrf.mxu0 }
 0x182   : > { %v2528_v15 = vadd.f32 %v2527_v36, %v2526_v39 }
 0x184   : > { %v2529_v52 = vpop.f32.mrf.mxu0 }
 0x186   : > { %v2530_v53 = vpop.f32.mrf.mxu0 }
 0x187   : > { %v2531_v26 = vadd.f32 %v2530_v53, %v2529_v52 }
 0x188   : > { %v2532_v37 = vpop.f32.mrf.mxu0 }
 0x18a   : > { %v2563_v27 = vpop.f32.mrf.mxu1  ;;  %v2533_v16 = vpop.f32.mrf.mxu0 }
 0x18b   : > { %v2534_v55 = vadd.f32 %v2533_v16, %v2532_v37 }
 0x18c   : > { %v2564_v12 = vpop.f32.mrf.mxu1 }
 0x18d   : > { %v2565_v11 = vadd.f32 %v2564_v12, %v2563_v27 }
 0x18e   : > { %v2566_v8 = vpop.f32.mrf.mxu1 }
 0x18f   : > { %v2099_v20 = vadd.f32 %v2565_v11, %v2525_v41 }
 0x190   : > { %v2567_v25 = vpop.f32.mrf.mxu1 }
 0x191   : > { %v2568_v14 = vadd.f32 %v2567_v25, %v2566_v8 }
 0x193   : > { %v2102_v42 = vadd.f32 %v2568_v14, %v2528_v15 }
 0x19d   : > { %v2535_v13 = vpop.f32.mrf.mxu0 }
 0x19f   : > { %v2536_v60 = vpop.f32.mrf.mxu0 }
 0x1a0   : > { %v2537_v47 = vadd.f32 %v2536_v60, %v2535_v13 }
 0x1a1   : > { %v3674_v54 = vpop.f32.mrf.mxu0  ;;  %v2569_v43 = vpop.f32.mrf.mxu1 }
 0x1a3   : > { %v3676_v18 = vpop.f32.mrf.mxu0  ;;  %v2570_v6 = vpop.f32.mrf.mxu1 }
 0x1a4   : > { %v2571_v10 = vadd.f32 %v2570_v6, %v2569_v43  ;;  %v2540_v13 = vadd.f32 %v3676_v18, %v3674_v54 }
 0x1a5   : > { %v2572_v30 = vpop.f32.mrf.mxu1  ;;  %v2541_v40 = vpop.f32.mrf.mxu0 }
 0x1a6   : > { %v2107_v35 = vadd.f32 %v2571_v10, %v2531_v26 }
 0x1a7   : > { %v2542_v5 = vpop.f32.mrf.mxu0  ;;  %v2573_v33 = vpop.f32.mrf.mxu1 }
 0x1a8   : > { %v2574_v23 = vadd.f32 %v2573_v33, %v2572_v30  ;;  %v2543_v57 = vadd.f32 %v2542_v5, %v2541_v40 }
 0x1a9   : > { %v2544_v32 = vpop.f32.mrf.mxu0 }
 0x1aa   : > { %v2110_v31 = vadd.f32 %v2574_v23, %v2534_v55 }
 0x1ab   : > { %v2545_v29 = vpop.f32.mrf.mxu0 }
 0x1ac   : > { %v2546_v37 = vadd.f32 %v2545_v29, %v2544_v32 }
 0x1ad   : > { %v2605_v4 = vpop.f32.mrf.mxu0 }
 0x1ae   : > { %v2575_v59 = vpop.f32.mrf.mxu1  ;;  %v2172_v45 = vadd.f32 %v2605_v4, %v2107_v35 }
 0x1af   : > { %v2163_v58 = vpop.f32.mrf.mxu0 }
 0x1b0   : > { %v2576_v63 = vpop.f32.mrf.mxu1  ;;  %2196 = vst.msk [vmem:[%s3683_s22 + $0x10] sm:$0xff] %vm588_vm2, %v2172_v45  ;;  %v2164_v24 = vadd.f32 %v2163_v58, %v2099_v20  ;;  %v2225_v9 = vmul.f32 %v2172_v45, %v2172_v45  ;;  %v2205_v49 = vsel %vm588_vm2, %v2172_v45, 0.0 }
 0x1b1   : > { %v2606_v0 = vpop.f32.mrf.mxu0  ;;  %v2577_v34 = vadd.f32 %v2576_v63, %v2575_v59 }
 0x1b2   : > { %v2578_v61 = vpop.f32.mrf.mxu1  ;;  %2194 = vst.msk [vmem:[%s3683_s22] sm:$0xff] %vm588_vm2, %v2164_v24  ;;  %v2175_v56 = vadd.f32 %v2606_v0, %v2110_v31  ;;  %v2223_v48 = vmul.f32 %v2164_v24, %v2164_v24  ;;  %v2202_v44 = vsel %vm588_vm2, %v2164_v24, 0.0  ;;  %v2234_v36 = vsel %vm588_vm2, %v2225_v9, 0.0 }
 0x1b3   : > { %v2166_v50 = vpop.f32.mrf.mxu0  ;;  %v2115_v6 = vadd.f32 %v2577_v34, %v2537_v47 }
 0x1b4   : > { %v2579_v62 = vpop.f32.mrf.mxu1  ;;  %2197 = vst.msk [vmem:[%s3683_s22 + $0x18] sm:$0xff] %vm588_vm2, %v2175_v56  ;;  %v2167_v22 = vadd.f32 %v2166_v50, %v2102_v42  ;;  %v2231_v1 = vsel %vm588_vm2, %v2223_v48, 0.0  ;;  %v2226_v52 = vmul.f32 %v2175_v56, %v2175_v56  ;;  %v2207_v25 = vsel %vm588_vm2, %v2175_v56, 0.0 }
 0x1b5   : > { %v2580_v8 = vadd.f32 %v2579_v62, %v2578_v61 }
 0x1b6   : > { %v2581_v3 = vpop.f32.mrf.mxu1  ;;  %2195 = vst.msk [vmem:[%s3683_s22 + $0x8] sm:$0xff] %vm588_vm2, %v2167_v22  ;;  %v2203_v17 = vsel %vm588_vm2, %v2167_v22, 0.0  ;;  %v2224_v28 = vmul.f32 %v2167_v22, %v2167_v22  ;;  %v2236_v60 = vsel %vm588_vm2, %v2226_v52, 0.0 }
 0x1b7   : > { %v2204_v2 = vadd.f32 %v2203_v17, %v2202_v44  ;;  %v2118_v41 = vadd.f32 %v2580_v8, %v2540_v13 }
 0x1b8   : > { %v2582_v7 = vpop.f32.mrf.mxu1  ;;  %v2232_v51 = vsel %vm588_vm2, %v2224_v28, 0.0 }
 0x1b9   : > { %v2583_v46 = vadd.f32 %v2582_v7, %v2581_v3  ;;  %v2233_v19 = vadd.f32 %v2232_v51, %v2231_v1  ;;  %v2206_v39 = vadd.f32 %v2205_v49, %v2204_v2 }
 0x1ba   : > { %v2584_v21 = vpop.f32.mrf.mxu1 }
 0x1bb   : > { %v2123_v27 = vadd.f32 %v2583_v46, %v2543_v57  ;;  %v2235_v12 = vadd.f32 %v2234_v36, %v2233_v19  ;;  %v2208_v40 = vadd.f32 %v2207_v25, %v2206_v39 }
 0x1bc   : > { %v2585_v38 = vpop.f32.mrf.mxu1 }
 0x1bd   : > { %v2586_v53 = vadd.f32 %v2585_v38, %v2584_v21  ;;  %v2237_v33 = vadd.f32 %v2236_v60, %v2235_v12 }
 0x1be   : > { %v2609_v16 = vpop.f32.mrf.mxu1 }
 0x1bf   : > { %v2188_v43 = vadd.f32 %v2609_v16, %v2123_v27  ;;  %v2126_v10 = vadd.f32 %v2586_v53, %v2546_v37 }
 0x1c0   : > { %v2179_v30 = vpop.f32.mrf.mxu1 }
 0x1c1   : > { %2200 = vst.msk [vmem:[%s3683_s22 + $0x30] sm:$0xff] %vm588_vm2, %v2188_v43  ;;  %v2180_v5 = vadd.f32 %v2179_v30, %v2115_v6  ;;  %v2229_v55 = vmul.f32 %v2188_v43, %v2188_v43  ;;  %v2213_v20 = vsel %vm588_vm2, %v2188_v43, 0.0 }
 0x1c2   : > { %v2610_v32 = vpop.f32.mrf.mxu1 }
 0x1c3   : > { %2198 = vst.msk [vmem:[%s3683_s22 + $0x20] sm:$0xff] %vm588_vm2, %v2180_v5  ;;  %v2209_v26 = vsel %vm588_vm2, %v2180_v5, 0.0  ;;  %v2227_v11 = vmul.f32 %v2180_v5, %v2180_v5  ;;  %v2191_v29 = vadd.f32 %v2610_v32, %v2126_v10  ;;  %v2242_v31 = vsel %vm588_vm2, %v2229_v55, 0.0 }
 0x1c4   : > { %v2210_v23 = vadd.f32 %v2209_v26, %v2208_v40  ;;  %v2182_v35 = vpop.f32.mrf.mxu1 }
 0x1c5   : > { %v2238_v54 = vsel %vm588_vm2, %v2227_v11, 0.0  ;;  %2201 = vst.msk [vmem:[%s3683_s22 + $0x38] sm:$0xff] %vm588_vm2, %v2191_v29  ;;  %v2183_v18 = vadd.f32 %v2182_v35, %v2118_v41  ;;  %v2230_v58 = vmul.f32 %v2191_v29, %v2191_v29  ;;  %v2215_v0 = vsel %vm588_vm2, %v2191_v29, 0.0 }
 0x1c6   : > { %v2239_v4 = vadd.f32 %v2238_v54, %v2237_v33 }
 0x1c7   : > { %2199 = vst.msk [vmem:[%s3683_s22 + $0x28] sm:$0xff] %vm588_vm2, %v2183_v18  ;;  %v2211_v14 = vsel %vm588_vm2, %v2183_v18, 0.0  ;;  %v2228_v59 = vmul.f32 %v2183_v18, %v2183_v18  ;;  %v2244_v42 = vsel %vm588_vm2, %v2230_v58, 0.0 }
 0x1c8   : > { %v2212_v45 = vadd.f32 %v2211_v14, %v2210_v23 }
 0x1c9   : > { %v2240_v15 = vsel %vm588_vm2, %v2228_v59, 0.0 }
 0x1ca   : > { %v2214_v63 = vadd.f32 %v2213_v20, %v2212_v45  ;;  %v2241_v24 = vadd.f32 %v2240_v15, %v2239_v4 }
 0x1cc   : > { %v2216_v61 = vadd.f32 %v2215_v0, %v2214_v63  ;;  %v2243_v56 = vadd.f32 %v2242_v31, %v2241_v24 }
 0x1ce   : > { %v2217_v50 = vrot.slane %v2216_v61, 4  ;;  %v2245_v62 = vadd.f32 %v2244_v42, %v2243_v56 }
 0x1d0   : > { %v2218_v22 = vadd.f32 %v2217_v50, %v2216_v61  ;;  %v2246_v48 = vrot.slane %v2245_v62, 4 }
 0x1d2   : > { %v2219_v3 = vrot.slane %v2218_v22, 2  ;;  %v2247_v17 = vadd.f32 %v2246_v48, %v2245_v62 }
 0x1d4   : > { %v2220_v28 = vadd.f32 %v2219_v3, %v2218_v22  ;;  %v2248_v44 = vrot.slane %v2247_v17, 2 }
 0x1d6   : > { %v2221_v7 = vrot.slane %v2220_v28, 1  ;;  %v2249_v2 = vadd.f32 %v2248_v44, %v2247_v17 }
 0x1d8   : > { %v2250_v51 = vrot.slane %v2249_v2, 1  ;;  %v2222_v9 = vadd.f32 %v2221_v7, %v2220_v28 }
 0x1da   : > { %v2251_v46 = vadd.f32 %v2250_v51, %v2249_v2 }
 0x1dc   : > { %v2253_v1 = vsel %vm2252_vm0, %v2222_v9, %v2251_v46 }
 0x1dd   : > { %v2255_v21 = vsel %vm2254_vm12, %v2253_v1, 0.0 }
 0x1de   : > { %2256 = vst.msk [vmem:[%s181_s25] sm:$0xff] %vm588_vm2, %v2255_v21 }
 0x1df PF: > { %s14_s12 = sadd.s32 1, %s2716_s12  }
 0x1e0   : > { %p11_p4 = scmp.ge.s32.totalorder %s14_s12, 4  }
 0x1e2   :  { %13 = sbr.rel (!%p11_p4) target bundleno = 1 (0x1), region = 70 }

// kernel: generator_residual_block.4
= control target key start
LH: loop header
LB: loop body
LE: loop exit
PB: predicated region body
PF: predicated region fallthrough
CT: control target
= control target key end

     0   :  { %s2902_s21 = smov 0   ;;  %s3966_s0 = inlined_call_operand.vmem [shape: f32[2,64,64], index: 0, kind: input, shape index: {}]   ;;  %s3967_s1 = inlined_call_operand.vmem [shape: f32[1,64], index: 1, kind: input, shape index: {}]   ;;  %s3968_s2 = inlined_call_operand.vmem [shape: f32[1,64], index: 2, kind: input, shape index: {}]   ;;  %s3969_s3 = inlined_call_operand.vmem [shape: f32[1,64], index: 3, kind: input, shape index: {}]   ;;  %s3970_s4 = inlined_call_operand.vmem [shape: bf16[576,64], index: 4, kind: input, shape index: {}]   ;;  %s3971_s5 = inlined_call_operand.vmem [shape: f32[2,64,64], index: 5, kind: output, shape index: {0}]   ;;  %s3972_s6 = inlined_call_operand.vmem [shape: f32[2,8,64], index: 6, kind: output, shape index: {1}]  }
   0x1 LB: > { %s2485_s22 = sadd.s32 4294967295, %s2863_s21   ;;  %p2489_p0 = scmp.ge.s32.totalorder %s2863_s21, 1  ;;  %s2863_s21 = sphi %s2902_s21, %s17_s21  }
   0x2   : > { %p215_p1 = scmp.lt.s32.totalorder %s2863_s21, 3 }
   0x4   : > { %p216_p2 = pnand %p2489_p0, %p215_p1 }
   0x6   : > { %219 = sbr.rel (%p216_p2) target bundleno = 490 (0x1ea), region = 40 }
   0xb   : > { %p249_p3 = scmp.lt.s32.totalorder %s2485_s22, 1  ;;  %vm3975_vm0 = vcmask 519168   ;;  %v271_v0 = vlaneseq  ;;  %v3980_v1 = vmov 0   ;;  %v2782_v3 = vld [vmem:[%s3970_s4 + $0x78] sm:$0xff]   ;;  %v2928_v4 = vld [vmem:[%s3967_s1] ss:$0 sm:$0xff] }
   0xc   : > { %268 = vst.msk [vmem:[#allocation2 + $0x4] sm:$0xf] %vm3975_vm0, %v3980_v1  ;;  %267 = vst.msk [vmem:[#allocation2] sm:$0xf] %vm3975_vm0, %v3980_v1  ;;  %2652 = vmatprep.subr.bf16.mxu0 %v2782_v3  ;;  %v2783_v9 = vld [vmem:[%s3970_s4 + $0x38] sm:$0xff]   ;;  %v2784_v40 = vld [vmem:[%s3970_s4 + $0x70] sm:$0xff]  }
   0xd   : > { %269 = vst.msk [vmem:[#allocation2 + $0x28] sm:$0xf] %vm3975_vm0, %v3980_v1  ;;  %270 = vst.msk [vmem:[#allocation2 + $0x2c] sm:$0xf] %vm3975_vm0, %v3980_v1  ;;  %s4092_s22 = smov (!%p249_p3, %s2485_s22), 1  ;;  %v2920_v2 = vshrl.u32 %v271_v0, 7  ;;  %2653 = vmatpush3.bf16.msra.mxu0 %v2783_v9 }
   0xe   : > { %s2642_s27 = sshll.u32 %s4092_s22, 6  ;;  %v2954_v10 = vld [vmem:[%s3968_s2] ss:$0 sm:$0xff]  ;;  %vm3974_vm3 = vsmask.f32 3328  ;;  %2654 = vmatprep.subr.bf16.mxu0 %v2784_v40  ;;  %v2785_v58 = vld [vmem:[%s3970_s4 + $0x30] sm:$0xff]  }
   0xf   : > { %v2932_v5 = vadd.s32 8, %v2920_v2  ;;  %v2935_v6 = vadd.s32 16, %v2920_v2  ;;  %v2938_v7 = vadd.s32 24, %v2920_v2  ;;  %v284_v8 = vand.u32 7, %v2920_v2  ;;  %s2949_s8 = scalar_lea.vmem %s3966_s0, %s2642_s27  ;;  %v2996_v24 = vld [vmem:[%s3969_s3] ss:$0 sm:$0xff]  ;;  %s3922_s25 = scalar_lea.vmem %s3971_s5, %s2642_s27 }
  0x10   : > { %v2957_v11 = vadd.s32 32, %v2920_v2  ;;  %v2960_v12 = vadd.s32 40, %v2920_v2  ;;  %v392_v17 = vld [vmem:[%s2949_s8] sm:$0xff]  ;;  %v393_v18 = vld [vmem:[%s2949_s8 + $0x8] sm:$0xff]  ;;  %v394_v19 = vld [vmem:[%s2949_s8 + $0x10] sm:$0xff]  ;;  %v2999_v25 = vadd.s32 48, %v2920_v2 }
  0x11   : > { %v291_v13 = vand.u32 7, %v2932_v5  ;;  %v298_v14 = vand.u32 7, %v2935_v6  ;;  %v305_v15 = vand.u32 7, %v2938_v7  ;;  %vm2967_vm1 = vcmp.gt.s32.totalorder %v284_v8, 0  ;;  %v395_v53 = vld [vmem:[%s2949_s8 + $0x18] sm:$0xff]  ;;  %v396_v63 = vld [vmem:[%s2949_s8 + $0x20] sm:$0xff]  ;;  %2655 = vmatpush3.bf16.msra.mxu0 %v2785_v58 }
  0x12   : > { %v407_v20 = vmul.f32 %v2928_v4, %v392_v17  ;;  %v408_v21 = vmul.f32 %v2928_v4, %v393_v18  ;;  %vm526_vm2 = vmpackc.low %vm2967_vm1, %vm2967_vm1  ;;  %vm543_vm4 = vsmask.f32 7440  ;;  %v409_v26 = vmul.f32 %v2928_v4, %v394_v19  ;;  %s2866_s23 = smov 64   ;;  %v2794_v5 = vld [vmem:[%s3970_s4 + $0x58] sm:$0xff]   ;;  %s2494_s27 = sshll.u32 %s4092_s22, 3 }
  0x13   : > { %vm377_vm5 = vcmp.gt.s32.totalorder %v291_v13, 0  ;;  %vm2983_vm6 = vcmp.gt.s32.totalorder %v298_v14, 0  ;;  %vm2989_vm7 = vcmp.gt.s32.totalorder %v305_v15, 0  ;;  %v3983_v28 = vand.u32 7, %v2957_v11  ;;  %v994_v52 = vld [vmem:[#allocation2 + $0x4] sm:$0x8]  ;;  %vm3044_vm14 = vmor %vm3974_vm3, %vm543_vm4  ;;  %s262_s29 = scalar_lea.vmem %s3972_s6, %s2494_s27 }
  0x14   : > { %v422_v27 = vadd.f32 %v2954_v10, %v407_v20  ;;  %vm527_vm8 = vmpackc.low %vm377_vm5, %vm377_vm5  ;;  %v3005_v29 = vadd.s32 56, %v2920_v2  ;;  %v423_v30 = vadd.f32 %v2954_v10, %v408_v21  ;;  %v534_v31 = vsel %vm526_vm2, 65537, %v3980_v1  ;;  %v502_v21 = vld [vmem:[#allocation2 + $0x4] sm:$0xf] }
  0x15   : > { %vm528_vm9 = vmpackc.low %vm2983_vm6, %vm2983_vm6  ;;  %v535_v32 = vsel %vm527_vm8, 65537, %v3980_v1  ;;  %v3982_v33 = vand.u32 7, %v2960_v12  ;;  %v424_v34 = vadd.f32 %v2954_v10, %v409_v26  ;;  %v546_v39 = vshll.u32 %v534_v31, 16 }
  0x16   : > { %vm430_vm10 = vcmp.ge.f32.partialorder %v422_v27, 0.0  ;;  %v445_v35 = vmul.f32 %v2996_v24, %v422_v27  ;;  %vm529_vm11 = vmpackc.low %vm2989_vm7, %vm2989_vm7  ;;  %v536_v36 = vsel %vm528_vm9, 65537, %v3980_v1  ;;  %vm431_vm12 = vcmp.ge.f32.partialorder %v423_v30, 0.0 }
  0x17   : > { %v446_v37 = vmul.f32 %v2996_v24, %v423_v30  ;;  %v537_v38 = vsel %vm529_vm11, 65537, %v3980_v1  ;;  %vm432_vm13 = vcmp.ge.f32.partialorder %v424_v34, 0.0  ;;  %v447_v41 = vmul.f32 %v2996_v24, %v424_v34 }
  0x18   : > { %v453_v42 = vsel %vm430_vm10, %v422_v27, %v445_v35  ;;  %v549_v43 = vshrl.u32 %v534_v31, 16  ;;  %v3031_v46 = vrot.slane %v546_v39, 5  ;;  %v555_v47 = vshll.u32 %v535_v32, 16 }
  0x19   : > { %v454_v44 = vsel %vm431_vm12, %v423_v30, %v446_v37  ;;  %v2644_v45 = vpack.c.bf16 %v453_v42, %v453_v42  ;;  %v455_v48 = vsel %vm432_vm13, %v424_v34, %v447_v41  ;;  %v559_v51 = vshrl.u32 %v535_v32, 16 }
  0x1a   : > { %v2645_v49 = vpack.c.bf16 %v454_v44, %v454_v44  ;;  %v551_v50 = vrot.slane %v549_v43, 4  ;;  %v2646_v54 = vpack.c.bf16 %v455_v48, %v455_v48  ;;  %v557_v55 = vrot.slane %v555_v47, 5 }
  0x1b   : > { %493 = vst.msk [vmem:[#allocation2 + $0x8] sm:$0xf] %vm3975_vm0, %v2644_v45  ;;  %v565_v56 = vshll.u32 %v536_v36, 16  ;;  %v569_v57 = vshrl.u32 %v536_v36, 16  ;;  %v561_v60 = vrot.slane %v559_v51, 4  ;;  %v575_v61 = vshll.u32 %v537_v38, 16 }
  0x1c   : > { %494 = vst.msk [vmem:[#allocation2 + $0xc] sm:$0xf] %vm3975_vm0, %v2645_v49  ;;  %v552_v59 = vor.u32 %v551_v50, %v3031_v46  ;;  %v579_v62 = vshrl.u32 %v537_v38, 16  ;;  %495 = vst.msk [vmem:[#allocation2 + $0x10] sm:$0xf] %vm3975_vm0, %v2646_v54  ;;  %vm3973_vm15 = vcmp.ne.s16.totalorder %v3031_v46, 0  ;;  %v410_v26 = vmul.f32 %v2928_v4, %v395_v53 }
  0x1d   : > { %v567_v3 = vrot.slane %v565_v56, 5  ;;  %v571_v9 = vrot.slane %v569_v57, 4  ;;  %vm3051_vm1 = vcmp.gt.s32.totalorder %v3983_v28, 0  ;;  %v562_v18 = vor.u32 %v561_v60, %v557_v55 }
  0x1e   : > { %v553_v17 = vrot.slane %v552_v59, 4  ;;  %v577_v19 = vrot.slane %v575_v61, 5  ;;  %v581_v20 = vrot.slane %v579_v62, 4  ;;  %vm530_vm2 = vmpackc.low %vm3051_vm1, %vm3051_vm1  ;;  %v996_v23 = vsel %vm3973_vm15, %v994_v52, 0 }
  0x1f   : > { %v572_v22 = vor.u32 %v571_v9, %v567_v3  ;;  %vm3976_vm4 = vcmask 1044480   ;;  %vm381_vm5 = vcmp.gt.s32.totalorder %v3982_v33, 0  ;;  %v563_v30 = vrot.slane %v562_v18, 4 }
  0x20   : > { %v558_v27 = vsel %vm3044_vm14, %v553_v17, %v557_v55  ;;  %v411_v31 = vmul.f32 %v2928_v4, %v396_v63  ;;  %vm531_vm6 = vmpackc.low %vm381_vm5, %vm381_vm5  ;;  %v3067_v32 = vsel %vm530_vm2, 65537, %v3980_v1  ;;  %v425_v36 = vadd.f32 %v2954_v10, %v410_v26 }
  0x21   : > { %v573_v34 = vrot.slane %v572_v22, 4  ;;  %vm3069_vm7 = vcmp.ne.s16.totalorder %v558_v27, 0  ;;  %v3075_v37 = vsel %vm531_vm6, 65537, %v3980_v1  ;;  %v568_v38 = vsel %vm3044_vm14, %v563_v30, %v567_v3 }
  0x22   : > { %v865_v39 = vld [vmem:[#allocation2 + $0x8] sm:$0xf]  ;;  %v426_v41 = vadd.f32 %v2954_v10, %v411_v31  ;;  %v582_v42 = vor.u32 %v581_v20, %v577_v19  ;;  %v585_v43 = vshll.u32 %v3067_v32, 16  ;;  %vm3083_vm8 = vcmp.ne.s16.totalorder %v568_v38, 0 }
  0x23   : > { %v503_v40 = vld [vmem:[#allocation2 + $0x8] sm:$0xf]  ;;  %v578_v44 = vsel %vm3044_vm14, %v573_v34, %v577_v19  ;;  %v866_v47 = vld [vmem:[#allocation2 + $0xc] sm:$0xf]  ;;  %v997_v48 = vsel %vm3069_vm7, %v865_v39, 0  ;;  %v448_v56 = vmul.f32 %v2996_v24, %v425_v36  ;;  %vm433_vm10 = vcmp.ge.f32.partialorder %v425_v36, 0.0 }
  0x24   : > { %v504_v49 = vld [vmem:[#allocation2 + $0xc] sm:$0xf]  ;;  %v2511_v50 = vcombine.low %v502_v21, %v503_v40  ;;  %vm3089_vm9 = vcmp.ne.s16.totalorder %v578_v44, 0  ;;  %v867_v52 = vld [vmem:[#allocation2 + $0x10] sm:$0xf]  ;;  %v998_v53 = vsel %vm3083_vm8, %v866_v47, 0  ;;  %v2530_v54 = vcombine.low %v996_v23, %v997_v48 }
  0x25   : > { %v505_v55 = vld [vmem:[#allocation2 + $0x10] sm:$0xf]  ;;  %v999_v57 = vsel %vm3089_vm9, %v867_v52, 0  ;;  %vm434_vm11 = vcmp.ge.f32.partialorder %v426_v41, 0.0  ;;  %v449_v18 = vmul.f32 %v2996_v24, %v426_v41  ;;  %v456_v19 = vsel %vm433_vm10, %v425_v36, %v448_v56  ;;  %v1364_v27 = vld [vmem:[#allocation2 + $0xc] sm:$0xf] }
  0x26   : > { %v2512_v58 = vcombine.low %v504_v49, %v505_v55  ;;  %v686_v59 = vshrl.u32 %v2511_v50, 16  ;;  %v689_v60 = vshll.u32 %v2511_v50, 16  ;;  %v3098_v61 = vcombine.low %v998_v53, %v999_v57  ;;  %v1365_v30 = vld [vmem:[#allocation2 + $0x10] sm:$0xf]  ;;  %v397_v40 = vld [vmem:[%s2949_s8 + $0x28] sm:$0xff]  ;;  %v2789_v49 = vld [vmem:[%s3970_s4 + $0xb8] sm:$0xff]  }
  0x27   : > { %v1052_v62 = vrot.slane %v2530_v54, 3  ;;  %v583_v20 = vrot.slane %v582_v42, 4  ;;  %v2647_v26 = vpack.c.bf16 %v456_v19, %v456_v19  ;;  %v457_v34 = vsel %vm434_vm11, %v426_v41, %v449_v18  ;;  %v398_v44 = vld [vmem:[%s2949_s8 + $0x30] sm:$0xff]  ;;  %v2786_v36 = vld [vmem:[%s3970_s4 + $0x68] sm:$0xff]   ;;  %v2787_v42 = vld [vmem:[%s3970_s4 + $0xf8] sm:$0xff]  }
  0x28   : > { %v688_v63 = vrot.slane %v686_v59, 4  ;;  %v691_v3 = vrot.slane %v689_v60, 5  ;;  %v694_v9 = vshrl.u32 %v2512_v58, 16  ;;  %v697_v16 = vshll.u32 %v2512_v58, 16  ;;  %2656 = vmatprep.subr.bf16.mxu0 %v2786_v36  ;;  %2692 = vmatprep.subr.bf16.mxu1 %v2787_v42  ;;  %v399_v58 = vld [vmem:[%s2949_s8 + $0x38] sm:$0xff]  ;;  %v2791_v19 = vld [vmem:[%s3970_s4 + $0xf0] sm:$0xff]  }
  0x29   : > { %v1053_v17 = vrot.slane %v3098_v61, 3  ;;  %v587_v38 = vrot.slane %v585_v43, 5  ;;  %v589_v39 = vshrl.u32 %v3067_v32, 16  ;;  %v2648_v48 = vpack.c.bf16 %v457_v34, %v457_v34  ;;  %496 = vst.msk [vmem:[#allocation2 + $0x14] sm:$0xf] %vm3975_vm0, %v2647_v26  ;;  %v2788_v43 = vld [vmem:[%s3970_s4 + $0x28] sm:$0xff]   ;;  %2693 = vmatpush3.bf16.msra.mxu1 %v2789_v49 }
  0x2a   : > { %v692_v21 = vor.u32 %v691_v3, %v688_v63  ;;  %v696_v22 = vrot.slane %v694_v9, 4  ;;  %v699_v23 = vrot.slane %v697_v16, 5  ;;  %v595_v32 = vshll.u32 %v3075_v37, 16  ;;  %2657 = vmatpush3.bf16.msra.mxu0 %v2788_v43  ;;  %2694 = vmatprep.subr.bf16.mxu1 %v2791_v19 }
  0x2b   : > { %v1054_v31 = vsel %vm3976_vm4, %v1052_v62, %v1053_v17  ;;  %v599_v41 = vshrl.u32 %v3075_v37, 16  ;;  %vm3129_vm12 = vcmp.lt.s32.totalorder %v284_v8, 7  ;;  %v588_v52 = vsel %vm3044_vm14, %v583_v20, %v587_v38  ;;  %497 = vst.msk [vmem:[#allocation2 + $0x18] sm:$0xf] %vm3975_vm0, %v2648_v48  ;;  %v2790_v62 = vld [vmem:[%s3970_s4 + $0x60] sm:$0xff]  }
  0x2c   : > { %1061 = vrot.lane.b32.xlu0 %v1054_v31, %s2866_s23  ;;  %v3116_v47 = vor.u32 %v699_v23, %v696_v22  ;;  %v591_v53 = vrot.slane %v589_v39, 4  ;;  %v2566_v37 = vcombine.low %v1364_v27, %v1365_v30  ;;  %v3979_v54 = vand.u32 7, %v2999_v25  ;;  %2658 = vmatprep.subr.bf16.mxu0 %v2790_v62  ;;  %v2792_v20 = vld [vmem:[%s3970_s4 + $0x20] sm:$0xff]   ;;  %v2793_v27 = vld [vmem:[%s3970_s4 + $0xb0] sm:$0xff]   ;;  %vm889_vm0 = vmpackc.low %vm3129_vm12, %vm3129_vm12 }
  0x2d   : > { %vm3138_vm13 = vcmp.lt.s32.totalorder %v291_v13, 7  ;;  %v597_v8 = vrot.slane %v595_v32, 5  ;;  %vm3145_vm1 = vcmp.ne.s16.totalorder %v588_v52, 0  ;;  %v3978_v57 = vand.u32 7, %v3005_v29  ;;  %2695 = vmatpush3.bf16.msra.mxu1 %v2793_v27 }
  0x2e   : > { %v701_v2 = vsel %vm3974_vm3, %v692_v21, %v3116_v47  ;;  %vm3153_vm2 = vcmp.lt.s32.totalorder %v298_v14, 7  ;;  %v592_v13 = vor.u32 %v591_v53, %v587_v38  ;;  %v1425_v59 = vshrl.u32 %v2566_v37, 16  ;;  %2659 = vmatpush3.bf16.msra.mxu0 %v2792_v20 }
  0x2f   : > { %722 = vrot.lane.b32.xlu1 %v701_v2, %s2866_s23  ;;  %v1428_v60 = vshll.u32 %v2566_v37, 16  ;;  %vm382_vm5 = vcmp.gt.s32.totalorder %v3979_v54, 0  ;;  %vm3165_vm6 = vcmp.lt.s32.totalorder %v305_v15, 7  ;;  %vm3172_vm10 = vcmp.gt.s32.totalorder %v3978_v57, 0  ;;  %2660 = vmatprep.subr.bf16.mxu0 %v2794_v5 }
  0x30   : > { %720 = vrot.lane.b32.xlu0 %v692_v21, %s2866_s23  ;;  %v412_v63 = vmul.f32 %v2928_v4, %v397_v40  ;;  %v413_v3 = vmul.f32 %v2928_v4, %v398_v44  ;;  %vm532_vm11 = vmpackc.low %vm382_vm5, %vm382_vm5  ;;  %v601_v9 = vrot.slane %v599_v41, 4  ;;  %v593_v16 = vrot.slane %v592_v13, 4  ;;  %v3200_v31 = vld [vmem:[#allocation2 + $0x14] sm:$0xf] }
  0x31   : > { %v1427_v7 = vrot.slane %v1425_v59, 4  ;;  %v1430_v15 = vrot.slane %v1428_v60, 5  ;;  %vm533_vm15 = vmpackc.low %vm3172_vm10, %vm3172_vm10  ;;  %v3182_v18 = vsel %vm532_vm11, 65537, %v3980_v1  ;;  %v3202_v34 = vld [vmem:[#allocation2 + $0x14] sm:$0xf]  ;;  %v414_v39 = vmul.f32 %v2928_v4, %v399_v58 }
  0x32   : > { %v427_v21 = vadd.f32 %v2954_v10, %v412_v63  ;;  %v428_v22 = vadd.f32 %v2954_v10, %v413_v3  ;;  %v3193_v23 = vsel %vm533_vm15, 65537, %v3980_v1  ;;  %v602_v26 = vor.u32 %v601_v9, %v597_v8  ;;  %4026 = vst [vmem:[#allocation4_spill] sm:$0xff] %v3202_v34  ;;  %v1366_v38 = vld [vmem:[#allocation2 + $0x14] sm:$0xf]  ;;  %v3212_v36 = vld [vmem:[#allocation2 + $0x18] sm:$0xf]  ;;  %vm4038_vm12 = vmpackc.low %vm3165_vm6, %vm3165_vm6 }
  0x33   : > { %v598_v30 = vsel %vm3044_vm14, %v593_v16, %v597_v8  ;;  %v4027_v40 = vmov 0  ;;  %v1000_v44 = vsel %vm3145_vm1, %v3200_v31, 0  ;;  %v3214_v42 = vld [vmem:[#allocation2 + $0x18] sm:$0xf]  ;;  %v1431_v48 = vor.u32 %v1430_v15, %v1427_v7 }
  0x34   : > { %vm3205_vm5 = vcmp.ne.s16.totalorder %v598_v30, 0  ;;  %vm435_vm15 = vcmp.ge.f32.partialorder %v427_v21, 0.0  ;;  %vm436_vm10 = vcmp.ge.f32.partialorder %v428_v22, 0.0  ;;  %v1367_v32 = vld [vmem:[#allocation2 + $0x18] sm:$0xf]  ;;  %v450_v4 = vmul.f32 %v2996_v24, %v427_v21 }
  0x35   : > { %v4028_v40 = vsel %vm3205_vm5, 4294967295, %v4027_v40  ;;  %v451_v41 = vmul.f32 %v2996_v24, %v428_v22  ;;  %v3219_v43 = vadd.f32 %v2954_v10, %v414_v39  ;;  %v1001_v49 = vsel %vm3205_vm5, %v3212_v36, 0 }
  0x36   : > { %4029 = vst [vmem:[#allocation5_spill] sm:$0xff] %v4028_v40  ;;  %v2513_v52 = vcombine.low %v3202_v34, %v3214_v42  ;;  %v2567_v53 = vcombine.low %v1366_v38, %v1367_v32  ;;  %v603_v37 = vrot.slane %v602_v26, 4  ;;  %v3226_v2 = vcombine.low %v1000_v44, %v1001_v49 }
  0x37   : > { %v458_v8 = vsel %vm435_vm15, %v427_v21, %v450_v4  ;;  %v459_v58 = vsel %vm436_vm10, %v428_v22, %v451_v41  ;;  %v605_v13 = vshll.u32 %v3182_v18, 16  ;;  %vm891_vm15 = vmpackc.low %vm3153_vm2, %vm3153_vm2  ;;  %vm4030_vm11 = vcmask 1044480   ;;  %v2795_v41 = vld [vmem:[%s3970_s4 + $0xe8] sm:$0xff]  }
  0x38   : > { %v703_v10 = vshrl.u32 %v2513_v52, 16  ;;  %v706_v59 = vshll.u32 %v2513_v52, 16  ;;  %v1433_v60 = vshrl.u32 %v2567_v53, 16  ;;  %v1436_v62 = vshll.u32 %v2567_v53, 16  ;;  %2696 = vmatprep.subr.bf16.mxu1 %v2795_v41 }
  0x39   : > { %v1055_v14 = vrot.slane %v3226_v2, 3  ;;  %v2649_v63 = vpack.c.bf16 %v458_v8, %v458_v8  ;;  %v2650_v3 = vpack.c.bf16 %v459_v58, %v459_v58  ;;  %v607_v9 = vrot.slane %v605_v13, 5 }
  0x3a   : > { %v705_v16 = vrot.slane %v703_v10, 4  ;;  %v708_v7 = vrot.slane %v706_v59, 5  ;;  %v1435_v15 = vrot.slane %v1433_v60, 4  ;;  %v1438_v19 = vrot.slane %v1436_v62, 5 }
  0x3b   : > { %v1056_v20 = vsel %vm4030_vm11, %v1053_v17, %v1055_v14  ;;  %vm4031_vm3 = vcmask 519168   ;;  %v608_v21 = vsel %vm3044_vm14, %v603_v37, %v607_v9  ;;  %v609_v22 = vshrl.u32 %v3182_v18, 16  ;;  %v2797_v37 = vld [vmem:[%s3970_s4 + $0xa8] sm:$0xff]  }
  0x3c   : > { %498 = vst.msk [vmem:[#allocation2 + $0x1c] sm:$0xf] %vm4031_vm3, %v2649_v63  ;;  %vm4032_vm4 = vmmov %vm4031_vm3  ;;  %v615_v26 = vshll.u32 %v3193_v23, 16  ;;  %1063 = vrot.lane.b32.xlu1 %v1056_v20, %s2866_s23  ;;  %v3254_v27 = vor.u32 %v708_v7, %v705_v16  ;;  %v3256_v30 = vor.u32 %v1438_v19, %v1435_v15  ;;  %vm3258_vm10 = vcmp.ne.s16.totalorder %v608_v21, 0  ;;  %v3319_v15 = vld [vmem:[#allocation2 + $0x8] sm:$0xf]  ;;  %2697 = vmatpush3.bf16.msra.mxu1 %v2797_v37 }
  0x3d   : > { %499 = vst.msk [vmem:[#allocation2 + $0x20] sm:$0xf] %vm4032_vm4, %v2650_v3  ;;  %v897_v17 = vsel %vm889_vm0, 65537, %v3980_v1  ;;  %v611_v18 = vrot.slane %v609_v22, 4  ;;  %vm4035_vm3 = vmpackc.low %vm3138_vm13, %vm3138_vm13  ;;  %v899_v44 = vsel %vm891_vm15, 65537, %v3980_v1  ;;  %v900_v55 = vsel %vm4038_vm12, 65537, %v3980_v1 }
  0x3e   : > { %v3268_v38 = vrot.slane %v615_v26, 5  ;;  %v898_v39 = vsel %vm4035_vm3, 65537, %v3980_v1  ;;  %vm4036_vm0 = vsmask.f32 3328  ;;  %v906_v4 = vshrl.u32 %v897_v17, 16 }
  0x3f   : > { %v710_v50 = vsel %vm4036_vm0, %v3116_v47, %v3254_v27  ;;  %vm4037_vm4 = vmmov %vm4036_vm0  ;;  %v2796_v47 = vld [vmem:[%s3970_s4 + $0x18] sm:$0xff]   ;;  %v612_v49 = vor.u32 %v611_v18, %v607_v9  ;;  %v909_v52 = vshll.u32 %v897_v17, 16  ;;  %v914_v6 = vshrl.u32 %v898_v39, 16  ;;  %v3321_v19 = vld [vmem:[#allocation2 + $0xc] sm:$0xf] }
  0x40   : > { %v1440_v32 = vsel %vm4037_vm4, %v1431_v48, %v3256_v30  ;;  %724 = vrot.lane.b32.xlu0 %v710_v50, %s2866_s23  ;;  %v917_v53 = vshll.u32 %v898_v39, 16  ;;  %1459 = vrot.lane.b32.xlu1 %v1431_v48, %s2866_s23  ;;  %v908_v8 = vrot.slane %v906_v4, 7  ;;  %v923_v58 = vshrl.u32 %v899_v44, 16  ;;  %4043 = vst [vmem:[#allocation6_spill] sm:$0xff] %v3321_v19  ;;  %v2798_v4 = vld [vmem:[%s3970_s4 + $0x50] sm:$0xff]  }
  0x41   : > { %v926_v13 = vshll.u32 %v899_v44, 16  ;;  %v932_v10 = vshrl.u32 %v900_v55, 16  ;;  %v613_v59 = vrot.slane %v612_v49, 4  ;;  %v916_v60 = vrot.slane %v914_v6, 7  ;;  %2661 = vmatpush3.bf16.msra.mxu0 %v2796_v47  ;;  %v3355_v47 = vld [vmem:[#allocation2 + $0x10] sm:$0xf] }
  0x42   : > { %v935_v62 = vshll.u32 %v900_v55, 16  ;;  %vm4039_vm13 = vsmask.f32 4368  ;;  %vm4040_vm2 = vsmask.f32 256  ;;  %v3317_v48 = vor.u32 %v909_v52, %v908_v8  ;;  %2662 = vmatprep.subr.bf16.mxu0 %v2798_v4 }
  0x43   : > { %v3307_v63 = vld [vmem:[#allocation2 + $0x1c] sm:$0xf]  ;;  %vm3313_vm6 = vmor %vm4040_vm2, %vm4039_vm13  ;;  %v912_v16 = vrot.slane %v908_v8, 4  ;;  %v925_v7 = vrot.slane %v923_v58, 7  ;;  %v3325_v20 = vmul.f32 %v2996_v24, %v3219_v43  ;;  %v618_v21 = vsel %vm3044_vm14, %v613_v59, %v3268_v38  ;;  %v1599_v55 = vld [vmem:[#allocation2 + $0xc] sm:$0xf] }
  0x44   : > { %v3309_v3 = vld [vmem:[#allocation2 + $0x20] sm:$0xf]  ;;  %1461 = vrot.lane.b32.xlu0 %v1440_v32, %s2866_s23  ;;  %v1002_v22 = vsel %vm3258_vm10, %v3307_v63, 0  ;;  %v919_v26 = vor.u32 %v917_v53, %v916_v60  ;;  %v921_v17 = vrot.slane %v916_v60, 4  ;;  %v3334_v18 = vld [vmem:[#allocation2 + $0x1c] sm:$0xf] }
  0x45   : > { %v3336_v39 = vld [vmem:[#allocation2 + $0x20] sm:$0xf]  ;;  %vm3338_vm11 = vcmp.ne.s16.totalorder %v618_v21, 0  ;;  %v928_v44 = vor.u32 %v926_v13, %v925_v7  ;;  %v930_v50 = vrot.slane %v925_v7, 4  ;;  %v3342_v32 = vrot.slane %v932_v10, 7 }
  0x46   : > { %v1003_v5 = vsel %vm3338_vm11, %v3309_v3, 0  ;;  %v3352_v41 = vsel %vm3313_vm6, %v912_v16, %v919_v26  ;;  %vm3990_vm15 = vcmp.ne.s16.totalorder %v3317_v48, 0  ;;  %v1600_v49 = vld [vmem:[#allocation2 + $0x10] sm:$0xf]  ;;  %v3359_v52 = vcombine.low %v3334_v18, %v3336_v39  ;;  %v3369_v8 = vld [vmem:[#allocation2 + $0x14] sm:$0xf] }
  0x47   : > { %v3361_v6 = vcombine.low %v1002_v22, %v1003_v5  ;;  %v3365_v53 = vsel %vm3313_vm6, %v921_v17, %v928_v44  ;;  %v937_v37 = vor.u32 %v935_v62, %v3342_v32  ;;  %vm3989_vm3 = vcmp.ne.s16.totalorder %v3352_v41, 0  ;;  %v1601_v58 = vld [vmem:[#allocation2 + $0x14] sm:$0xf]  ;;  %v2799_v13 = vld [vmem:[%s3970_s4 + $0xe0] sm:$0xff]   ;;  %v1602_v60 = vld [vmem:[#allocation2 + $0x18] sm:$0xf] }
  0x48   : > { %vm3991_vm0 = vsmask.f32 7424  ;;  %vm3988_vm4 = vcmp.ne.s16.totalorder %v3365_v53, 0  ;;  %v1218_v10 = vsel %vm3990_vm15, %v3319_v15, 0  ;;  %v1219_v59 = vsel %vm3989_vm3, %v3321_v19, 0  ;;  %2698 = vmatprep.subr.bf16.mxu1 %v2799_v13 }
  0x49   : > { %v1608_v62 = vsel %vm3990_vm15, %v1599_v55, 0  ;;  %v3977_v16 = vrot.slane %v3361_v6, 3  ;;  %v3386_v7 = vsel %vm3313_vm6, %v930_v50, %v937_v37  ;;  %v1220_v21 = vsel %vm3988_vm4, %v3355_v47, 0  ;;  %v3416_v57 = vld [vmem:[#allocation2 + $0x1c] sm:$0xf] }
  0x4a   : > { %v2548_v22 = vcombine.low %v1218_v10, %v1219_v59  ;;  %vm3987_vm12 = vcmp.ne.s16.totalorder %v3386_v7, 0  ;;  %v1609_v26 = vsel %vm3989_vm3, %v1600_v49, 0  ;;  %v1610_v17 = vsel %vm3988_vm4, %v1601_v58, 0  ;;  %v2800_v49 = vld [vmem:[%s3970_s4 + $0x10] sm:$0xff]   ;;  %4047 = vst [vmem:[#allocation7_spill] sm:$0xff] %v3416_v57 }
  0x4b   : > { %v1618_v44 = vshrl.u32 %v1608_v62, 16  ;;  %vm437_vm13 = vcmp.ge.f32.partialorder %v3219_v43, 0.0  ;;  %vm4046_vm2 = vcmask 1044480   ;;  %v1221_v55 = vsel %vm3987_vm12, %v3369_v8, 0  ;;  %v3418_v54 = vld [vmem:[#allocation2 + $0x20] sm:$0xf]  ;;  %2663 = vmatpush3.bf16.msra.mxu0 %v2800_v49 }
  0x4c   : > { %v1058_v50 = vsel %vm4046_vm2, %v1055_v14, %v3977_v16  ;;  %v1272_v4 = vshrl.u32 %v2548_v22, 16  ;;  %v1274_v5 = vshll.u32 %v2548_v22, 16  ;;  %v3409_v37 = vcombine.low %v1220_v21, %v1221_v55  ;;  %v2801_v14 = vld [vmem:[%s3970_s4 + $0xa0] sm:$0xff]   ;;  %v2803_v49 = vld [vmem:[%s3970_s4 + $0xd8] sm:$0xff]   ;;  %v2850_v24 = vld [vmem:[#allocation2 + $0x8] sm:$0xf] }
  0x4d   : > { %1065 = vrot.lane.b32.xlu1 %v1058_v50, %s2866_s23  ;;  %v1611_v58 = vsel %vm3987_vm12, %v1602_v60, 0  ;;  %v1620_v2 = vrot.slane %v1618_v44, 4  ;;  %v1621_v13 = vshll.u32 %v1608_v62, 16  ;;  %v1627_v59 = vshll.u32 %v1609_v26, 16  ;;  %2699 = vmatpush3.bf16.msra.mxu1 %v2801_v14 }
  0x4e   : > { %v1276_v10 = vrot.slane %v1274_v5, 1  ;;  %v1631_v22 = vshrl.u32 %v1609_v26, 16  ;;  %v1637_v16 = vshll.u32 %v1610_v17, 16  ;;  %v1279_v21 = vshll.u32 %v3409_v37, 16  ;;  %v2802_v26 = vld [vmem:[%s3970_s4 + $0x48] sm:$0xff]   ;;  %2700 = vmatprep.subr.bf16.mxu1 %v2803_v49 }
  0x4f   : > { %v1623_v50 = vrot.slane %v1621_v13, 5  ;;  %v1641_v55 = vshrl.u32 %v1610_v17, 16  ;;  %v1647_v60 = vshll.u32 %v1611_v58, 16  ;;  %v1629_v44 = vrot.slane %v1627_v59, 5  ;;  %2664 = vmatprep.subr.bf16.mxu0 %v2802_v26 }
  0x50   : > { %v1277_v62 = vor.u32 %v1276_v10, %v1272_v4  ;;  %v1633_v1 = vrot.slane %v1631_v22, 4  ;;  %v1639_v33 = vrot.slane %v1637_v16, 5  ;;  %v3424_v5 = vrot.slane %v1279_v21, 1  ;;  %v2804_v16 = vld [vmem:[%s3970_s4 + $0x8] sm:$0xff]  }
  0x51   : > { %v1624_v28 = vor.u32 %v1623_v50, %v1620_v2  ;;  %v1643_v40 = vrot.slane %v1641_v55, 4  ;;  %v1649_v34 = vrot.slane %v1647_v60, 5  ;;  %v1651_v13 = vshrl.u32 %v1611_v58, 16  ;;  %2665 = vmatpush3.bf16.msra.mxu0 %v2804_v16 }
  0x52   : > { %v1634_v17 = vor.u32 %v1633_v1, %v1629_v44  ;;  %v712_v4 = vshrl.u32 %v3359_v52, 16  ;;  %v715_v14 = vshll.u32 %v3359_v52, 16  ;;  %v1282_v2 = vsel %vm3991_vm0, %v1277_v62, %v3424_v5  ;;  %v2805_v1 = vld [vmem:[%s3970_s4 + $0x98] sm:$0xff]  }
  0x53   : > { %v1625_v10 = vrot.slane %v1624_v28, 4  ;;  %v1644_v59 = vor.u32 %v1643_v40, %v1639_v33  ;;  %v2568_v22 = vcombine.low %v3416_v57, %v3418_v54  ;;  %v1653_v52 = vrot.slane %v1651_v13, 4  ;;  %1307 = vrot.lane.b32.xlu0 %v1282_v2, %s2866_s23  ;;  %2701 = vmatpush3.bf16.msra.mxu1 %v2805_v1 }
  0x54   : > { %v1635_v58 = vrot.slane %v1634_v17, 4  ;;  %v714_v21 = vrot.slane %v712_v4, 4  ;;  %v717_v50 = vrot.slane %v715_v14, 5  ;;  %vm4048_vm2 = vcmask 519168  }
  0x55   : > { %v1630_v55 = vsel %vm3044_vm14, %v1625_v10, %v1629_v44  ;;  %v1645_v28 = vrot.slane %v1644_v59, 4  ;;  %v1442_v40 = vshrl.u32 %v2568_v22, 16  ;;  %v1445_v60 = vshll.u32 %v2568_v22, 16  ;;  %vm4049_vm12 = vmmov %vm4048_vm2 }
  0x56   : > { %v1640_v62 = vsel %vm3044_vm14, %v1635_v58, %v1639_v33  ;;  %v1654_v26 = vor.u32 %v1653_v52, %v1649_v34  ;;  %1709 = vst.msk [vmem:[#allocation3 + $0x10] sm:$0xf] %vm4048_vm2, %v1630_v55  ;;  %v3447_v49 = vor.u32 %v717_v50, %v714_v21  ;;  %v460_v17 = vsel %vm437_vm13, %v3219_v43, %v3325_v20  ;;  %vm4050_vm4 = vmmov %vm4048_vm2  ;;  %v2808_v50 = vld [vmem:[%s3970_s4] sm:$0xff]  }
  0x57   : > { %v1650_v44 = vsel %vm3044_vm14, %v1645_v28, %v1649_v34  ;;  %1710 = vst.msk [vmem:[#allocation3 + $0x24] sm:$0xf] %vm4049_vm12, %v1640_v62  ;;  %v1444_v13 = vrot.slane %v1442_v40, 4  ;;  %v1447_v4 = vrot.slane %v1445_v60, 5  ;;  %v2651_v14 = vpack.c.bf16 %v460_v17, %v460_v17  ;;  %vm4053_vm12 = vmmov %vm4050_vm4  ;;  %v3504_v60 = vld [vmem:[#allocation2 + $0x28] sm:$0xf] }
  0x58   : > { %1711 = vst.msk [vmem:[#allocation3 + $0x38] sm:$0xf] %vm4050_vm4, %v1650_v44  ;;  %vm4051_vm2 = vsmask.f32 3328  ;;  %v619_v16 = vshrl.u32 %v3193_v23, 16  ;;  %v4052_v2 = vand.u32 7, %v2957_v11 }
  0x59   : > { %v719_v33 = vsel %vm4051_vm2, %v3254_v27, %v3447_v49  ;;  %v3463_v43 = vrot.slane %v1654_v26, 4  ;;  %v3466_v34 = vor.u32 %v1447_v4, %v1444_v13  ;;  %500 = vst.msk [vmem:[#allocation2 + $0x24] sm:$0xf] %vm4053_vm12, %v2651_v14  ;;  %v4054_v20 = vand.u32 7, %v2960_v12  ;;  %v2807_v12 = vld [vmem:[%s3970_s4 + $0xd0] sm:$0xff]  }
  0x5a   : > { %vm388_vm3 = vcmp.lt.s32.totalorder %v4052_v2, 7  ;;  %726 = vrot.lane.b32.xlu1 %v719_v33, %s2866_s23  ;;  %v1283_v10 = vshrl.u32 %v3409_v37, 16  ;;  %v621_v27 = vrot.slane %v619_v16, 4  ;;  %v4055_v23 = vmov 0   ;;  %2702 = vmatprep.subr.bf16.mxu1 %v2807_v12  ;;  %v2809_v62 = vld [vmem:[%s3970_s4 + $0x90] sm:$0xff]  }
  0x5b   : > { %vm389_vm4 = vcmp.lt.s32.totalorder %v4054_v20, 7  ;;  %vm893_vm13 = vmpackc.low %vm388_vm3, %vm388_vm3  ;;  %v4056_v11 = vand.u32 7, %v2999_v25  ;;  %v4059_v1 = vand.u32 7, %v3005_v29  ;;  %vm4062_vm3 = vsmask.f32 3328  ;;  %v2806_v29 = vld [vmem:[%s3970_s4 + $0x40] sm:$0xff]   ;;  %2703 = vmatpush3.bf16.msra.mxu1 %v2809_v62 }
  0x5c   : > { %vm894_vm2 = vmpackc.low %vm389_vm4, %vm389_vm4  ;;  %v901_v59 = vsel %vm893_vm13, 65537, %v4055_v23  ;;  %v1449_v37 = vsel %vm4062_vm3, %v3256_v30, %v3466_v34  ;;  %v622_v30 = vor.u32 %v621_v27, %v3268_v38  ;;  %v939_v55 = vrot.slane %v3342_v32, 4  ;;  %2666 = vmatprep.subr.bf16.mxu0 %v2806_v29  ;;  %v3525_v4 = vld [vmem:[#allocation2 + $0x18] sm:$0xf]  ;;  %v1603_v14 = vld [vmem:[#allocation2 + $0x1c] sm:$0xf] }
  0x5d   : > { %vm3475_vm15 = vcmp.lt.s32.totalorder %v4056_v11, 7  ;;  %vm3481_vm0 = vcmp.lt.s32.totalorder %v4059_v1, 7  ;;  %v902_v25 = vsel %vm894_vm2, 65537, %v4055_v23  ;;  %v941_v52 = vshrl.u32 %v901_v59, 16  ;;  %1463 = vrot.lane.b32.xlu0 %v1449_v37, %s2866_s23  ;;  %2667 = vmatpush3.bf16.msra.mxu0 %v2808_v50  ;;  %v2813_v27 = vld [vmem:[%s3970_s4 + $0xc8] sm:$0xff]   ;;  %v3587_v1 = vld [vmem:[%s3970_s4 + $0x118] sm:$0xff]  }
  0x5e   : > { %v944_v21 = vshll.u32 %v901_v59, 16  ;;  %vm895_vm12 = vmpackc.low %vm3475_vm15, %vm3475_vm15  ;;  %v950_v28 = vshrl.u32 %v902_v25, 16  ;;  %v953_v40 = vshll.u32 %v902_v25, 16  ;;  %v3513_v17 = vor.u32 %v1283_v10, %v3424_v5  ;;  %v3547_v37 = vld [vmem:[#allocation2 + $0x1c] sm:$0xf]  ;;  %2704 = vmatprep.subr.bf16.mxu1 %v2813_v27  ;;  %v2817_v27 = vld [vmem:[%s3970_s4 + $0x80] sm:$0xff]   ;;  %2740 = vmatprep.subr.bf16.mxu0 %v3587_v1 }
  0x5f   : > { %vm896_vm15 = vmpackc.low %vm3481_vm0, %vm3481_vm0  ;;  %v943_v26 = vrot.slane %v941_v52, 7  ;;  %v3516_v38 = vsel %vm895_vm12, 65537, %v4055_v23  ;;  %v3521_v44 = vrot.slane %v622_v30, 4  ;;  %v1604_v25 = vld [vmem:[#allocation2 + $0x20] sm:$0xf]  ;;  %vm4064_vm2 = vcmask 1044480  }
  0x60   : > { %v3519_v32 = vsel %vm896_vm15, 65537, %v4055_v23  ;;  %v3523_v13 = vrot.slane %v950_v28, 7  ;;  %v959_v33 = vshrl.u32 %v3516_v38, 16  ;;  %v962_v16 = vshll.u32 %v3516_v38, 16  ;;  %v995_v23 = vld [vmem:[#allocation2 + $0x24] sm:$0xf] }
  0x61   : > { %v946_v5 = vor.u32 %v944_v21, %v943_v26  ;;  %v948_v2 = vrot.slane %v943_v26, 4  ;;  %v968_v20 = vshrl.u32 %v3519_v32, 16  ;;  %v971_v10 = vshll.u32 %v3519_v32, 16  ;;  %v3536_v11 = vld [vmem:[#allocation2 + $0x24] sm:$0xf] }
  0x62   : > { %vm3994_vm0 = vcmp.ne.s16.totalorder %v3521_v44, 0  ;;  %v955_v59 = vor.u32 %v953_v40, %v3523_v13  ;;  %v957_v22 = vrot.slane %v3523_v13, 4  ;;  %v2569_v52 = vcombine.low %v3536_v11, %v3504_v60  ;;  %v2815_v13 = vld [vmem:[%s3970_s4 + $0x88] sm:$0xff]   ;;  %v3595_v57 = vld [vmem:[#allocation2 + $0x24] sm:$0xf] }
  0x63   : > { %v1004_v58 = vsel %vm3994_vm0, %v995_v23, 0  ;;  %v3545_v12 = vsel %vm3313_vm6, %v939_v55, %v946_v5  ;;  %v961_v21 = vrot.slane %v959_v33, 7  ;;  %v3556_v30 = vrot.slane %v968_v20, 7  ;;  %v2816_v33 = vld [vmem:[%s3970_s4 + $0xc0] sm:$0xff]   ;;  %2705 = vmatpush3.bf16.msra.mxu1 %v2815_v13 }
  0x64   : > { %v2534_v29 = vcombine.low %v1004_v58, %v1004_v58  ;;  %v3553_v50 = vsel %vm3313_vm6, %v948_v2, %v955_v59  ;;  %vm980_vm4 = vcmp.ne.s16.totalorder %v3545_v12, 0  ;;  %v1451_v40 = vshrl.u32 %v2569_v52, 16  ;;  %2706 = vmatprep.subr.bf16.mxu1 %v2816_v33  ;;  %v1605_v19 = vld [vmem:[#allocation2 + $0x24] sm:$0xf] }
  0x65   : > { %vm3997_vm13 = vcmp.ne.s16.totalorder %v3553_v50, 0  ;;  %v1222_v55 = vsel %vm980_vm4, %v3525_v4, 0  ;;  %v1612_v28 = vsel %vm980_vm4, %v1603_v14, 0  ;;  %v4063_v23 = vrot.slane %v3361_v6, 3 }
  0x66   : > { %v3564_v62 = vrot.slane %v2534_v29, 3  ;;  %v1223_v26 = vsel %vm3997_vm13, %v3547_v37, 0  ;;  %v1613_v38 = vsel %vm3997_vm13, %v1604_v25, 0  ;;  %v1657_v32 = vshll.u32 %v1612_v28, 16 }
  0x67   : > { %v2550_v14 = vcombine.low %v1222_v55, %v1223_v26  ;;  %v1661_v5 = vshrl.u32 %v1612_v28, 16  ;;  %v1667_v2 = vshll.u32 %v1613_v38, 16  ;;  %v1671_v20 = vshrl.u32 %v1613_v38, 16  ;;  %2707 = vmatpush3.bf16.msra.mxu1 %v2817_v27 }
  0x68   : > { %v1060_v59 = vsel %vm4064_vm2, %v4063_v23, %v3564_v62  ;;  %v1659_v58 = vrot.slane %v1657_v32, 5  ;;  %v1453_v25 = vrot.slane %v1451_v40, 4  ;;  %v1454_v29 = vshll.u32 %v2569_v52, 16  ;;  %v3593_v23 = vld [vmem:[#allocation2 + $0x20] sm:$0xf]  ;;  %2756 = vmatprep.subr.bf16.mxu1 %v3587_v1 }
  0x69   : > { %1067 = vrot.lane.b32.xlu1 %v1060_v59, %s2866_s23  ;;  %v1287_v55 = vshll.u32 %v2550_v14, 16  ;;  %v1663_v28 = vrot.slane %v1661_v5, 4  ;;  %v1669_v26 = vrot.slane %v1667_v2, 5  ;;  %v1673_v38 = vrot.slane %v1671_v20, 4  ;;  %v1606_v2 = vld [vmem:[#allocation2 + $0x28] sm:$0xf] }
  0x6a   : > { %v1660_v6 = vsel %vm3044_vm14, %v3463_v43, %v1659_v58  ;;  %v1456_v32 = vrot.slane %v1454_v29, 5  ;;  %v964_v40 = vor.u32 %v962_v16, %v961_v21  ;;  %v966_v52 = vrot.slane %v961_v21, 4  ;;  %v864_v29 = vld [vmem:[#allocation2 + $0x4] sm:$0xf] }
  0x6b   : > { %v1289_v13 = vrot.slane %v1287_v55, 1  ;;  %v1664_v59 = vor.u32 %v1663_v28, %v1659_v58  ;;  %v1674_v5 = vor.u32 %v1673_v38, %v1669_v26  ;;  %vm4065_vm3 = vcmask 519168  }
  0x6c   : > { %1712 = vst.msk [vmem:[#allocation3 + $0x4c] sm:$0xf] %vm4065_vm3, %v1660_v6  ;;  %v973_v33 = vor.u32 %v971_v10, %v3556_v30  ;;  %v1457_v20 = vor.u32 %v1456_v32, %v1453_v25  ;;  %v3602_v43 = vsel %vm3313_vm6, %v957_v22, %v964_v40  ;;  %v1291_v16 = vshrl.u32 %v2550_v14, 16  ;;  %v1217_v25 = vld [vmem:[#allocation2 + $0x28] sm:$0x1] }
  0x6d   : > { %v975_v21 = vrot.slane %v3556_v30, 4  ;;  %vm4066_vm12 = vsmask.f32 7424  ;;  %v1665_v58 = vrot.slane %v1664_v59, 4  ;;  %v1675_v28 = vrot.slane %v1674_v5, 4  ;;  %728 = vrot.lane.b32.xlu1 %v3447_v49, %s2866_s23 }
  0x6e   : > { %v1290_v55 = vsel %vm4066_vm12, %v3513_v17, %v1289_v13  ;;  %v3611_v10 = vsel %vm3313_vm6, %v966_v52, %v973_v33  ;;  %vm4067_vm15 = vsmask.f32 3328  ;;  %vm3996_vm2 = vcmp.ne.s16.totalorder %v3602_v43, 0 }
  0x6f   : > { %1309 = vrot.lane.b32.xlu0 %v1290_v55, %s2866_s23  ;;  %v1458_v22 = vsel %vm4067_vm15, %v3466_v34, %v1457_v20  ;;  %vm3995_vm3 = vcmp.ne.s16.totalorder %v3611_v10, 0  ;;  %v1293_v17 = vor.u32 %v1291_v16, %v1289_v13  ;;  %v1670_v49 = vsel %vm3044_vm14, %v1665_v58, %v1669_v26  ;;  %v1607_v13 = vld [vmem:[#allocation2 + $0x2c] sm:$0x1] }
  0x70   : > { %v1224_v30 = vsel %vm3996_vm2, %v3593_v23, 0  ;;  %v1225_v14 = vsel %vm3995_vm3, %v3595_v57, 0  ;;  %v1614_v27 = vsel %vm3996_vm2, %v1605_v19, 0  ;;  %vm4068_vm12 = vcmask 519168  }
  0x71   : > { %1713 = vst.msk [vmem:[#allocation3 + $0x60] sm:$0xf] %vm4068_vm12, %v1670_v49  ;;  %v2551_v34 = vcombine.low %v1224_v30, %v1225_v14  ;;  %v1615_v38 = vsel %vm3995_vm3, %v1606_v2, 0  ;;  %v1677_v6 = vshll.u32 %v1614_v27, 16  ;;  %v1681_v32 = vshrl.u32 %v1614_v27, 16  ;;  %1069 = vrot.lane.b32.xlu1 %v3564_v62, %s2866_s23 }
  0x72   : > { %v1687_v26 = vshll.u32 %v1615_v38, 16  ;;  %v1691_v40 = vshrl.u32 %v1615_v38, 16  ;;  %vm3634_vm15 = vcmp.ne.s16.totalorder %v975_v21, 0  ;;  %vm4071_vm0 = vcmp.ne.s16.totalorder %v3317_v48, 0 }
  0x73   : > { %v3640_v19 = vsel %vm4071_vm0, %v864_v29, 0  ;;  %1465 = vrot.lane.b32.xlu0 %v1458_v22, %s2866_s23  ;;  %v1295_v59 = vshll.u32 %v2551_v34, 16  ;;  %v1679_v5 = vrot.slane %v1677_v6, 5  ;;  %v1683_v33 = vrot.slane %v1681_v32, 4  ;;  %vm4072_vm0 = vmmov %vm4068_vm12 }
  0x74   : > { %v1226_v2 = vsel %vm3634_vm15, %v1217_v25, 0  ;;  %v1689_v62 = vrot.slane %v1687_v26, 5  ;;  %v1693_v16 = vrot.slane %v1691_v40, 4  ;;  %v1299_v21 = vshrl.u32 %v2551_v34, 16  ;;  %v2846_v25 = vld [vmem:[#allocation2 + $0x8] sm:$0xf] }
  0x75   : > { %v2552_v55 = vcombine.low %v1226_v2, %v1226_v2  ;;  %v1297_v58 = vrot.slane %v1295_v59, 1  ;;  %v1680_v49 = vsel %vm3044_vm14, %v1675_v28, %v1679_v5  ;;  %v1684_v30 = vor.u32 %v1683_v33, %v1679_v5  ;;  %1467 = vrot.lane.b32.xlu1 %v1457_v20, %s2866_s23  ;;  %v2848_v59 = vld [vmem:[#allocation2 + $0x10] sm:$0xf] }
  0x76   : > { %v1616_v48 = vsel %vm3634_vm15, %v1607_v13, 0  ;;  %v1694_v29 = vor.u32 %v1693_v16, %v1689_v62  ;;  %1714 = vst.msk [vmem:[#allocation3 + $0x74] sm:$0xf] %vm4072_vm0, %v1680_v49  ;;  %vm4073_vm12 = vcmp.ne.s16.totalorder %v3352_v41, 0  ;;  %vm4074_vm3 = vsmask.f32 7424 }
  0x77   : > { %v1303_v22 = vshll.u32 %v2552_v55, 16  ;;  %v1697_v14 = vshll.u32 %v1616_v48, 16  ;;  %v986_v27 = vsel %vm4073_vm12, %v2846_v25, 0  ;;  %v1298_v34 = vsel %vm4074_vm3, %v1293_v17, %v1297_v58  ;;  %vm4075_vm2 = vmmov %vm4074_vm3  ;;  %v2847_v17 = vld [vmem:[#allocation2 + $0xc] sm:$0xf] }
  0x78   : > { %v1685_v38 = vrot.slane %v1684_v30, 4  ;;  %v1301_v6 = vor.u32 %v1299_v21, %v1297_v58  ;;  %v2525_v28 = vcombine.low %v3640_v19, %v986_v27  ;;  %v1695_v32 = vrot.slane %v1694_v29, 4  ;;  %1311 = vrot.lane.b32.xlu0 %v1298_v34, %s2866_s23  ;;  %vm4076_vm3 = vmmov %vm4072_vm0  ;;  %v501_v21 = vld [vmem:[#allocation2] sm:$0x8]  ;;  %v2851_v49 = vld [vmem:[#allocation2 + $0x4] sm:$0xf] }
  0x79   : > { %v1305_v26 = vrot.slane %v1303_v22, 1  ;;  %v1699_v40 = vrot.slane %v1697_v14, 5  ;;  %vm4077_vm12 = vcmp.ne.s16.totalorder %v3365_v53, 0  ;;  %vm4078_vm13 = vcmp.ne.s16.totalorder %v3386_v7, 0 }
  0x7a   : > { %v1690_v20 = vsel %vm3044_vm14, %v1685_v38, %v1689_v62  ;;  %v3665_v19 = vsel %vm4077_vm12, %v2847_v17, 0  ;;  %v3669_v5 = vsel %vm4078_vm13, %v2848_v59, 0  ;;  %v3677_v2 = vsel %vm980_vm4, %v3200_v31, 0 }
  0x7b   : > { %1715 = vst.msk [vmem:[#allocation3 + $0x88] sm:$0xf] %vm4072_vm0, %v1690_v20  ;;  %v1306_v13 = vsel %vm4075_vm2, %v1301_v6, %v1305_v26  ;;  %v1700_v41 = vsel %vm3044_vm14, %v1695_v32, %v1699_v40  ;;  %v2526_v33 = vcombine.low %v3665_v19, %v3669_v5  ;;  %vm4079_vm2 = vcmp.ne.s16.totalorder %v3553_v50, 0  ;;  %v1363_v40 = vld [vmem:[#allocation2 + $0x8] sm:$0x8] }
  0x7c   : > { %1716 = vst.msk [vmem:[#allocation3 + $0x9c] sm:$0xf] %vm4076_vm3, %v1700_v41  ;;  %1313 = vrot.lane.b32.xlu0 %v1306_v13, %s2866_s23  ;;  %v3682_v53 = vsel %vm4079_vm2, %v3212_v36, 0  ;;  %v639_v7 = vsel %vm3258_vm10, %v3214_v42, 0  ;;  %v640_v62 = vsel %vm3338_vm11, %v3334_v18, 0  ;;  %vm4080_vm4 = vcmp.ne.s16.totalorder %v3602_v43, 0 }
  0x7d   : > { %v2527_v16 = vcombine.low %v3677_v2, %v3682_v53  ;;  %v3692_v55 = vcombine.low %v639_v7, %v640_v62  ;;  %v3697_v31 = vsel %vm4080_vm4, %v3307_v63, 0  ;;  %vm4081_vm13 = vcmp.ne.s16.totalorder %v3611_v10, 0  ;;  %v2852_v62 = vld [vmem:[#allocation2 + $0x10] sm:$0xf] }
  0x7e   : > { %v3702_v36 = vsel %vm4081_vm13, %v3309_v3, 0  ;;  %v2545_v42 = vcombine.low %v3355_v47, %v3369_v8  ;;  %vm4082_vm0 = vcmp.ne.s16.totalorder %v3521_v44, 0  ;;  %v1378_v63 = vsel %vm3258_vm10, %v3418_v54, 0  ;;  %v2849_v54 = vld [vmem:[#allocation2 + $0xc] sm:$0xf] }
  0x7f   : > { %v2528_v18 = vcombine.low %v3697_v31, %v3702_v36  ;;  %v3711_v12 = vsel %vm4082_vm0, %v3336_v39, 0  ;;  %v1379_v3 = vsel %vm3338_vm11, %v3536_v11, 0  ;;  %v2546_v43 = vcombine.low %v3525_v4, %v3547_v37  ;;  %vm4083_vm3 = vmmov %vm4082_vm0 }
  0x80   : > { %v3719_v50 = vcombine.low %v1378_v63, %v1379_v3  ;;  %v3726_v10 = vsel %vm4083_vm3, %v3504_v60, 0  ;;  %v2547_v39 = vcombine.low %v3593_v23, %v3595_v57  ;;  %vm730_vm12 = vcmask 523264   ;;  %v4085_v3 = vld [vmem:[#allocation4_spill] sm:$0xff] }
  0x81   : > { %v636_v61 = vsel %vm3089_vm9, %v2849_v54, 0  ;;  %v635_v11 = vsel %vm3083_vm8, %v2850_v24, 0  ;;  %vm4084_vm10 = vcmp.ne.s16.totalorder %v3031_v46, 0  ;;  %v634_v60 = vsel %vm3069_vm7, %v2851_v49, 0  ;;  %v2853_v46 = vld [vmem:[#allocation2 + $0xc] sm:$0xf] }
  0x82   : > { %v633_v58 = vsel %vm4084_vm10, %v501_v21, 0  ;;  %v2507_v48 = vcombine.low %v635_v11, %v636_v61  ;;  %v637_v63 = vsel %vm3145_vm1, %v2852_v62, 0  ;;  %v638_v54 = vsel %vm3205_vm5, %v4085_v3, 0  ;;  %vm4087_vm11 = vmmov %vm4084_vm10 }
  0x83   : > { %v2506_v29 = vcombine.low %v633_v58, %v634_v60  ;;  %v1372_v61 = vsel %vm4087_vm11, %v1363_v40, 0  ;;  %v2845_v9 = vld [vmem:[#allocation3 + $0x88] ss:$20 sps:$4 sm:$0xff]  }
  0x9e   : > { %v1062_v44 = vpop.permute.xlu0 %1061 }
  0x9f   : > { %v1073_v30 = vsel %vm730_vm12, %v2525_v28, %v1062_v44 }
  0xa0   : > { %v2535_v22 = vcombine.low %v1073_v30, %v1073_v30  ;;  %v2536_v14 = vcombine.high %v1073_v30, %v1073_v30 }
  0xa1   : > { %v723_v25 = vpop.permute.xlu1 %722 }
  0xa2   : > { %v1110_v27 = vshrl.u32 %v2535_v22, 16  ;;  %v1113_v34 = vshll.u32 %v2535_v22, 16  ;;  %v721_v38 = vpop.permute.xlu0 %720  ;;  %v1119_v6 = vshll.u32 %v2536_v14, 16  ;;  %v736_v32 = vsel %vm730_vm12, %v2507_v48, %v723_v25 }
  0xa3   : > { %v733_v26 = vsel %vm730_vm12, %v2506_v29, %v721_v38  ;;  %v2517_v41 = vcombine.low %v736_v32, %v736_v32  ;;  %v2518_v17 = vcombine.high %v736_v32, %v736_v32  ;;  %v1123_v11 = vshrl.u32 %v2536_v14, 16 }
  0xa4   : > { %v1112_v20 = vrot.slane %v1110_v27, 4  ;;  %v1115_v13 = vrot.slane %v1113_v34, 5  ;;  %v2515_v59 = vcombine.low %v733_v26, %v733_v26  ;;  %v2516_v28 = vcombine.high %v733_v26, %v733_v26 }
  0xa5   : > { %v1121_v24 = vrot.slane %v1119_v6, 5  ;;  %v787_v58 = vshrl.u32 %v2517_v41, 16  ;;  %v796_v49 = vshrl.u32 %v2518_v17, 16  ;;  %v790_v44 = vshll.u32 %v2517_v41, 16 }
  0xa6   : > { %v1116_v7 = vor.u32 %v1115_v13, %v1112_v20  ;;  %v773_v30 = vshrl.u32 %v2515_v59, 16  ;;  %v778_v48 = vshrl.u32 %v2516_v28, 16  ;;  %v799_v25 = vshll.u32 %v2518_v17, 16 }
  0xa7   : > { %v789_v29 = vrot.slane %v787_v58, 7  ;;  %v3748_v22 = vrot.slane %v796_v49, 7  ;;  %v781_v27 = vshll.u32 %v2516_v28, 16  ;;  %v1373_v14 = vsel %vm3069_vm7, %v2853_v46, 0  ;;  %v2854_v58 = vld [vmem:[#allocation2 + $0x10] sm:$0xf] }
  0xa8   : > { %v1117_v60 = vrot.slane %v1116_v7, 4  ;;  %v2524_v38 = vrot.slane %v773_v30, 11  ;;  %v780_v32 = vrot.slane %v778_v48, 7  ;;  %v1125_v6 = vrot.slane %v1123_v11, 4 }
  0xa9   : > { %v792_v26 = vor.u32 %v790_v44, %v789_v29  ;;  %v794_v40 = vrot.slane %v789_v29, 4  ;;  %v801_v20 = vor.u32 %v799_v25, %v3748_v22  ;;  %v2508_v7 = vcombine.low %v637_v63, %v638_v54 }
  0xaa   : > { %v1122_v34 = vsel %vm3044_vm14, %v1117_v60, %v1121_v24  ;;  %v783_v13 = vor.u32 %v781_v27, %v780_v32  ;;  %v785_v41 = vrot.slane %v780_v32, 4  ;;  %v2561_v62 = vcombine.low %v1372_v61, %v1373_v14  ;;  %v2855_v60 = vld [vmem:[#allocation2 + $0x14] sm:$0xf] }
  0xab   : > { %1201 = vst [vmem:[#allocation3 + $0x4] sm:$0xf] %v1122_v34  ;;  %v802_v17 = vsel %vm3313_vm6, %v794_v40, %v801_v20  ;;  %v1126_v3 = vor.u32 %v1125_v6, %v1121_v24  ;;  %v1374_v49 = vsel %vm3083_vm8, %v2854_v58, 0  ;;  %v1375_v44 = vsel %vm3089_vm9, %v2855_v60, 0 }
  0xac   : > { %858 = vst [vmem:[#allocation3 + $0x28] sm:$0xf] %v802_v17  ;;  %v784_v59 = vsel %vm3313_vm6, %v2524_v38, %v783_v13  ;;  %v793_v28 = vsel %vm3313_vm6, %v785_v41, %v792_v26  ;;  %v2562_v29 = vcombine.low %v1374_v49, %v1375_v44  ;;  %v803_v6 = vrot.slane %v3748_v22, 4 }
  0xad   : > { %856 = vst [vmem:[#allocation3] sm:$0xf] %v784_v59  ;;  %857 = vst [vmem:[#allocation3 + $0x14] sm:$0xf] %v793_v28  ;;  %v1127_v25 = vrot.slane %v1126_v3, 4  ;;  %vm2396_vm7 = vcmask 1041408  }
  0xae   : > { %v1064_v35 = vpop.permute.xlu1 %1063 }
  0xaf   : > { %v1076_v11 = vsel %vm730_vm12, %v2526_v33, %v1064_v35 }
  0xb0   : > { %v2537_v30 = vcombine.low %v1076_v11, %v1076_v11  ;;  %v2538_v48 = vcombine.high %v1076_v11, %v1076_v11 }
  0xb2   : > { %v725_v63 = vpop.permute.xlu0 %724  ;;  %v1129_v54 = vshll.u32 %v2537_v30, 16  ;;  %v1133_v61 = vshrl.u32 %v2537_v30, 16  ;;  %v1460_v24 = vpop.permute.xlu1 %1459  ;;  %v1139_v45 = vshll.u32 %v2538_v48, 16  ;;  %v1143_v34 = vshrl.u32 %v2538_v48, 16 }
  0xb3   : > { %v739_v19 = vsel %vm730_vm12, %v2508_v7, %v725_v63  ;;  %v1471_v5 = vsel %vm730_vm12, %v2561_v62, %v1460_v24 }
  0xb4   : > { %v1131_v33 = vrot.slane %v1129_v54, 5  ;;  %v1135_v27 = vrot.slane %v1133_v61, 4  ;;  %v2519_v38 = vcombine.low %v739_v19, %v739_v19  ;;  %v2520_v32 = vcombine.high %v739_v19, %v739_v19 }
  0xb5   : > { %v2570_v51 = vcombine.low %v1471_v5, %v1471_v5  ;;  %v2571_v46 = vcombine.high %v1471_v5, %v1471_v5  ;;  %v1141_v35 = vrot.slane %v1139_v45, 5  ;;  %v1145_v3 = vrot.slane %v1143_v34, 4 }
  0xb6   : > { %v1462_v14 = vpop.permute.xlu0 %1461  ;;  %v1132_v26 = vsel %vm3044_vm14, %v1127_v25, %v1131_v33  ;;  %v1136_v40 = vor.u32 %v1135_v27, %v1131_v33  ;;  %v805_v13 = vshrl.u32 %v2519_v38, 16  ;;  %v808_v41 = vshll.u32 %v2519_v38, 16 }
  0xb7   : > { %v1474_v20 = vsel %vm730_vm12, %v2562_v29, %v1462_v14  ;;  %1202 = vst [vmem:[#allocation3 + $0x18] sm:$0xf] %v1132_v26  ;;  %v814_v17 = vshrl.u32 %v2520_v32, 16  ;;  %v817_v59 = vshll.u32 %v2520_v32, 16  ;;  %v1508_v7 = vshrl.u32 %v2570_v51, 16 }
  0xb8   : > { %v1137_v28 = vrot.slane %v1136_v40, 4  ;;  %v1513_v62 = vshrl.u32 %v2571_v46, 16  ;;  %v807_v11 = vrot.slane %v805_v13, 7  ;;  %v2572_v22 = vcombine.low %v1474_v20, %v1474_v20  ;;  %v2810_v14 = vld [vmem:[#allocation3] ss:$20 sps:$4 sm:$0xff]  }
  0xb9   : > { %v3775_v58 = vrot.slane %v814_v17, 7  ;;  %v1516_v44 = vshll.u32 %v2571_v46, 16  ;;  %v2573_v30 = vcombine.high %v1474_v20, %v1474_v20  ;;  %v2579_v61 = vrot.slane %v1508_v7, 11  ;;  %v3797_v13 = vld [vmem:[%s3970_s4 + $0x110] sm:$0xff]  }
  0xba   : > { %v1142_v49 = vsel %vm3044_vm14, %v1137_v28, %v1141_v35  ;;  %v1515_v60 = vrot.slane %v1513_v62, 7  ;;  %v810_v48 = vor.u32 %v808_v41, %v807_v11  ;;  %v812_v63 = vrot.slane %v807_v11, 4  ;;  %v3810_v11 = vld [vmem:[%s3970_s4 + $0x108] sm:$0xff]  }
  0xbb   : > { %1203 = vst [vmem:[#allocation3 + $0x2c] sm:$0xf] %v1142_v49  ;;  %v819_v54 = vor.u32 %v817_v59, %v3775_v58  ;;  %v1522_v25 = vshrl.u32 %v2572_v22, 16  ;;  %v1525_v19 = vshll.u32 %v2572_v22, 16  ;;  %v1531_v27 = vshrl.u32 %v2573_v30, 16 }
  0xbc   : > { %v1518_v24 = vor.u32 %v1516_v44, %v1515_v60  ;;  %v1520_v29 = vrot.slane %v1515_v60, 4  ;;  %v811_v5 = vsel %vm3313_vm6, %v803_v6, %v810_v48  ;;  %v1534_v45 = vshll.u32 %v2573_v30, 16  ;;  %v4088_v44 = vld [vmem:[#allocation6_spill] sm:$0xff] }
  0xbd   : > { %v820_v33 = vsel %vm3313_vm6, %v812_v63, %v819_v54  ;;  %v1146_v38 = vor.u32 %v1145_v3, %v1141_v35  ;;  %859 = vst [vmem:[#allocation3 + $0x3c] sm:$0xf] %v811_v5  ;;  %v1524_v51 = vrot.slane %v1522_v25, 7  ;;  %v3790_v26 = vrot.slane %v1531_v27, 7 }
  0xbe   : > { %860 = vst [vmem:[#allocation3 + $0x50] sm:$0xf] %v820_v33  ;;  %v1519_v32 = vsel %vm3313_vm6, %v2579_v61, %v1518_v24  ;;  %v2812_v6 = vld [vmem:[#allocation3 + $0x4] ss:$20 sps:$4 sm:$0xff]   ;;  %v4089_v30 = vcombine.low %v3319_v15, %v4088_v44  ;;  %v3830_v15 = vld [vmem:[%s3970_s4 + $0x100] sm:$0xff]  }
  0xbf   : > { %v1066_v34 = vpop.permute.xlu1 %1065  ;;  %1591 = vst [vmem:[#allocation3 + $0xc] sm:$0xf] %v1519_v32  ;;  %v1527_v41 = vor.u32 %v1525_v19, %v1524_v51  ;;  %v1529_v17 = vrot.slane %v1524_v51, 4  ;;  %2173 = vmatprep.mubr.bf16.mxu0 %v2812_v6  ;;  %v1536_v2 = vor.u32 %v1534_v45, %v3790_v26  ;;  %v1147_v59 = vrot.slane %v1146_v38, 4  ;;  %v4090_v19 = vld [vmem:[#allocation7_spill] sm:$0xff] }
  0xc0   : > { %v1079_v46 = vsel %vm730_vm12, %v2527_v16, %v1066_v34  ;;  %2174 = vmatmul.mubr.bf16.vlgmr.msra.gmra.mxu0 %v2810_v14  ;;  %v1377_v5 = vsel %vm3205_vm5, %v4090_v19, 0  ;;  %v872_v19 = vld [vmem:[#allocation2 + $0x24] sm:$0x1] }
  0xc1   : > { %v2539_v40 = vcombine.low %v1079_v46, %v1079_v46  ;;  %v3792_v20 = vcombine.high %v1079_v46, %v1079_v46  ;;  %v1528_v28 = vsel %vm3313_vm6, %v1520_v29, %v1527_v41  ;;  %2741 = vmatpush3.bf16.msra.mxu0 %v3587_v1  ;;  %v1537_v35 = vsel %vm3313_vm6, %v1529_v17, %v1536_v2  ;;  %v2856_v29 = vld [vmem:[#allocation2 + $0x18] sm:$0xf] }
  0xc2   : > { %1592 = vst [vmem:[#allocation3 + $0x20] sm:$0xf] %v1528_v28  ;;  %2742 = vmatprep.subr.bf16.mxu0 %v3797_v13  ;;  %1593 = vst [vmem:[#allocation3 + $0x34] sm:$0xf] %v1537_v35  ;;  %v1376_v25 = vsel %vm3145_vm1, %v2856_v29, 0  ;;  %v821_v35 = vrot.slane %v3775_v58, 4 }
  0xc3   : > { %v1149_v53 = vshll.u32 %v2539_v40, 16  ;;  %v1153_v16 = vshrl.u32 %v2539_v40, 16  ;;  %v1159_v3 = vshll.u32 %v3792_v20, 16  ;;  %v2563_v21 = vcombine.low %v1376_v25, %v1377_v5 }
  0xc4   : > { %v2824_v41 = vld [vmem:[#allocation3 + $0x28] ss:$20 sps:$4 sm:$0xff]  }
  0xc5   : > { %v1151_v7 = vrot.slane %v1149_v53, 5  ;;  %v1155_v62 = vrot.slane %v1153_v16, 4  ;;  %v1308_v22 = vpop.permute.xlu0 %1307  ;;  %2743 = vmatpush3.bf16.msra.mxu0 %v3797_v13  ;;  %v3819_v24 = vrot.slane %v1159_v3, 5 }
  0xc6   : > { %v1317_v48 = vsel %vm730_vm12, %v4089_v30, %v1308_v22  ;;  %2744 = vmatprep.subr.bf16.mxu0 %v3810_v11 }
  0xc7   : > { %v1152_v49 = vsel %vm3044_vm14, %v1147_v59, %v1151_v7  ;;  %v1156_v60 = vor.u32 %v1155_v62, %v1151_v7  ;;  %v2553_v63 = vcombine.low %v1317_v48, %v1317_v48  ;;  %v2554_v54 = vcombine.high %v1317_v48, %v1317_v48 }
  0xc8   : > { %1204 = vst [vmem:[#allocation3 + $0x40] sm:$0xf] %v1152_v49  ;;  %v1163_v59 = vshrl.u32 %v3792_v20, 16 }
  0xc9   : > { %v1157_v61 = vrot.slane %v1156_v60, 4  ;;  %1355 = vst [vmem:[#allocation3 + $0x8] sm:$0xf] %v2553_v63  ;;  %1356 = vst [vmem:[#allocation3 + $0x1c] sm:$0xf] %v2554_v54  ;;  %2745 = vmatpush3.bf16.msra.mxu0 %v3810_v11  ;;  %v1538_v54 = vrot.slane %v3790_v26, 4 }
  0xca   : > { %2746 = vmatprep.subr.bf16.mxu0 %v3830_v15  ;;  %v2820_v28 = vld [vmem:[#allocation3 + $0xc] ss:$20 sps:$4 sm:$0xff]   ;;  %v1165_v48 = vrot.slane %v1163_v59, 4 }
  0xcb   : > { %v1162_v33 = vsel %vm3044_vm14, %v1157_v61, %v3819_v24  ;;  %2238 = vmatprep.mubr.bf16.mxu1 %v2820_v28 }
  0xcc   : > { %v727_v27 = vpop.permute.xlu1 %726  ;;  %1205 = vst [vmem:[#allocation3 + $0x54] sm:$0xf] %v1162_v33  ;;  %v2510_v33 = vcombine.low %v3711_v12, %v3711_v12  ;;  %v993_v12 = vsel %vm3634_vm15, %v872_v19, 0 }
  0xcd   : > { %v742_v56 = vsel %vm730_vm12, %v3692_v55, %v727_v27  ;;  %2747 = vmatpush3.bf16.msra.mxu0 %v3830_v15  ;;  %v1166_v27 = vor.u32 %v1165_v48, %v3819_v24 }
  0xce   : > { %v2521_v45 = vcombine.low %v742_v56, %v742_v56  ;;  %v2522_v34 = vcombine.high %v742_v56, %v742_v56 }
  0xcf   : > { %v1464_v38 = vpop.permute.xlu0 %1463  ;;  %v2821_v40 = vld [vmem:[#allocation3 + $0x2c] ss:$20 sps:$4 sm:$0xff]  }
  0xd0   : > { %v823_v32 = vshrl.u32 %v2521_v45, 16  ;;  %v832_v51 = vshrl.u32 %v2522_v34, 16  ;;  %v826_v46 = vshll.u32 %v2521_v45, 16  ;;  %v835_v14 = vshll.u32 %v2522_v34, 16  ;;  %v2818_v16 = vld [vmem:[#allocation3 + $0x8] ss:$20 sps:$4 sm:$0xff]   ;;  %2181 = vmatprep.mubr.bf16.mxu0 %v2821_v40 }
  0xd1   : > { %v1477_v6 = vsel %vm730_vm12, %v2563_v21, %v1464_v38  ;;  %2182 = vmatmul.mubr.bf16.gmra.mxu0 %v2824_v41  ;;  %2239 = vmatmul.mubr.bf16.vlgmr.msra.gmra.mxu1 %v2818_v16 }
  0xd2   : > { %v825_v17 = vrot.slane %v823_v32, 7  ;;  %v3841_v55 = vrot.slane %v832_v51, 7  ;;  %v2574_v2 = vcombine.low %v1477_v6, %v1477_v6  ;;  %v2575_v53 = vcombine.high %v1477_v6, %v1477_v6  ;;  %2760 = vmatpush3.bf16.msra.mxu1 %v3587_v1 }
  0xd3   : > { %2757 = vmatprep.subr.bf16.mxu1 %v3797_v13 }
  0xd4   : > { %v828_v7 = vor.u32 %v826_v46, %v825_v17  ;;  %v830_v62 = vrot.slane %v825_v17, 4  ;;  %v837_v3 = vor.u32 %v835_v14, %v3841_v55  ;;  %v1540_v22 = vshrl.u32 %v2574_v2, 16 }
  0xd5   : > { %v1543_v49 = vshll.u32 %v2574_v2, 16  ;;  %v1549_v60 = vshrl.u32 %v2575_v53, 16  ;;  %v1552_v44 = vshll.u32 %v2575_v53, 16  ;;  %v1167_v46 = vrot.slane %v1166_v27, 4 }
  0xd6   : > { %v829_v30 = vsel %vm3313_vm6, %v821_v35, %v828_v7  ;;  %v838_v20 = vsel %vm3313_vm6, %v830_v62, %v837_v3  ;;  %v1542_v58 = vrot.slane %v1540_v22, 7  ;;  %2761 = vmatpush3.bf16.msra.mxu1 %v3797_v13  ;;  %v2565_v7 = vcombine.low %v3726_v10, %v3726_v10 }
  0xd7   : > { %861 = vst [vmem:[#allocation3 + $0x64] sm:$0xf] %v829_v30  ;;  %862 = vst [vmem:[#allocation3 + $0x78] sm:$0xf] %v838_v20  ;;  %v3850_v63 = vrot.slane %v1549_v60, 7  ;;  %2758 = vmatprep.subr.bf16.mxu1 %v3810_v11 }
  0xd8   : > { %v1545_v61 = vor.u32 %v1543_v49, %v1542_v58  ;;  %v1547_v29 = vrot.slane %v1542_v58, 4 }
  0xd9   : > { %v1554_v25 = vor.u32 %v1552_v44, %v3850_v63  ;;  %v839_v44 = vrot.slane %v3841_v55, 4 }
  0xda   : > { %v1546_v56 = vsel %vm3313_vm6, %v1538_v54, %v1545_v61  ;;  %2762 = vmatpush3.bf16.msra.mxu1 %v3810_v11 }
  0xdb   : > { %v1068_v5 = vpop.permute.xlu1 %1067  ;;  %v1555_v1 = vsel %vm3313_vm6, %v1547_v29, %v1554_v25  ;;  %1594 = vst [vmem:[#allocation3 + $0x48] sm:$0xf] %v1546_v56  ;;  %2759 = vmatprep.subr.bf16.mxu1 %v3830_v15 }
  0xdc   : > { %v1082_v26 = vsel %vm730_vm12, %v2528_v18, %v1068_v5  ;;  %1595 = vst [vmem:[#allocation3 + $0x5c] sm:$0xf] %v1555_v1  ;;  %v2529_v18 = vcombine.low %v993_v12, %v993_v12 }
  0xdd   : > { %v2541_v21 = vcombine.low %v1082_v26, %v1082_v26  ;;  %v2542_v45 = vcombine.high %v1082_v26, %v1082_v26 }
  0xde   : > { %2763 = vmatpush3.bf16.msra.mxu1 %v3830_v15  ;;  %v2831_v12 = vld [vmem:[#allocation3 + $0x50] ss:$20 sps:$4 sm:$0xff]  }
  0xdf   : > { %v1169_v24 = vshll.u32 %v2541_v21, 16  ;;  %v1173_v34 = vshrl.u32 %v2541_v21, 16  ;;  %v1179_v38 = vshll.u32 %v2542_v45, 16  ;;  %v1183_v32 = vshrl.u32 %v2542_v45, 16  ;;  %v729_v51 = vpop.permute.xlu1 %728 }
  0xe0   : > { %v745_v36 = vsel %vm730_vm12, %v2510_v33, %v729_v51 }
  0xe1   : > { %v1310_v31 = vpop.permute.xlu0 %1309  ;;  %v1171_v13 = vrot.slane %v1169_v24, 5  ;;  %v1175_v14 = vrot.slane %v1173_v34, 4  ;;  %v1181_v6 = vrot.slane %v1179_v38, 5  ;;  %v1185_v40 = vrot.slane %v1183_v32, 4 }
  0xe2   : > { %v1320_v52 = vsel %vm730_vm12, %v2545_v42, %v1310_v31  ;;  %v2523_v41 = vcombine.low %v745_v36, %v745_v36  ;;  %v1556_v24 = vrot.slane %v3850_v63, 4  ;;  %v2825_v51 = vld [vmem:[#allocation3 + $0x34] ss:$20 sps:$4 sm:$0xff]  }
  0xe3   : > { %v1172_v17 = vsel %vm3044_vm14, %v1167_v46, %v1171_v13  ;;  %v1176_v2 = vor.u32 %v1175_v14, %v1171_v13  ;;  %v2555_v53 = vcombine.low %v1320_v52, %v1320_v52  ;;  %v1070_v16 = vpop.permute.xlu1 %1069  ;;  %v2556_v11 = vcombine.high %v1320_v52, %v1320_v52  ;;  %2246 = vmatprep.mubr.bf16.mxu1 %v2825_v51 }
  0xe4   : > { %1206 = vst [vmem:[#allocation3 + $0x68] sm:$0xf] %v1172_v17  ;;  %v841_v59 = vshrl.u32 %v2523_v41, 16  ;;  %v1085_v35 = vsel %vm730_vm12, %v2529_v18, %v1070_v16  ;;  %v1186_v8 = vor.u32 %v1185_v40, %v1181_v6  ;;  %v844_v22 = vshll.u32 %v2523_v41, 16  ;;  %v2842_v40 = vld [vmem:[#allocation3 + $0x10] ss:$20 sps:$4 sm:$0xff]  }
  0xe5   : > { %v1466_v28 = vpop.permute.xlu0 %1465  ;;  %v1177_v47 = vrot.slane %v1176_v2, 4  ;;  %1357 = vst [vmem:[#allocation3 + $0x30] sm:$0xf] %v2555_v53  ;;  %v2543_v62 = vcombine.low %v1085_v35, %v1085_v35  ;;  %1358 = vst [vmem:[#allocation3 + $0x44] sm:$0xf] %v2556_v11 }
  0xe6   : > { %v1480_v42 = vsel %vm730_vm12, %v3719_v50, %v1466_v28  ;;  %v843_v3 = vrot.slane %v841_v59, 7  ;;  %v1187_v61 = vrot.slane %v1186_v8, 4  ;;  %v2843_v17 = vld [vmem:[#allocation3 + $0x38] ss:$20 sps:$4 sm:$0xff]   ;;  %v2844_v53 = vld [vmem:[#allocation3 + $0x60] ss:$20 sps:$4 sm:$0xff]  }
  0xe7   : > { %v2576_v49 = vcombine.low %v1480_v42, %v1480_v42  ;;  %v2577_v60 = vcombine.high %v1480_v42, %v1480_v42  ;;  %v1182_v30 = vsel %vm3044_vm14, %v1177_v47, %v1181_v6  ;;  %v1189_v10 = vshll.u32 %v2543_v62, 16  ;;  %v1468_v20 = vpop.permute.xlu1 %1467 }
  0xe8   : > { %1207 = vst [vmem:[#allocation3 + $0x7c] sm:$0xf] %v1182_v30  ;;  %v846_v15 = vor.u32 %v844_v22, %v843_v3  ;;  %v1483_v19 = vsel %vm730_vm12, %v2565_v7, %v1468_v20 }
  0xe9   : > { %v1558_v48 = vshrl.u32 %v2576_v49, 16  ;;  %v1561_v58 = vshll.u32 %v2576_v49, 16  ;;  %v1567_v54 = vshrl.u32 %v2577_v60, 16  ;;  %v1570_v50 = vshll.u32 %v2577_v60, 16 }
  0xea   : > { %v1191_v29 = vrot.slane %v1189_v10, 5  ;;  %v1312_v25 = vpop.permute.xlu0 %1311  ;;  %v847_v5 = vsel %vm3313_vm6, %v839_v44, %v846_v15  ;;  %v2578_v21 = vcombine.low %v1483_v19, %v1483_v19 }
  0xeb   : > { %v1560_v55 = vrot.slane %v1558_v48, 7  ;;  %v1569_v33 = vrot.slane %v1567_v54, 7  ;;  %v1323_v27 = vsel %vm730_vm12, %v2546_v43, %v1312_v25  ;;  %863 = vst [vmem:[#allocation3 + $0x8c] sm:$0xf] %v847_v5  ;;  %v2827_v45 = vld [vmem:[#allocation3 + $0x54] ss:$20 sps:$4 sm:$0xff]  }
  0xec   : > { %v1192_v56 = vsel %vm3044_vm14, %v1187_v61, %v1191_v29  ;;  %v2557_v1 = vcombine.low %v1323_v27, %v1323_v27  ;;  %v2558_v26 = vcombine.high %v1323_v27, %v1323_v27  ;;  %v1576_v4 = vshrl.u32 %v2578_v21, 16  ;;  %2189 = vmatprep.mubr.bf16.mxu0 %v2827_v45  ;;  %v2829_v31 = vld [vmem:[#allocation3 + $0x30] ss:$20 sps:$4 sm:$0xff]  }
  0xed   : > { %v1563_v34 = vor.u32 %v1561_v58, %v1560_v55  ;;  %v1565_v38 = vrot.slane %v1560_v55, 4  ;;  %v1572_v32 = vor.u32 %v1570_v50, %v1569_v33  ;;  %1208 = vst [vmem:[#allocation3 + $0x90] sm:$0xf] %v1192_v56  ;;  %v1579_v37 = vshll.u32 %v2578_v21, 16  ;;  %2190 = vmatmul.mubr.bf16.gmra.mxu0 %v2831_v12  ;;  %2247 = vmatmul.mubr.bf16.gmra.mxu1 %v2829_v31 }
  0xee   : > { %1359 = vst [vmem:[#allocation3 + $0x58] sm:$0xf] %v2557_v1  ;;  %1360 = vst [vmem:[#allocation3 + $0x6c] sm:$0xf] %v2558_v26  ;;  %v1314_v43 = vpop.permute.xlu0 %1313  ;;  %v1578_v36 = vrot.slane %v1576_v4, 7  ;;  %v1574_v14 = vrot.slane %v1569_v33, 4 }
  0xef   : > { %v1564_v0 = vsel %vm3313_vm6, %v1556_v24, %v1563_v34  ;;  %v1573_v46 = vsel %vm3313_vm6, %v1565_v38, %v1572_v32  ;;  %v1326_v63 = vsel %vm730_vm12, %v2547_v39, %v1314_v43  ;;  %vm2394_vm14 = vcmask 1040384  }
  0xf0   : > { %1596 = vst [vmem:[#allocation3 + $0x70] sm:$0xf] %v1564_v0  ;;  %1597 = vst [vmem:[#allocation3 + $0x84] sm:$0xf] %v1573_v46  ;;  %v2559_v18 = vcombine.low %v1326_v63, %v1326_v63  ;;  %v2560_v13 = vcombine.high %v1326_v63, %v1326_v63  ;;  %v1581_v6 = vor.u32 %v1579_v37, %v1578_v36 }
  0xf2   : > { %1361 = vst [vmem:[#allocation3 + $0x80] sm:$0xf] %v2559_v18  ;;  %1362 = vst [vmem:[#allocation3 + $0x94] sm:$0xf] %v2560_v13  ;;  %v1582_v52 = vsel %vm3313_vm6, %v1574_v14, %v1581_v6  ;;  %v2838_v23 = vld [vmem:[#allocation3 + $0x78] ss:$20 sps:$4 sm:$0xff]  }
  0xf3   : > { %1598 = vst [vmem:[#allocation3 + $0x98] sm:$0xf] %v1582_v52 }
  0xf4   : > { %v2834_v57 = vld [vmem:[#allocation3 + $0x7c] ss:$20 sps:$4 sm:$0xff]  }
  0xf5   : > { %2197 = vmatprep.mubr.bf16.mxu0 %v2834_v57  ;;  %v2836_v41 = vld [vmem:[#allocation3 + $0x58] ss:$20 sps:$4 sm:$0xff]  }
  0xf6   : > { %2198 = vmatmul.mubr.bf16.gmra.mxu0 %v2838_v23 }
  0xf7   : > { %v2832_v39 = vld [vmem:[#allocation3 + $0x5c] ss:$20 sps:$4 sm:$0xff]   ;;  %2748 = vmatprep.mubr.msk.bf16.mxu0 %vm730_vm12, %v2842_v40 }
  0xf8   : > { %2254 = vmatprep.mubr.bf16.mxu1 %v2832_v39 }
  0xf9   : > { %2255 = vmatmul.mubr.bf16.gmra.mxu1 %v2836_v41  ;;  %v2841_v16 = vld [vmem:[#allocation3 + $0x80] ss:$20 sps:$4 sm:$0xff]  }
  0xfa   : > { %v2839_v2 = vld [vmem:[#allocation3 + $0x84] ss:$20 sps:$4 sm:$0xff]  }
  0xfb   : > { %2262 = vmatprep.mubr.bf16.mxu1 %v2839_v2 }
  0xfe   : > { %2749 = vmatmul.mubr.msk.bf16.vlgmr.msra.gmra.mxu0 %vm730_vm12, %v2843_v17 }
 0x101   : > { %2263 = vmatmul.mubr.bf16.gmra.mxu1 %v2841_v16 }
 0x102   : > { %2752 = vmatprep.mubr.msk.bf16.mxu1 %vm730_vm12, %v2844_v53 }
 0x109   : > { %2753 = vmatmul.mubr.msk.bf16.vlgmr.msra.gmra.mxu1 %vm730_vm12, %v2845_v9 }
 0x180   : > { %v2668_v11 = vpop.f32.mrf.mxu0 }
 0x182   : > { %v2669_v59 = vpop.f32.mrf.mxu0 }
 0x183   : > { %v2670_v27 = vadd.f32 %v2669_v59, %v2668_v11 }
 0x184   : > { %v2671_v28 = vpop.f32.mrf.mxu0 }
 0x186   : > { %v2672_v35 = vpop.f32.mrf.mxu0 }
 0x187   : > { %v2673_v4 = vadd.f32 %v2672_v35, %v2671_v28 }
 0x191   : > { %v2674_v7 = vpop.f32.mrf.mxu0  ;;  %v2708_v47 = vpop.f32.mrf.mxu1 }
 0x193   : > { %v2675_v8 = vpop.f32.mrf.mxu0  ;;  %v2709_v42 = vpop.f32.mrf.mxu1 }
 0x194   : > { %v2710_v19 = vadd.f32 %v2709_v42, %v2708_v47  ;;  %v2676_v5 = vadd.f32 %v2675_v8, %v2674_v7 }
 0x195   : > { %v2677_v62 = vpop.f32.mrf.mxu0  ;;  %v2711_v3 = vpop.f32.mrf.mxu1 }
 0x196   : > { %v2241_v38 = vadd.f32 %v2710_v19, %v2670_v27 }
 0x197   : > { %v2678_v22 = vpop.f32.mrf.mxu0  ;;  %v2712_v49 = vpop.f32.mrf.mxu1 }
 0x198   : > { %v2713_v45 = vadd.f32 %v2712_v49, %v2711_v3  ;;  %v2679_v12 = vadd.f32 %v2678_v22, %v2677_v62 }
 0x19a   : > { %v2244_v31 = vadd.f32 %v2713_v45, %v2673_v4 }
 0x1ad   : > { %v2680_v60 = vpop.f32.mrf.mxu0  ;;  %v2714_v44 = vpop.f32.mrf.mxu1 }
 0x1af   : > { %v2681_v30 = vpop.f32.mrf.mxu0  ;;  %v2715_v10 = vpop.f32.mrf.mxu1 }
 0x1b0   : > { %v2716_v50 = vadd.f32 %v2715_v10, %v2714_v44  ;;  %v2682_v52 = vadd.f32 %v2681_v30, %v2680_v60 }
 0x1b1   : > { %v3913_v20 = vpop.f32.mrf.mxu0  ;;  %v2717_v15 = vpop.f32.mrf.mxu1 }
 0x1b2   : > { %v2249_v26 = vadd.f32 %v2716_v50, %v2676_v5 }
 0x1b3   : > { %v3915_v48 = vpop.f32.mrf.mxu0  ;;  %v2718_v58 = vpop.f32.mrf.mxu1 }
 0x1b4   : > { %v2719_v56 = vadd.f32 %v2718_v58, %v2717_v15  ;;  %v2685_v44 = vadd.f32 %v3915_v48, %v3913_v20 }
 0x1b6   : > { %v2686_v54 = vpop.f32.mrf.mxu0  ;;  %v2252_v51 = vadd.f32 %v2719_v56, %v2679_v12 }
 0x1b8   : > { %v2687_v61 = vpop.f32.mrf.mxu0 }
 0x1b9   : > { %v2720_v29 = vpop.f32.mrf.mxu1  ;;  %v2688_v57 = vadd.f32 %v2687_v61, %v2686_v54 }
 0x1ba   : > { %v2689_v25 = vpop.f32.mrf.mxu0 }
 0x1bb   : > { %v2721_v55 = vpop.f32.mrf.mxu1 }
 0x1bc   : > { %v2690_v33 = vpop.f32.mrf.mxu0  ;;  %v2722_v36 = vadd.f32 %v2721_v55, %v2720_v29 }
 0x1bd   : > { %v2723_v1 = vpop.f32.mrf.mxu1  ;;  %v2691_v22 = vadd.f32 %v2690_v33, %v2689_v25 }
 0x1be   : > { %v2750_v21 = vpop.f32.mrf.mxu0  ;;  %v2257_v11 = vadd.f32 %v2722_v36, %v2682_v52 }
 0x1bf   : > { %v2724_v24 = vpop.f32.mrf.mxu1  ;;  %v2314_v34 = vadd.f32 %v2750_v21, %v2249_v26 }
 0x1c0   : > { %v2305_v32 = vpop.f32.mrf.mxu0  ;;  %v2725_v8 = vadd.f32 %v2724_v24, %v2723_v1 }
 0x1c1   : > { %v2726_v37 = vpop.f32.mrf.mxu1  ;;  %2338 = vst.msk [vmem:[%s3922_s25 + $0x10] sm:$0xff] %vm730_vm12, %v2314_v34  ;;  %v2306_v43 = vadd.f32 %v2305_v32, %v2241_v38  ;;  %v2367_v23 = vmul.f32 %v2314_v34, %v2314_v34  ;;  %v2347_v53 = vsel %vm730_vm12, %v2314_v34, 0.0 }
 0x1c2   : > { %v2751_v0 = vpop.f32.mrf.mxu0  ;;  %v2260_v20 = vadd.f32 %v2725_v8, %v2685_v44 }
 0x1c3   : > { %v2727_v46 = vpop.f32.mrf.mxu1  ;;  %2336 = vst.msk [vmem:[%s3922_s25] sm:$0xff] %vm730_vm12, %v2306_v43  ;;  %v2317_v63 = vadd.f32 %v2751_v0, %v2252_v51  ;;  %v2365_v14 = vmul.f32 %v2306_v43, %v2306_v43  ;;  %v2344_v39 = vsel %vm730_vm12, %v2306_v43, 0.0  ;;  %v2376_v49 = vsel %vm730_vm12, %v2367_v23, 0.0 }
 0x1c4   : > { %v2728_v18 = vadd.f32 %v2727_v46, %v2726_v37  ;;  %v2308_v13 = vpop.f32.mrf.mxu0 }
 0x1c5   : > { %v2729_v6 = vpop.f32.mrf.mxu1  ;;  %2339 = vst.msk [vmem:[%s3922_s25 + $0x18] sm:$0xff] %vm730_vm12, %v2317_v63  ;;  %v2309_v40 = vadd.f32 %v2308_v13, %v2244_v31  ;;  %v2373_v59 = vsel %vm730_vm12, %v2365_v14, 0.0  ;;  %v2368_v28 = vmul.f32 %v2317_v63, %v2317_v63  ;;  %v2349_v30 = vsel %vm730_vm12, %v2317_v63, 0.0 }
 0x1c6   : > { %v2265_v9 = vadd.f32 %v2728_v18, %v2688_v57 }
 0x1c7   : > { %v2730_v41 = vpop.f32.mrf.mxu1  ;;  %2337 = vst.msk [vmem:[%s3922_s25 + $0x8] sm:$0xff] %vm730_vm12, %v2309_v40  ;;  %v2345_v17 = vsel %vm730_vm12, %v2309_v40, 0.0  ;;  %v2366_v2 = vmul.f32 %v2309_v40, %v2309_v40  ;;  %v2378_v58 = vsel %vm730_vm12, %v2368_v28, 0.0 }
 0x1c8   : > { %v2346_v16 = vadd.f32 %v2345_v17, %v2344_v39  ;;  %v2731_v35 = vadd.f32 %v2730_v41, %v2729_v6 }
 0x1c9   : > { %v2374_v7 = vsel %vm730_vm12, %v2366_v2, 0.0  ;;  %v2754_v47 = vpop.f32.mrf.mxu1 }
 0x1ca   : > { %v2348_v42 = vadd.f32 %v2347_v53, %v2346_v16  ;;  %v2375_v62 = vadd.f32 %v2374_v7, %v2373_v59  ;;  %v2330_v3 = vadd.f32 %v2754_v47, %v2265_v9  ;;  %v2268_v61 = vadd.f32 %v2731_v35, %v2691_v22 }
 0x1cb   : > { %v2321_v60 = vpop.f32.mrf.mxu1 }
 0x1cc   : > { %v2377_v10 = vadd.f32 %v2376_v49, %v2375_v62  ;;  %2342 = vst.msk [vmem:[%s3922_s25 + $0x30] sm:$0xff] %vm730_vm12, %v2330_v3  ;;  %v2322_v15 = vadd.f32 %v2321_v60, %v2257_v11  ;;  %v2350_v54 = vadd.f32 %v2349_v30, %v2348_v42  ;;  %v2371_v1 = vmul.f32 %v2330_v3, %v2330_v3 }
 0x1cd   : > { %v2755_v50 = vpop.f32.mrf.mxu1  ;;  %v2355_v12 = vsel %vm730_vm12, %v2330_v3, 0.0 }
 0x1ce   : > { %2340 = vst.msk [vmem:[%s3922_s25 + $0x20] sm:$0xff] %vm730_vm12, %v2322_v15  ;;  %v2351_v29 = vsel %vm730_vm12, %v2322_v15, 0.0  ;;  %v2369_v25 = vmul.f32 %v2322_v15, %v2322_v15  ;;  %v2379_v19 = vadd.f32 %v2378_v58, %v2377_v10  ;;  %v2333_v5 = vadd.f32 %v2755_v50, %v2268_v61 }
 0x1cf   : > { %v2352_v48 = vadd.f32 %v2351_v29, %v2350_v54  ;;  %v2324_v55 = vpop.f32.mrf.mxu1  ;;  %v2384_v4 = vsel %vm730_vm12, %v2371_v1, 0.0 }
 0x1d0   : > { %v2380_v33 = vsel %vm730_vm12, %v2369_v25, 0.0  ;;  %v2325_v27 = vadd.f32 %v2324_v55, %v2260_v20  ;;  %2343 = vst.msk [vmem:[%s3922_s25 + $0x38] sm:$0xff] %vm730_vm12, %v2333_v5  ;;  %v2372_v24 = vmul.f32 %v2333_v5, %v2333_v5  ;;  %v2357_v37 = vsel %vm730_vm12, %v2333_v5, 0.0 }
 0x1d1   : > { %v2381_v56 = vadd.f32 %v2380_v33, %v2379_v19 }
 0x1d2   : > { %2341 = vst.msk [vmem:[%s3922_s25 + $0x28] sm:$0xff] %vm730_vm12, %v2325_v27  ;;  %v2353_v26 = vsel %vm730_vm12, %v2325_v27, 0.0  ;;  %v2370_v21 = vmul.f32 %v2325_v27, %v2325_v27  ;;  %v2386_v0 = vsel %vm730_vm12, %v2372_v24, 0.0 }
 0x1d3   : > { %v2354_v45 = vadd.f32 %v2353_v26, %v2352_v48 }
 0x1d4   : > { %v2382_v34 = vsel %vm730_vm12, %v2370_v21, 0.0 }
 0x1d5   : > { %v2356_v38 = vadd.f32 %v2355_v12, %v2354_v45  ;;  %v2383_v32 = vadd.f32 %v2382_v34, %v2381_v56 }
 0x1d7   : > { %v2358_v43 = vadd.f32 %v2357_v37, %v2356_v38  ;;  %v2385_v51 = vadd.f32 %v2384_v4, %v2383_v32 }
 0x1d9   : > { %v2359_v46 = vrot.slane %v2358_v43, 4  ;;  %v2387_v63 = vadd.f32 %v2386_v0, %v2385_v51 }
 0x1db   : > { %v2360_v31 = vadd.f32 %v2359_v46, %v2358_v43  ;;  %v2388_v36 = vrot.slane %v2387_v63, 4 }
 0x1dd   : > { %v2361_v18 = vrot.slane %v2360_v31, 2  ;;  %v2389_v13 = vadd.f32 %v2388_v36, %v2387_v63 }
 0x1df   : > { %v2362_v14 = vadd.f32 %v2361_v18, %v2360_v31  ;;  %v2390_v6 = vrot.slane %v2389_v13, 2 }
 0x1e1   : > { %v2363_v40 = vrot.slane %v2362_v14, 1  ;;  %v2391_v52 = vadd.f32 %v2390_v6, %v2389_v13 }
 0x1e3   : > { %v2392_v57 = vrot.slane %v2391_v52, 1  ;;  %v2364_v23 = vadd.f32 %v2363_v40, %v2362_v14 }
 0x1e5   : > { %v2393_v39 = vadd.f32 %v2392_v57, %v2391_v52 }
 0x1e7   : > { %v2395_v41 = vsel %vm2394_vm14, %v2364_v23, %v2393_v39 }
 0x1e8   : > { %v2397_v17 = vsel %vm2396_vm7, %v2395_v41, 0.0 }
 0x1e9   : > { %2398 = vst.msk [vmem:[%s262_s29] sm:$0xff] %vm730_vm12, %v2397_v17 }
 0x1ea PF: > { %s17_s21 = sadd.s32 1, %s2863_s21  }
 0x1eb   : > { %p14_p4 = scmp.ge.s32.totalorder %s17_s21, 4  }
 0x1ed   :  { %16 = sbr.rel (!%p14_p4) target bundleno = 1 (0x1), region = 82 }

</bundles_post_ra>
